<compile_context>
chip_gen: v7x
topology: tpu7x:2x2x1
jax: 0.10.0
libtpu: 0.0.40
codegen_flags: <defaults>
</compile_context>

<pallas_src>
import functools
import numpy as np
import jax
import jax.numpy as jnp
from jax import lax
from jax.experimental import pallas as pl
from jax.experimental.pallas import tpu as pltpu


def _round_up(x, m):
    return ((x + m - 1) // m) * m


def _cdiv(a, b):
    return -(-a // b)


# ----------------------------- Pallas kernel --------------------------------

def _stage_kernel(xm_ref, xh_ref, w1_ref, b_ref, w2_ref, out_ref,
                  *, shift_offsets, tn):
    """One (image, pixel-tile) step.

    xm_ref : (C, TN)        main pixel tile (bf16, padded-flat layout)
    xh_ref : (C, HALO_PAD)  right halo = the first HALO_PAD pixels of the next tile
    w1_ref : (F, K)         mean-folded RFF weights, (kh,kw)-major columns (bf16)
    b_ref  : (F, 1)         RFF bias (f32)
    w2_ref : (P, F)         PCA weights with sqrt(2/F) folded in (f32)
    out_ref: (P, TN)
    """
    # Stitch tile + halo, then rebuild the K = C*k*k patch rows with static
    # lane shifts (pure VMEM/XLU work, no extra HBM traffic).
    xc = jnp.concatenate([xm_ref[...], xh_ref[...]], axis=-1)       # (C, TN+HALO)
    patch = jnp.concatenate([xc[:, o:o + tn] for o in shift_offsets],
                            axis=0)                                  # (K, TN) bf16
    z = jnp.dot(w1_ref[...], patch,
                preferred_element_type=jnp.float32)                  # (F, TN) f32
    a = jnp.cos(z + b_ref[...])                                      # sqrt(2/F) folded into w2
    out_ref[...] = jnp.dot(w2_ref[...], a,
                           preferred_element_type=jnp.float32
                           ).astype(out_ref.dtype)                   # (P, TN)


def stage(x4, rff_w, rff_b, pca_w, *, inv_denom, tile_n=4096,
          out_dtype=jnp.float32):
    """One RNPCANet stage (rff conv - local mean, cos, PCA 1x1).

    x4:    (B_img, C, H, W)
    rff_w: (F, C, k, k)   rff_b: (F,)   pca_w: (P, F)
    Returns (B_img, P, H, W) in out_dtype.
    """
    Bimg, C, H, W = x4.shape
    F, Cw, k, k_ = rff_w.shape
    assert Cw == C and k == k_, (rff_w.shape, x4.shape)
    P = pca_w.shape[0]
    K = C * k * k
    p = (k - 1) // 2
    Hp, Wp = H + 2 * p, W + 2 * p

    # ---- tiling of the per-image flattened pixel axis (lane axis) ----
    q_need = H * Wp                                   # corner positions we keep
    halo = (k - 1) * Wp + (k - 1)                     # max shift offset
    halo_pad = max(128, _round_up(halo, 128))
    tn = _round_up(max(128, min(int(tile_n), q_need)), halo_pad)
    nq = _cdiv(q_need, tn)
    if Bimg * nq < 2 and q_need > halo_pad:           # keep >=2 steps for megacore
        tn = _round_up(_cdiv(q_need, 2), halo_pad)
        nq = _cdiv(q_need, tn)
    tq = nq * tn
    ratio = tn // halo_pad

    # ---- fold local-mean subtraction + sqrt(2/F) scale into the weights ----
    wf = rff_w - inv_denom * jnp.sum(rff_w, axis=(1, 2, 3), keepdims=True)
    w1 = jnp.transpose(wf, (0, 2, 3, 1)).reshape(F, K).astype(jnp.bfloat16)
    b1 = rff_b.reshape(F, 1).astype(jnp.float32)
    w2 = (float(np.sqrt(2.0 / F)) * pca_w).astype(jnp.float32)

    # ---- zero 'same' padding + flat tail, in a single pad, then bf16 ----
    extra = tq + halo_pad - Hp * Wp                   # tail so halo reads stay in-bounds
    extra_rows = max(0, _cdiv(extra, Wp))
    xp = jnp.pad(x4.astype(jnp.bfloat16),
                 ((0, 0), (0, 0), (p, p + extra_rows), (p, p)))
    Lx = (Hp + extra_rows) * Wp
    xflat = xp.reshape(Bimg, C, Lx)                   # (B_img, C, Lx) bf16

    offs = tuple(kh * Wp + kw for kh in range(k) for kw in range(k))
    kern = functools.partial(_stage_kernel, shift_offsets=offs, tn=tn)

    out_bytes = Bimg * P * tq * np.dtype(out_dtype).itemsize
    cost = pl.CostEstimate(
        flops=2 * Bimg * tq * (F * K + P * F),
        transcendentals=Bimg * tq * F,
        bytes_accessed=int(Bimg * C * Lx * 2 + out_bytes
                           + w1.size * 2 + b1.size * 4 + w2.size * 4))

    out = pl.pallas_call(
        kern,
        out_shape=jax.ShapeDtypeStruct((Bimg, P, tq), out_dtype),
        grid_spec=pltpu.PrefetchScalarGridSpec(
            num_scalar_prefetch=0,
            grid=(Bimg, nq),
            in_specs=[
                # main pixel tile of the current image
                pl.BlockSpec((None, C, tn), lambda b, i: (b, 0, i)),
                # right halo: first halo_pad pixels of the next tile (same array)
                pl.BlockSpec((None, C, halo_pad),
                             lambda b, i: (b, 0, (i + 1) * ratio)),
                pl.BlockSpec((F, K), lambda b, i: (0, 0)),
                pl.BlockSpec((F, 1), lambda b, i: (0, 0)),
                pl.BlockSpec((P, F), lambda b, i: (0, 0)),
            ],
            out_specs=pl.BlockSpec((None, P, tn), lambda b, i: (b, 0, i)),
        ),
        compiler_params=pltpu.CompilerParams(
            dimension_semantics=("parallel", "parallel")),
        cost_estimate=cost,
    )(xflat, xflat, w1, b1, w2)

    # Valid region: corner rows h < H of the padded grid, columns w < W.
    y = out[:, :, :H * Wp].reshape(Bimg, P, H, Wp)[:, :, :, :W]
    return y


# ------------------------------- forward pass --------------------------------

def rnpcanet_forward(x, params, cfg):
    B, C, H, W = x.shape
    k1, k2 = cfg["k1"], cfg["k2"]
    P1, P2 = cfg["P1"], cfg["P2"]
    tile_n = cfg.get("tile_n", 4096)

    # ---- stage 1 (output written directly in (B, P1, H, W) order, bf16) ----
    y1 = stage(x, params["rff1_w"], params["rff1_b"], params["pca1_w"],
               inv_denom=1.0 / (k1 * k1 * C), tile_n=tile_n,
               out_dtype=jnp.bfloat16)                       # (B, P1, H, W)
    x2 = y1.reshape(B * P1, 1, H, W)                         # contiguous, no transpose

    # ---- stage 2 ----
    y2 = stage(x2, params["rff2_w"], params["rff2_b"], params["pca2_w"],
               inv_denom=1.0 / (k2 * k2), tile_n=tile_n,
               out_dtype=jnp.float32)                        # (B*P1, P2, H, W)
    out = y2.reshape(B, P1 * P2, H, W)
    # TODO(synk): HistHash module is not defined in the reference source; the
    # block-histogram hashing stage is omitted and the pre-hist tensor returned.
    return out


# --------------------------- pure-JAX reference ------------------------------

def _conv_nchw(x, w, pad):
    return lax.conv_general_dilated(
        x, w, window_strides=(1, 1), padding=[(pad, pad), (pad, pad)],
        dimension_numbers=("NCHW", "OIHW", "NCHW"))


def reference_forward(x, params, cfg):
    """Mirrors the PyTorch forward (lax.conv based), torch-layout params."""
    B, C, H, W = x.shape
    k1, k2 = cfg["k1"], cfg["k2"]
    F1, F2 = cfg["F1"], cfg["F2"]
    P1, P2 = cfg["P1"], cfg["P2"]
    p1, p2 = (k1 - 1) // 2, (k2 - 1) // 2

    rw1, rb1, pw1 = params["rff1_w"], params["rff1_b"], params["pca1_w"]
    rw2, rb2, pw2 = params["rff2_w"], params["rff2_b"], params["pca2_w"]

    # stage 1
    mean_w1 = jnp.full((C, C, k1, k1), 1.0 / (k1 * k1 * C), jnp.float32)
    xm = _conv_nchw(x, mean_w1, p1)
    mm1 = jnp.sum(rw1, axis=(2, 3))[:, :, None, None]         # (F1, C, 1, 1)
    xm = _conv_nchw(xm, mm1, 0)
    xr = _conv_nchw(x, rw1, p1) + rb1[None, :, None, None]
    xr = np.sqrt(2.0 / F1) * jnp.cos(xr - xm)
    xr = jnp.transpose(xr, (0, 2, 3, 1)).reshape(B, H * W, F1)
    xr = xr @ pw1.T
    xr = jnp.transpose(xr, (0, 2, 1)).reshape(B, P1, H, W)
    xr = xr.reshape(B * P1, 1, H, W)

    # stage 2
    mean_w2 = jnp.full((1, 1, k2, k2), 1.0 / (k2 * k2), jnp.float32)
    xm = _conv_nchw(xr, mean_w2, p2)
    mm2 = jnp.sum(rw2, axis=(2, 3))[:, :, None, None]         # (F2, 1, 1, 1)
    xm = _conv_nchw(xm, mm2, 0)
    x2 = _conv_nchw(xr, rw2, p2) + rb2[None, :, None, None]
    x2 = np.sqrt(2.0 / F2) * jnp.cos(x2 - xm)
    x2 = jnp.transpose(x2, (0, 2, 3, 1)).reshape(B * P1, H * W, F2)
    x2 = x2 @ pw2.T
    x2 = jnp.transpose(x2, (0, 2, 1)).reshape(B, P1 * P2, H, W)
    return x2


# ---------------------------------- main --------------------------------------

if __name__ == "__main__":
    # Small, consistent shapes (the module's own reshape arithmetic requires
    # F1 == F2 and P1 == P2, as in the original code).
    cfg = dict(k1=3, k2=3, F1=32, F2=32, P1=8, P2=8, tile_n=4096)
    B, C, H, W = 2, 3, 16, 16

    key = jax.random.PRNGKey(0)
    ks = jax.random.split(key, 7)
    x = jax.random.normal(ks[0], (B, C, H, W), jnp.float32)

    # Deterministic synthetic parameters in torch layouts (OIHW conv weights,
    # (out, in) linear weights); both paths consume the same dict.
    params = {
        "rff1_w": 0.1 * jax.random.normal(ks[1], (cfg["F1"], C, cfg["k1"], cfg["k1"]), jnp.float32),
        "rff1_b": 0.1 * jax.random.normal(ks[2], (cfg["F1"],), jnp.float32),
        "pca1_w": 0.1 * jax.random.normal(ks[3], (cfg["P1"], cfg["F1"]), jnp.float32),
        "rff2_w": 0.1 * jax.random.normal(ks[4], (cfg["F2"], 1, cfg["k2"], cfg["k2"]), jnp.float32),
        "rff2_b": 0.1 * jax.random.normal(ks[5], (cfg["F2"],), jnp.float32),
        "pca2_w": 0.1 * jax.random.normal(ks[6], (cfg["P2"], cfg["F2"]), jnp.float32),
    }

    fwd = jax.jit(lambda xx, pp: rnpcanet_forward(xx, pp, cfg))
    ref_fn = jax.jit(lambda xx, pp: reference_forward(xx, pp, cfg))

    out = jax.block_until_ready(fwd(x, params))
    ref = jax.block_until_ready(ref_fn(x, params))

    assert out.shape == (B, cfg["P1"] * cfg["P2"], H, W), out.shape
    # bf16 patch/weight path vs. f32 reference -> looser tolerance than pure f32.
    np.testing.assert_allclose(np.asarray(out), np.asarray(ref),
                               rtol=2e-2, atol=2e-2)
    print("KERNEL_OK")
</pallas_src>

<mosaic_0001>
module attributes {stable_mosaic.version = 11 : i64} {
  func.func @_stage_kernel(%arg0: i32, %arg1: i32, %arg2: memref<1x3x384xbf16, #tpu.memory_space<vmem>>, %arg3: memref<1x3x128xbf16, #tpu.memory_space<vmem>>, %arg4: memref<32x27xbf16, #tpu.memory_space<vmem>>, %arg5: memref<32x1xf32, #tpu.memory_space<vmem>>, %arg6: memref<8x32xf32, #tpu.memory_space<vmem>>, %arg7: memref<1x8x384xbf16, #tpu.memory_space<vmem>>) attributes {dimension_semantics = [#tpu.dimension_semantics<parallel>, #tpu.dimension_semantics<parallel>], iteration_bounds = array<i64: 2, 1>, scalar_prefetch = 0 : i64, scratch_operands = 0 : i64, tpu.core_type = #tpu.core_type<tc>, window_params = [{transform_indices = @transform_0, window_bounds = array<i64: 1, 3, 384>}, {transform_indices = @transform_1, window_bounds = array<i64: 1, 3, 128>}, {pipeline_mode = #tpu.pipeline_mode<synchronous>, transform_indices = @transform_2, window_bounds = array<i64: 32, 27>}, {pipeline_mode = #tpu.pipeline_mode<synchronous>, transform_indices = @transform_3, window_bounds = array<i64: 32, 1>}, {pipeline_mode = #tpu.pipeline_mode<synchronous>, transform_indices = @transform_4, window_bounds = array<i64: 8, 32>}, {transform_indices = @transform_5, window_bounds = array<i64: 1, 8, 384>}]} {
    %c0 = arith.constant 0 : index
    %c0_0 = arith.constant 0 : index
    %c0_1 = arith.constant 0 : index
    %0 = vector.load %arg2[%c0, %c0_0, %c0_1] : memref<1x3x384xbf16, #tpu.memory_space<vmem>>, vector<1x3x384xbf16>
    %1 = vector.shape_cast %0 : vector<1x3x384xbf16> to vector<3x384xbf16>
    %c0_2 = arith.constant 0 : index
    %c0_3 = arith.constant 0 : index
    %c0_4 = arith.constant 0 : index
    %2 = vector.load %arg3[%c0_2, %c0_3, %c0_4] : memref<1x3x128xbf16, #tpu.memory_space<vmem>>, vector<1x3x128xbf16>
    %3 = vector.shape_cast %2 : vector<1x3x128xbf16> to vector<3x128xbf16>
    %4 = tpu.concatenate %1, %3 in 1 : vector<3x384xbf16>, vector<3x128xbf16> -> vector<3x512xbf16>
    %5 = vector.extract_strided_slice %4 {offsets = [0, 0], sizes = [3, 384], strides = [1, 1]} : vector<3x512xbf16> to vector<3x384xbf16>
    %6 = vector.extract_strided_slice %4 {offsets = [0, 1], sizes = [3, 384], strides = [1, 1]} : vector<3x512xbf16> to vector<3x384xbf16>
    %7 = vector.extract_strided_slice %4 {offsets = [0, 2], sizes = [3, 384], strides = [1, 1]} : vector<3x512xbf16> to vector<3x384xbf16>
    %8 = vector.extract_strided_slice %4 {offsets = [0, 18], sizes = [3, 384], strides = [1, 1]} : vector<3x512xbf16> to vector<3x384xbf16>
    %9 = vector.extract_strided_slice %4 {offsets = [0, 19], sizes = [3, 384], strides = [1, 1]} : vector<3x512xbf16> to vector<3x384xbf16>
    %10 = vector.extract_strided_slice %4 {offsets = [0, 20], sizes = [3, 384], strides = [1, 1]} : vector<3x512xbf16> to vector<3x384xbf16>
    %11 = vector.extract_strided_slice %4 {offsets = [0, 36], sizes = [3, 384], strides = [1, 1]} : vector<3x512xbf16> to vector<3x384xbf16>
    %12 = vector.extract_strided_slice %4 {offsets = [0, 37], sizes = [3, 384], strides = [1, 1]} : vector<3x512xbf16> to vector<3x384xbf16>
    %13 = vector.extract_strided_slice %4 {offsets = [0, 38], sizes = [3, 384], strides = [1, 1]} : vector<3x512xbf16> to vector<3x384xbf16>
    %14 = tpu.concatenate %5, %6, %7, %8, %9, %10, %11, %12, %13 in 0 : vector<3x384xbf16>, vector<3x384xbf16>, vector<3x384xbf16>, vector<3x384xbf16>, vector<3x384xbf16>, vector<3x384xbf16>, vector<3x384xbf16>, vector<3x384xbf16>, vector<3x384xbf16> -> vector<27x384xbf16>
    %c0_5 = arith.constant 0 : index
    %c0_6 = arith.constant 0 : index
    %15 = vector.load %arg4[%c0_5, %c0_6] : memref<32x27xbf16, #tpu.memory_space<vmem>>, vector<32x27xbf16>
    %cst = arith.constant dense<0.000000e+00> : vector<32x384xf32>
    %16 = tpu.matmul %15, %14, %cst {dimension_numbers = #tpu.dot_dimension_numbers<[1], [0], [0], [1], [0, 0, 1, 1], [], []>} : vector<32x27xbf16>, vector<27x384xbf16>, vector<32x384xf32> -> vector<32x384xf32>
    %c0_7 = arith.constant 0 : index
    %c0_8 = arith.constant 0 : index
    %17 = vector.load %arg5[%c0_7, %c0_8] : memref<32x1xf32, #tpu.memory_space<vmem>>, vector<32x1xf32>
    %18 = vector.broadcast %17 : vector<32x1xf32> to vector<32x384xf32>
    %19 = arith.addf %16, %18 : vector<32x384xf32>
    %20 = math.cos %19 : vector<32x384xf32>
    %c0_9 = arith.constant 0 : index
    %c0_10 = arith.constant 0 : index
    %21 = vector.load %arg6[%c0_9, %c0_10] : memref<8x32xf32, #tpu.memory_space<vmem>>, vector<8x32xf32>
    %cst_11 = arith.constant dense<0.000000e+00> : vector<8x384xf32>
    %22 = tpu.matmul %21, %20, %cst_11 {dimension_numbers = #tpu.dot_dimension_numbers<[1], [0], [0], [1], [0, 0, 1, 1], [], []>} : vector<8x32xf32>, vector<32x384xf32>, vector<8x384xf32> -> vector<8x384xf32>
    %23 = arith.truncf %22 : vector<8x384xf32> to vector<8x384xbf16>
    %c0_12 = arith.constant 0 : index
    %c0_13 = arith.constant 0 : index
    %c0_14 = arith.constant 0 : index
    %24 = vector.load %arg7[%c0_12, %c0_13, %c0_14] : memref<1x8x384xbf16, #tpu.memory_space<vmem>>, vector<1x8x384xbf16>
    %25 = vector.shape_cast %24 : vector<1x8x384xbf16> to vector<8x384xbf16>
    %26 = vector.shape_cast %23 : vector<8x384xbf16> to vector<1x8x384xbf16>
    tpu.vector_store %arg7[%c0_12, %c0_13, %c0_14], %26 {strides = array<i32>} : memref<1x8x384xbf16, #tpu.memory_space<vmem>>, vector<1x8x384xbf16>,
    return
  }
  func.func @transform_0(%arg0: i32, %arg1: i32) -> (i32, i32, i32) {
    %c0_i32 = arith.constant 0 : i32
    %c0_i32_0 = arith.constant 0 : i32
    return %arg0, %c0_i32, %arg1 : i32, i32, i32
  }
  func.func @transform_1(%arg0: i32, %arg1: i32) -> (i32, i32, i32) {
    %c1_i32 = arith.constant 1 : i32
    %0 = arith.addi %arg1, %c1_i32 : i32
    %c3_i32 = arith.constant 3 : i32
    %1 = arith.muli %0, %c3_i32 : i32
    %c0_i32 = arith.constant 0 : i32
    %c0_i32_0 = arith.constant 0 : i32
    return %arg0, %c0_i32, %1 : i32, i32, i32
  }
  func.func @transform_2(%arg0: i32, %arg1: i32) -> (i32, i32) {
    %c0_i32 = arith.constant 0 : i32
    %c0_i32_0 = arith.constant 0 : i32
    %c0_i32_1 = arith.constant 0 : i32
    return %c0_i32, %c0_i32_0 : i32, i32
  }
  func.func @transform_3(%arg0: i32, %arg1: i32) -> (i32, i32) {
    %c0_i32 = arith.constant 0 : i32
    %c0_i32_0 = arith.constant 0 : i32
    %c0_i32_1 = arith.constant 0 : i32
    return %c0_i32, %c0_i32_0 : i32, i32
  }
  func.func @transform_4(%arg0: i32, %arg1: i32) -> (i32, i32) {
    %c0_i32 = arith.constant 0 : i32
    %c0_i32_0 = arith.constant 0 : i32
    %c0_i32_1 = arith.constant 0 : i32
    return %c0_i32, %c0_i32_0 : i32, i32
  }
  func.func @transform_5(%arg0: i32, %arg1: i32) -> (i32, i32, i32) {
    %c0_i32 = arith.constant 0 : i32
    %c0_i32_0 = arith.constant 0 : i32
    return %arg0, %c0_i32, %arg1 : i32, i32, i32
  }
}

module attributes {stable_mosaic.version = 11 : i64} {
  func.func @_stage_kernel(%arg0: i32, %arg1: i32, %arg2: memref<1x1x384xbf16, #tpu.memory_space<vmem>>, %arg3: memref<1x1x128xbf16, #tpu.memory_space<vmem>>, %arg4: memref<32x9xbf16, #tpu.memory_space<vmem>>, %arg5: memref<32x1xf32, #tpu.memory_space<vmem>>, %arg6: memref<8x32xf32, #tpu.memory_space<vmem>>, %arg7: memref<1x8x384xf32, #tpu.memory_space<vmem>>) attributes {dimension_semantics = [#tpu.dimension_semantics<parallel>, #tpu.dimension_semantics<parallel>], iteration_bounds = array<i64: 16, 1>, scalar_prefetch = 0 : i64, scratch_operands = 0 : i64, tpu.core_type = #tpu.core_type<tc>, window_params = [{transform_indices = @transform_0, window_bounds = array<i64: 1, 1, 384>}, {transform_indices = @transform_1, window_bounds = array<i64: 1, 1, 128>}, {pipeline_mode = #tpu.pipeline_mode<synchronous>, transform_indices = @transform_2, window_bounds = array<i64: 32, 9>}, {pipeline_mode = #tpu.pipeline_mode<synchronous>, transform_indices = @transform_3, window_bounds = array<i64: 32, 1>}, {pipeline_mode = #tpu.pipeline_mode<synchronous>, transform_indices = @transform_4, window_bounds = array<i64: 8, 32>}, {transform_indices = @transform_5, window_bounds = array<i64: 1, 8, 384>}]} {
    %c0 = arith.constant 0 : index
    %c0_0 = arith.constant 0 : index
    %c0_1 = arith.constant 0 : index
    %0 = vector.load %arg2[%c0, %c0_0, %c0_1] : memref<1x1x384xbf16, #tpu.memory_space<vmem>>, vector<1x1x384xbf16>
    %1 = vector.shape_cast %0 : vector<1x1x384xbf16> to vector<1x384xbf16>
    %c0_2 = arith.constant 0 : index
    %c0_3 = arith.constant 0 : index
    %c0_4 = arith.constant 0 : index
    %2 = vector.load %arg3[%c0_2, %c0_3, %c0_4] : memref<1x1x128xbf16, #tpu.memory_space<vmem>>, vector<1x1x128xbf16>
    %3 = vector.shape_cast %2 : vector<1x1x128xbf16> to vector<1x128xbf16>
    %4 = tpu.concatenate %1, %3 in 1 : vector<1x384xbf16>, vector<1x128xbf16> -> vector<1x512xbf16>
    %5 = vector.extract_strided_slice %4 {offsets = [0, 0], sizes = [1, 384], strides = [1, 1]} : vector<1x512xbf16> to vector<1x384xbf16>
    %6 = vector.extract_strided_slice %4 {offsets = [0, 1], sizes = [1, 384], strides = [1, 1]} : vector<1x512xbf16> to vector<1x384xbf16>
    %7 = vector.extract_strided_slice %4 {offsets = [0, 2], sizes = [1, 384], strides = [1, 1]} : vector<1x512xbf16> to vector<1x384xbf16>
    %8 = vector.extract_strided_slice %4 {offsets = [0, 18], sizes = [1, 384], strides = [1, 1]} : vector<1x512xbf16> to vector<1x384xbf16>
    %9 = vector.extract_strided_slice %4 {offsets = [0, 19], sizes = [1, 384], strides = [1, 1]} : vector<1x512xbf16> to vector<1x384xbf16>
    %10 = vector.extract_strided_slice %4 {offsets = [0, 20], sizes = [1, 384], strides = [1, 1]} : vector<1x512xbf16> to vector<1x384xbf16>
    %11 = vector.extract_strided_slice %4 {offsets = [0, 36], sizes = [1, 384], strides = [1, 1]} : vector<1x512xbf16> to vector<1x384xbf16>
    %12 = vector.extract_strided_slice %4 {offsets = [0, 37], sizes = [1, 384], strides = [1, 1]} : vector<1x512xbf16> to vector<1x384xbf16>
    %13 = vector.extract_strided_slice %4 {offsets = [0, 38], sizes = [1, 384], strides = [1, 1]} : vector<1x512xbf16> to vector<1x384xbf16>
    %14 = tpu.concatenate %5, %6, %7, %8, %9, %10, %11, %12, %13 in 0 : vector<1x384xbf16>, vector<1x384xbf16>, vector<1x384xbf16>, vector<1x384xbf16>, vector<1x384xbf16>, vector<1x384xbf16>, vector<1x384xbf16>, vector<1x384xbf16>, vector<1x384xbf16> -> vector<9x384xbf16>
    %c0_5 = arith.constant 0 : index
    %c0_6 = arith.constant 0 : index
    %15 = vector.load %arg4[%c0_5, %c0_6] : memref<32x9xbf16, #tpu.memory_space<vmem>>, vector<32x9xbf16>
    %cst = arith.constant dense<0.000000e+00> : vector<32x384xf32>
    %16 = tpu.matmul %15, %14, %cst {dimension_numbers = #tpu.dot_dimension_numbers<[1], [0], [0], [1], [0, 0, 1, 1], [], []>} : vector<32x9xbf16>, vector<9x384xbf16>, vector<32x384xf32> -> vector<32x384xf32>
    %c0_7 = arith.constant 0 : index
    %c0_8 = arith.constant 0 : index
    %17 = vector.load %arg5[%c0_7, %c0_8] : memref<32x1xf32, #tpu.memory_space<vmem>>, vector<32x1xf32>
    %18 = vector.broadcast %17 : vector<32x1xf32> to vector<32x384xf32>
    %19 = arith.addf %16, %18 : vector<32x384xf32>
    %20 = math.cos %19 : vector<32x384xf32>
    %c0_9 = arith.constant 0 : index
    %c0_10 = arith.constant 0 : index
    %21 = vector.load %arg6[%c0_9, %c0_10] : memref<8x32xf32, #tpu.memory_space<vmem>>, vector<8x32xf32>
    %cst_11 = arith.constant dense<0.000000e+00> : vector<8x384xf32>
    %22 = tpu.matmul %21, %20, %cst_11 {dimension_numbers = #tpu.dot_dimension_numbers<[1], [0], [0], [1], [0, 0, 1, 1], [], []>} : vector<8x32xf32>, vector<32x384xf32>, vector<8x384xf32> -> vector<8x384xf32>
    %c0_12 = arith.constant 0 : index
    %c0_13 = arith.constant 0 : index
    %c0_14 = arith.constant 0 : index
    %23 = vector.load %arg7[%c0_12, %c0_13, %c0_14] : memref<1x8x384xf32, #tpu.memory_space<vmem>>, vector<1x8x384xf32>
    %24 = vector.shape_cast %23 : vector<1x8x384xf32> to vector<8x384xf32>
    %25 = vector.shape_cast %22 : vector<8x384xf32> to vector<1x8x384xf32>
    tpu.vector_store %arg7[%c0_12, %c0_13, %c0_14], %25 {strides = array<i32>} : memref<1x8x384xf32, #tpu.memory_space<vmem>>, vector<1x8x384xf32>,
    return
  }
  func.func @transform_0(%arg0: i32, %arg1: i32) -> (i32, i32, i32) {
    %c0_i32 = arith.constant 0 : i32
    %c0_i32_0 = arith.constant 0 : i32
    return %arg0, %c0_i32, %arg1 : i32, i32, i32
  }
  func.func @transform_1(%arg0: i32, %arg1: i32) -> (i32, i32, i32) {
    %c1_i32 = arith.constant 1 : i32
    %0 = arith.addi %arg1, %c1_i32 : i32
    %c3_i32 = arith.constant 3 : i32
    %1 = arith.muli %0, %c3_i32 : i32
    %c0_i32 = arith.constant 0 : i32
    %c0_i32_0 = arith.constant 0 : i32
    return %arg0, %c0_i32, %1 : i32, i32, i32
  }
  func.func @transform_2(%arg0: i32, %arg1: i32) -> (i32, i32) {
    %c0_i32 = arith.constant 0 : i32
    %c0_i32_0 = arith.constant 0 : i32
    %c0_i32_1 = arith.constant 0 : i32
    return %c0_i32, %c0_i32_0 : i32, i32
  }
  func.func @transform_3(%arg0: i32, %arg1: i32) -> (i32, i32) {
    %c0_i32 = arith.constant 0 : i32
    %c0_i32_0 = arith.constant 0 : i32
    %c0_i32_1 = arith.constant 0 : i32
    return %c0_i32, %c0_i32_0 : i32, i32
  }
  func.func @transform_4(%arg0: i32, %arg1: i32) -> (i32, i32) {
    %c0_i32 = arith.constant 0 : i32
    %c0_i32_0 = arith.constant 0 : i32
    %c0_i32_1 = arith.constant 0 : i32
    return %c0_i32, %c0_i32_0 : i32, i32
  }
  func.func @transform_5(%arg0: i32, %arg1: i32) -> (i32, i32, i32) {
    %c0_i32 = arith.constant 0 : i32
    %c0_i32_0 = arith.constant 0 : i32
    return %arg0, %c0_i32, %arg1 : i32, i32, i32
  }
}

</mosaic_0001>

<bundles_post_ra>
// kernel: _lambda_.2
= control target key start
LH: loop header
LB: loop body
LE: loop exit
PB: predicated region body
PF: predicated region fallthrough
CT: control target
= control target key end

     0   :  { %s2630_s18 = smov 0   ;;  %s2632_s19 = smov 0   ;;  %s4070_s0 = inlined_call_operand.vmem [shape: bf16[2,3,522], index: 0, kind: input, shape index: {}, may-alias: {0,1}]   ;;  %s4071_s1 = inlined_call_operand.vmem [shape: bf16[2,3,522], index: 1, kind: input, shape index: {}, may-alias: {0,1}]   ;;  %s4072_s2 = inlined_call_operand.vmem [shape: bf16[32,27], index: 2, kind: input, shape index: {}]   ;;  %s4073_s3 = inlined_call_operand.vmem [shape: f32[32,1], index: 3, kind: input, shape index: {}]   ;;  %s4074_s4 = inlined_call_operand.vmem [shape: f32[8,32], index: 4, kind: input, shape index: {}]   ;;  %s4075_s5 = inlined_call_operand.vmem [shape: bf16[2,8,384], index: 5, kind: output, shape index: {}]  }
   0x1   :  { %s2634_s20 = smov 0  }
   0x2 LB: > { %s27_s21 = sadd.s32 1, %s2574_s19  ;;  %p2287_p0 = scmp.ge.s32.totalorder %s2578_s20, 1  ;;  %s2578_s20 = sphi %s2634_s20, %s15_s20   ;;  %s2574_s19 = sphi %s2632_s19, %s4237_s19   ;;  %s2570_s18 = sphi %s2630_s18, %s4236_s18  }
   0x3   : > { %p29_p1 = scmp.ge.s32.totalorder %s27_s21, 2  ;;  %p239_p2 = scmp.lt.s32.totalorder %s2578_s20, 3 }
   0x5   : > { %s4239_s21 = smov (%p29_p1, %s27_s21), 0  ;;  %p240_p3 = pnand %p2287_p0, %p239_p2 }
   0x7   : > { %243 = sbr.rel (%p240_p3) target bundleno = 948 (0x3b4), region = 40 }
   0xe   : > { %p294_p4 = scmp.lt.s32.totalorder %s2570_s18, 1  ;;  %v337_v0 = vlaneseq  ;;  %v2580_v1 = vmov 1983009808   ;;  %s2581_s26 = smov 126   ;;  %vm4076_vm0 = vcmask 220160   ;;  %vm392_vm1 = vcmask 1039360  }
   0xf   : > { %v335_v2 = vunpack.c.l.s4 %v2580_v1  ;;  %s2582_s27 = smov 110   ;;  %s2583_s28 = smov 109   ;;  %vm552_vm2 = vcmask 1041408   ;;  %vm553_vm3 = vsmask.f32 1280  ;;  %vm4078_vm4 = vcmask 900096  }
  0x10   : > { %s4241_s18 = smov (!%p294_p4, %s2570_s18), 1  ;;  %v338_v3 = vshrl.u32 %v337_v0, 7  ;;  %s2584_s29 = smov 127   ;;  %vm571_vm5 = vcmask 1044480   ;;  %vm572_vm6 = vsmask.f32 4352  ;;  %vm2799_vm8 = vmand %vm552_vm2, %vm553_vm3 }
  0x11   : > { %v336_v4 = vunpack.c.0.s8 %v335_v2  ;;  %s2397_s22 = smul.u32 10, %s4241_s18  ;;  %s2585_s9 = smov 108   ;;  %vm412_vm7 = vcmask 1031168   ;;  %vm590_vm9 = vcmask 1047552   ;;  %vm591_vm10 = vsmask.f32 7424  ;;  %vm2808_vm11 = vmand %vm571_vm5, %vm572_vm6 }
  0x12   : > { %s2586_s10 = smov 92   ;;  %s2587_s11 = smov 91   ;;  %vm4077_vm12 = vcmask 891904   ;;  %vm558_vm13 = vcmask 1042432   ;;  %vm483_vm14 = vcmask 883712   ;;  %vm2823_vm15 = vmand %vm590_vm9, %vm591_vm10  ;;  %vm577_vm2 = vcmask 1045504  }
  0x13   : > { %v339_v5 = vsub.s32 %v336_v4, %v338_v3  ;;  %s301_s25 = scalar_lea.vmem %s4070_s0, %s2397_s22  ;;  %s2352_s30 = sadd.s32 6, %s2397_s22  ;;  %vm505_vm3 = vcmask 752640   ;;  %vm529_vm6 = vcmask 744448   ;;  %vm610_vm9 = vsmask.f32 2304 }
  0x14   : > { %v330_v6 = vld [vmem:[%s301_s25] sm:$0x3f]  ;;  %s316_s8 = scalar_lea.vmem %s4071_s1, %s2352_s30  ;;  %s2589_s14 = smov 90   ;;  %vm596_vm10 = vcmask 1040384  }
  0x15   : > { %v2656_v7 = vrot.slane %v330_v6, %v339_v5  ;;  %v333_v8 = vcombine.high %v330_v6, %v330_v6  ;;  %v2714_v41 = vld [vmem:[%s316_s8] sm:$0x3]  ;;  %v2588_v6 = vmov 0   ;;  %s2399_s6 = smul.u32 12, %s4241_s18 }
  0x16   : > { %v2722_v45 = vshll.u32 %v2714_v41, 16  ;;  %v377_v59 = vshrl.u32 %v2714_v41, 16  ;;  %711 = vmatprep.mubr.bf16.mxu0 %v2588_v6  ;;  %2503 = vset.pattern.permute.xlu0 %v2588_v6 }
  0x17   : > { %v400_v9 = vrot.slane %v2656_v7, 5  ;;  %v2659_v10 = vrot.slane %v333_v8, %v339_v5  ;;  %v2663_v11 = vcombine.high %v2656_v7, %v2656_v7  ;;  %v2666_v12 = vshrl.u32 %v2656_v7, 16  ;;  %v2755_v5 = vld [vmem:[%s4072_s2] sm:$0xff]   ;;  %2504 = vset.pattern.permute.xlu1 %v2588_v6 }
  0x18   : > { %v2669_v13 = vshll.u32 %v2656_v7, 16  ;;  %v443_v39 = vrot.slane %v2656_v7, 2  ;;  %v462_v49 = vrot.slane %v2722_v45, 1  ;;  %v493_v53 = vrot.slane %v2656_v7, 7  ;;  %2368 = vmatprep.mubr.msk.bf16.mxu1 %vm4076_vm0, %v2755_v5  ;;  %vm2856_vm0 = vmand %vm558_vm13, %vm610_vm9 }
  0x19   : > { %404 = vrot.lane.b32.xlu1 %v400_v9, %s2581_s26  ;;  %v402_v14 = vrot.slane %v2659_v10, 5  ;;  %v401_v15 = vrot.slane %v2663_v11, 5  ;;  %v416_v16 = vrot.slane %v2666_v12, 3  ;;  %v2677_v18 = vshrl.u32 %v2663_v11, 16 }
  0x1a   : > { %v417_v17 = vrot.slane %v2669_v13, 4  ;;  %v2680_v19 = vshll.u32 %v2663_v11, 16  ;;  %v2684_v20 = vshrl.u32 %v2659_v10, 16  ;;  %v2687_v21 = vshll.u32 %v2659_v10, 16 }
  0x1b   : > { %408 = vrot.lane.b32.xlu0 %v402_v14, %s2581_s26  ;;  %v363_v23 = vrot.slane %v2677_v18, 6  ;;  %v444_v25 = vrot.slane %v2663_v11, 2  ;;  %v355_v26 = vrot.slane %v2666_v12, 6  ;;  %v358_v27 = vrot.slane %v2669_v13, 7 }
  0x1c   : > { %v418_v22 = vor.u32 %v417_v17, %v416_v16  ;;  %v366_v24 = vrot.slane %v2680_v19, 7  ;;  %v371_v29 = vrot.slane %v2684_v20, 6  ;;  %v374_v30 = vrot.slane %v2687_v21, 7 }
  0x1d   : > { %406 = vrot.lane.b32.xlu1 %v401_v15, %s2581_s26  ;;  %v359_v31 = vor.u32 %v358_v27, %v355_v26  ;;  %v422_v32 = vrot.slane %v2684_v20, 3  ;;  %v423_v33 = vrot.slane %v2687_v21, 4  ;;  %v419_v35 = vrot.slane %v2677_v18, 3 }
  0x1e   : > { %v367_v28 = vor.u32 %v366_v24, %v363_v23  ;;  %v375_v34 = vor.u32 %v374_v30, %v371_v29  ;;  %v420_v36 = vrot.slane %v2680_v19, 4  ;;  %v460_v40 = vrot.slane %v2680_v19, 1  ;;  %v629_v23 = vld [vmem:[%s4073_s3] sm:$0xff]  ;;  %v631_v24 = vld [vmem:[%s4073_s3 + $0x10] sm:$0xff] }
  0x1f   : > { %428 = vrot.lane.b32.xlu0 %v418_v22, %s2582_s27  ;;  %v424_v37 = vor.u32 %v423_v33, %v422_v32  ;;  %v445_v42 = vrot.slane %v2659_v10, 2  ;;  %v461_v43 = vrot.slane %v2687_v21, 1  ;;  %v494_v47 = vrot.slane %v2663_v11, 7  ;;  %v630_v22 = vld [vmem:[%s4073_s3 + $0x8] sm:$0xff] }
  0x20   : > { %v421_v38 = vor.u32 %v420_v36, %v419_v35  ;;  %v464_v44 = vor.u32 %v460_v40, %v2677_v18  ;;  %v459_v48 = vrot.slane %v2669_v13, 1  ;;  %v495_v52 = vrot.slane %v2659_v10, 7 }
  0x21   : > { %449 = vrot.lane.b32.xlu1 %v444_v25, %s2583_s28  ;;  %v2493_v46 = vpack.i.bf16 %v461_v43, %v460_v40  ;;  %v465_v50 = vor.u32 %v461_v43, %v2684_v20  ;;  %v515_v54 = vrot.slane %v2684_v20, 5  ;;  %v516_v55 = vrot.slane %v2687_v21, 6  ;;  %v632_v25 = vld [vmem:[%s4073_s3 + $0x18] sm:$0xff] }
  0x22   : > { %v2498_v51 = vpack.i.bf16 %v462_v49, %v459_v48  ;;  %v463_v56 = vor.u32 %v459_v48, %v2666_v12  ;;  %v512_v57 = vrot.slane %v2677_v18, 5  ;;  %v513_v58 = vrot.slane %v2680_v19, 6 }
  0x23   : > { %386 = vrot.lane.b32.xlu0 %v367_v28, %s2584_s29  ;;  %v517_v60 = vor.u32 %v516_v55, %v515_v54  ;;  %v509_v61 = vrot.slane %v2666_v12, 5  ;;  %v510_v62 = vrot.slane %v2669_v13, 6  ;;  %v379_v0 = vrot.slane %v377_v59, 6 }
  0x24   : > { %v514_v63 = vor.u32 %v513_v58, %v512_v57  ;;  %v382_v1 = vrot.slane %v2722_v45, 7  ;;  %v538_v4 = vrot.slane %v2659_v10, 4  ;;  %v536_v8 = vrot.slane %v2656_v7, 4 }
  0x25   : > { %384 = vrot.lane.b32.xlu1 %v359_v31, %s2584_s29  ;;  %v511_v2 = vor.u32 %v510_v62, %v509_v61  ;;  %v403_v9 = vrot.slane %v2714_v41, 5  ;;  %v425_v12 = vrot.slane %v377_v59, 3  ;;  %v426_v13 = vrot.slane %v2722_v45, 4 }
  0x26   : > { %v383_v3 = vor.u32 %v382_v1, %v379_v0  ;;  %v446_v14 = vrot.slane %v2714_v41, 2  ;;  %v496_v16 = vrot.slane %v2714_v41, 7  ;;  %v466_v17 = vor.u32 %v462_v49, %v377_v59 }
  0x27   : > { %388 = vrot.lane.b32.xlu0 %v375_v34, %s2584_s29  ;;  %v427_v15 = vor.u32 %v426_v13, %v425_v12  ;;  %v518_v18 = vrot.slane %v377_v59, 5  ;;  %v519_v19 = vrot.slane %v2722_v45, 6  ;;  %v539_v20 = vrot.slane %v2714_v41, 4 }
  0x29   : > { %432 = vrot.lane.b32.xlu1 %v424_v37, %s2582_s27  ;;  %v520_v21 = vor.u32 %v519_v19, %v518_v18 }
  0x2b   : > { %430 = vrot.lane.b32.xlu0 %v421_v38, %s2582_s27 }
  0x2d   : > { %447 = vrot.lane.b32.xlu1 %v443_v39, %s2583_s28 }
  0x2f   : > { %451 = vrot.lane.b32.xlu0 %v445_v42, %s2583_s28 }
  0x31   : > { %477 = vrot.lane.b32.xlu1 %v464_v44, %s2585_s9 }
  0x33   : > { %2494 = vrot.lane.b32.xlu0 %v2493_v46, %s2585_s9 }
  0x35   : > { %499 = vrot.lane.b32.xlu1 %v494_v47, %s2586_s10 }
  0x37   : > { %479 = vrot.lane.b32.xlu0 %v465_v50, %s2585_s9 }
  0x39   : > { %2499 = vrot.lane.b32.xlu1 %v2498_v51, %s2585_s9 }
  0x3b   : > { %501 = vrot.lane.b32.xlu0 %v495_v52, %s2586_s10 }
  0x3d   : > { %497 = vrot.lane.b32.xlu1 %v493_v53, %s2586_s10 }
  0x3f   : > { %475 = vrot.lane.b32.xlu0 %v463_v56, %s2585_s9 }
  0x41   : > { %525 = vrot.lane.b32.xlu1 %v517_v60, %s2587_s11 }
  0x43   : > { %523 = vrot.lane.b32.xlu0 %v514_v63, %s2587_s11 }
  0x45   : > { %521 = vrot.lane.b32.xlu1 %v511_v2, %s2587_s11 }
  0x47   : > { %390 = vrot.lane.b32.xlu0 %v383_v3, %s2584_s29 }
  0x49   : > { %544 = vrot.lane.b32.xlu1 %v538_v4, %s2589_s14 }
  0x4b   : > { %542 = vrot.lane.b32.xlu0 %v2663_v11, %s2589_s14 }
  0x4d   : > { %540 = vrot.lane.b32.xlu1 %v536_v8, %s2589_s14 }
  0x4f   : > { %410 = vrot.lane.b32.xlu0 %v403_v9, %s2581_s26 }
  0x51   : > { %453 = vrot.lane.b32.xlu1 %v446_v14, %s2583_s28 }
  0x53   : > { %434 = vrot.lane.b32.xlu0 %v427_v15, %s2582_s27 }
  0x55   : > { %503 = vrot.lane.b32.xlu1 %v496_v16, %s2586_s10  ;;  %v2590_v16 = vmov 65535  }
  0x57   : > { %481 = vrot.lane.b32.xlu0 %v466_v17, %s2585_s9  ;;  %v671_v17 = vsel %vm571_vm5, 4294967295, %v2590_v16  ;;  %vm4135_vm5 = vcmask 900096   ;;  %s327_s9 = scalar_lea.vmem %s4075_s5, %s2399_s6 }
  0x59   : > { %546 = vrot.lane.b32.xlu1 %v539_v20, %s2589_s14 }
  0x5b   : > { %527 = vrot.lane.b32.xlu0 %v520_v21, %s2587_s11 }
  0x5d   : > { %640 = vperm.xlu1 %2504, %v630_v22  }
  0x5f   : > { %635 = vperm.xlu0 %2503, %v629_v23  }
  0x61   : > { %645 = vperm.xlu1 %2504, %v631_v24  }
  0x63   : > { %650 = vperm.xlu0 %2503, %v632_v25  }
  0x8b   : > { %v405_v26 = vpop.permute.xlu1 %404 }
  0x8d   : > { %v2789_v27 = vpop.permute.xlu0 %408 }
  0x8f   : > { %v407_v28 = vpop.permute.xlu1 %406 }
  0x90   : > { %v414_v45 = vsel %vm412_vm7, %v407_v28, %v2789_v27  ;;  %v413_v57 = vsel %vm412_vm7, %v405_v26, %v407_v28  ;;  %v672_v26 = vsel %vm577_vm2, %v671_v17, 0 }
  0x91   : > { %v429_v29 = vpop.permute.xlu0 %428 }
  0x93   : > { %v450_v30 = vpop.permute.xlu1 %449 }
  0x95   : > { %v387_v31 = vpop.permute.xlu0 %386 }
  0x97   : > { %v385_v32 = vpop.permute.xlu1 %384 }
  0x98   : > { %v393_v42 = vsel %vm392_vm1, %v385_v32, %v387_v31 }
  0x99   : > { %v2791_v33 = vpop.permute.xlu0 %388  ;;  %v555_v51 = vsel %vm2799_vm8, %v2656_v7, %v393_v42 }
  0x9a   : > { %v394_v37 = vsel %vm392_vm1, %v387_v31, %v2791_v33  ;;  %v561_v59 = vsel %vm558_vm13, %v555_v51, %v413_v57 }
  0x9b   : > { %v2793_v34 = vpop.permute.xlu1 %432  ;;  %v556_v40 = vsel %vm2799_vm8, %v2663_v11, %v394_v37 }
  0x9c   : > { %v565_v47 = vsel %vm558_vm13, %v556_v40, %v414_v45 }
  0x9d   : > { %v431_v35 = vpop.permute.xlu0 %430 }
  0x9e   : > { %v438_v44 = vsel %vm4078_vm4, %v431_v35, %v2793_v34  ;;  %v437_v54 = vsel %vm4078_vm4, %v429_v29, %v431_v35  ;;  %vm615_vm4 = vcmask 1043456  }
  0x9f   : > { %v448_v36 = vpop.permute.xlu1 %447  ;;  %v575_v52 = vsel %vm2808_vm11, %v565_v47, %v438_v44  ;;  %v574_v60 = vsel %vm2808_vm11, %v561_v59, %v437_v54 }
  0xa0   : > { %v456_v61 = vsel %vm4077_vm12, %v448_v36, %v450_v30 }
  0xa1   : > { %v2797_v38 = vpop.permute.xlu0 %451  ;;  %v580_v2 = vsel %vm577_vm2, %v574_v60, %v456_v61 }
  0xa2   : > { %v457_v11 = vsel %vm4077_vm12, %v450_v30, %v2797_v38  ;;  %vm548_vm12 = vcmask 736256  }
  0xa3   : > { %v478_v41 = vpop.permute.xlu1 %477  ;;  %v584_v56 = vsel %vm577_vm2, %v575_v52, %v457_v11 }
  0xa5   : > { %v2818_v46 = vpop.permute.xlu0 %2494 }
  0xa6   : > { %v2497_v48 = vunpack.i.h.bf16 %v2818_v46  ;;  %v2496_v49 = vunpack.i.l.bf16 %v2818_v46 }
  0xa7   : > { %v500_v53 = vpop.permute.xlu1 %499 }
  0xa8   : > { %v485_v55 = vsel %vm483_vm14, %v2496_v49, %v2497_v48 }
  0xa9   : > { %v2838_v58 = vpop.permute.xlu0 %479  ;;  %v594_v7 = vsel %vm2823_vm15, %v584_v56, %v485_v55 }
  0xaa   : > { %679 = vmatprep.subr.bf16.mxu0 %v594_v7  ;;  %v488_v21 = vsel %vm483_vm14, %v478_v41, %v2838_v58 }
  0xab   : > { %v2500_v62 = vpop.permute.xlu1 %2499 }
  0xac   : > { %v2501_v63 = vunpack.i.l.bf16 %v2500_v62 }
  0xad   : > { %v2846_v0 = vpop.permute.xlu0 %501 }
  0xae   : > { %v484_v1 = vsel %vm483_vm14, %v2501_v63, %v2496_v49  ;;  %v507_v15 = vsel %vm505_vm3, %v500_v53, %v2846_v0  ;;  %v2502_v49 = vunpack.i.h.bf16 %v2500_v62 }
  0xaf   : > { %v498_v3 = vpop.permute.xlu1 %497  ;;  %v593_v4 = vsel %vm2823_vm15, %v580_v2, %v484_v1  ;;  %v603_v23 = vsel %vm596_vm10, %v488_v21, %v507_v15 }
  0xb0   : > { %680 = vmatpush1.bf16.msra.mxu0 %v593_v4  ;;  %v506_v28 = vsel %vm505_vm3, %v498_v3, %v500_v53 }
  0xb1   : > { %v476_v8 = vpop.permute.xlu0 %475 }
  0xb2   : > { %v487_v22 = vsel %vm483_vm14, %v476_v8, %v478_v41 }
  0xb3   : > { %v526_v9 = vpop.permute.xlu1 %525  ;;  %v599_v31 = vsel %vm596_vm10, %v487_v22, %v506_v28 }
  0xb5   : > { %v524_v12 = vpop.permute.xlu0 %523 }
  0xb6   : > { %v531_v19 = vsel %vm529_vm6, %v524_v12, %v526_v9 }
  0xb7   : > { %v522_v13 = vpop.permute.xlu1 %521  ;;  %v613_v29 = vsel %vm2856_vm0, %v603_v23, %v531_v19 }
  0xb8   : > { %v530_v24 = vsel %vm529_vm6, %v522_v13, %v524_v12 }
  0xb9   : > { %v391_v14 = vpop.permute.xlu0 %390  ;;  %v612_v36 = vsel %vm2856_vm0, %v599_v31, %v530_v24 }
  0xba   : > { %v395_v44 = vsel %vm392_vm1, %v2791_v33, %v391_v14  ;;  %vm4136_vm1 = vcmask 891904  }
  0xbb   : > { %v545_v20 = vpop.permute.xlu1 %544  ;;  %v557_v51 = vsel %vm2799_vm8, %v2659_v10, %v395_v44  ;;  %v486_v10 = vsel %vm483_vm14, %v2497_v48, %v2502_v49 }
  0xbd   : > { %v543_v25 = vpop.permute.xlu0 %542 }
  0xbe   : > { %v550_v30 = vsel %vm548_vm12, %v543_v25, %v545_v20 }
  0xbf   : > { %v621_v32 = vsel %vm615_vm4, %v613_v29, %v550_v30  ;;  %v541_v35 = vpop.permute.xlu1 %540 }
  0xc0   : > { %v549_v37 = vsel %vm548_vm12, %v541_v35, %v543_v25  ;;  %v675_v40 = vand.u32 %v672_v26, %v621_v32 }
  0xc1   : > { %v618_v41 = vsel %vm615_vm4, %v612_v36, %v549_v37  ;;  %v411_v42 = vpop.permute.xlu0 %410 }
  0xc2   : > { %681 = vmatprep.subr.bf16.mxu0 %v675_v40  ;;  %v673_v45 = vand.u32 %v672_v26, %v618_v41  ;;  %v415_v11 = vsel %vm412_vm7, %v2789_v27, %v411_v42  ;;  %vm4137_vm7 = vcmask 220160  }
  0xc3   : > { %v454_v47 = vpop.permute.xlu1 %453  ;;  %v569_v53 = vsel %vm558_vm13, %v557_v51, %v415_v11  ;;  %vm4138_vm8 = vmmov %vm4137_vm7  ;;  %v4096_v51 = vmov 683565275  }
  0xc4   : > { %682 = vmatpush1.bf16.msra.mxu0 %v673_v45  ;;  %v458_v33 = vsel %vm4136_vm1, %v2797_v38, %v454_v47 }
  0xc5   : > { %v435_v52 = vpop.permute.xlu0 %434 }
  0xc6   : > { %v439_v54 = vsel %vm4135_vm5, %v2793_v34, %v435_v52 }
  0xc7   : > { %v576_v55 = vsel %vm2808_vm11, %v569_v53, %v439_v54  ;;  %v504_v27 = vpop.permute.xlu1 %503  ;;  %2293 = vmatmul.mubr.msk.bf16.vlgmr.msra.gmra.mrb[0].mxu0 %vm4137_vm7, %v2755_v5  ;;  %v2507_v5 = vld [vmem:[%s4072_s2 + $0x8] sm:$0xff]   ;;  %vm4139_vm11 = vmmov %vm4137_vm7  ;;  %v4094_v53 = vmov 2475754826  }
  0xc8   : > { %v588_v39 = vsel %vm577_vm2, %v576_v55, %v458_v33  ;;  %721 = vmatprep.mubr.bf16.mxu0 %v2588_v6  ;;  %v508_v46 = vsel %vm505_vm3, %v2846_v0, %v504_v27  ;;  %v4092_v33 = vmov 2131351028   ;;  %v4088_v27 = vmov 2102212464  }
  0xc9   : > { %v482_v56 = vpop.permute.xlu0 %481  ;;  %v595_v34 = vsel %vm2823_vm15, %v588_v39, %v486_v10  ;;  %v4084_v39 = vmov 920167782  }
  0xca   : > { %2364 = vmatprep.subr.bf16.mxu1 %v595_v34  ;;  %v489_v38 = vsel %vm483_vm14, %v2838_v58, %v482_v56 }
  0xcb   : > { %2365 = vmatpush3.bf16.msra.mxu1 %v595_v34  ;;  %v547_v43 = vpop.permute.xlu1 %546  ;;  %v607_v6 = vsel %vm596_vm10, %v489_v38, %v508_v46 }
  0xcc   : > { %v551_v50 = vsel %vm548_vm12, %v545_v20, %v547_v43 }
  0xcd   : > { %v528_v48 = vpop.permute.xlu0 %527 }
  0xce   : > { %v532_v57 = vsel %vm529_vm6, %v526_v9, %v528_v48 }
  0xcf   : > { %v614_v7 = vsel %vm2856_vm0, %v607_v6, %v532_v57  ;;  %2294 = vmatmul.mubr.msk.bf16.gmra.mrb[4].mxu0 %vm4138_vm8, %v2507_v5  ;;  %v4086_v57 = vmov 1326507024  }
  0xd0   : > { %v624_v58 = vsel %vm615_vm4, %v614_v7, %v551_v50 }
  0xd1   : > { %v677_v59 = vand.u32 %v672_v26, %v624_v58 }
  0xd3   : > { %2366 = vmatprep.subr.bf16.mxu1 %v677_v59 }
  0xd4   : > { %2367 = vmatpush3.bf16.msra.mxu1 %v677_v59 }
  0xd7   : > { %2369 = vmatmul.mubr.msk.bf16.vlgmr.msra.gmra.mrb[0].mxu1 %vm4139_vm11, %v2507_v5 }
  0xdc   : > { %v2917_v62 = vpop.permute.xlu1 %640 }
  0xde   : > { %v2915_v60 = vpop.permute.xlu0 %635 }
 0x19a   : > { %v713_v61 = vpop.f32.mrb[0].mxu0 }
 0x19b   : > { %v2920_v63 = vadd.f32 %v713_v61, %v2915_v60  ;;  %v715_v0 = vpop.f32.mrb[1].mxu0 }
 0x19c   : > { %v2923_v1 = vadd.f32 %v715_v0, %v2915_v60  ;;  %v717_v2 = vpop.f32.mrb[2].mxu0 }
 0x19d   : > { %4140 = vst [vmem:[#allocation2_spill] sm:$0xff] %v2920_v63  ;;  %v4083_v3 = vand.u32 2147483647, %v2920_v63  ;;  %v784_v4 = vand.u32 2139095040, %v2920_v63  ;;  %v2928_v8 = vadd.f32 %v717_v2, %v2917_v62  ;;  %v719_v9 = vpop.f32.mrb[3].mxu0 }
 0x19e   : > { %v4082_v12 = vand.u32 2147483647, %v2923_v1  ;;  %v887_v13 = vand.u32 2139095040, %v2923_v1  ;;  %v2940_v29 = vadd.f32 %v719_v9, %v2917_v62 }
 0x19f   : > { %4141 = vst [vmem:[#allocation3_spill] sm:$0xff] %v2928_v8  ;;  %v785_v14 = vshrl.u32 %v784_v4, 23  ;;  %v788_v15 = vand.u32 8388607, %v4083_v3  ;;  %v1093_v18 = vand.u32 2139095040, %v2928_v8 }
 0x1a0   : > { %v888_v16 = vshrl.u32 %v887_v13, 23  ;;  %v891_v17 = vand.u32 8388607, %v4082_v12  ;;  %v4081_v35 = vand.u32 2147483647, %v2928_v8  ;;  %v1196_v47 = vand.u32 2139095040, %v2940_v29 }
 0x1a1   : > { %v2297_v19 = vadd.s32 4294967169, %v785_v14  ;;  %v1094_v21 = vshrl.u32 %v1093_v18, 23  ;;  %v789_v23 = vor.u32 8388608, %v788_v15 }
 0x1a2   : > { %v2301_v20 = vadd.s32 4294967169, %v888_v16  ;;  %v2937_v22 = vpop.f32.mrb[4].mxu0  ;;  %v892_v25 = vor.u32 8388608, %v891_v17 }
 0x1a3   : > { %v791_v24 = vadd.s32 1, %v2297_v19  ;;  %v2309_v28 = vadd.s32 4294967169, %v1094_v21  ;;  %v2942_v30 = vpop.f32.mrb[5].mxu0  ;;  %v2949_v41 = vshll.u32 %v789_v23, 8 }
 0x1a4   : > { %v894_v26 = vadd.s32 1, %v2301_v20  ;;  %v2944_v31 = vpop.f32.mrb[6].mxu0  ;;  %v2951_v45 = vshll.u32 %v892_v25, 8 }
 0x1a5   : > { %vm792_vm0 = vcmp.gt.s32.totalorder %v791_v24, 0  ;;  %v2947_v36 = vpop.f32.mrb[7].mxu0  ;;  %v2953_v11 = vadd.s32 1, %v2309_v28 }
 0x1a6   : > { %v793_v32 = vsel %vm792_vm0, %v791_v24, 0  ;;  %vm895_vm4 = vcmp.gt.s32.totalorder %v894_v26, 0 }
 0x1a7   : > { %v794_v37 = vshrl.u32 %v793_v32, 5  ;;  %v795_v40 = vand.u32 31, %v793_v32  ;;  %v896_v42 = vsel %vm895_vm4, %v894_v26, 0  ;;  %vm1101_vm2 = vcmp.gt.s32.totalorder %v2953_v11, 0 }
 0x1a8   : > { %v898_v44 = vand.u32 31, %v896_v42  ;;  %v2961_v34 = vshrl.u32 %v896_v42, 5 }
 0x1a9   : > { %v796_v49 = vsub.s32 32, %v795_v40  ;;  %v798_v52 = vshll.u32 %v4096_v51, %v795_v40  ;;  %v801_v54 = vshll.u32 %v4094_v53, %v795_v40  ;;  %v804_v55 = vshll.u32 %v4092_v33, %v795_v40 }
 0x1aa   : > { %v807_v10 = vshll.u32 %v4088_v27, %v795_v40  ;;  %v810_v56 = vshll.u32 %v4084_v39, %v795_v40  ;;  %vm813_vm12 = vcmp.lt.s32.totalorder %v794_v37, 1  ;;  %v2967_v48 = vpop.f32.mrb[0].mxu1  ;;  %vm815_vm13 = vcmp.lt.s32.totalorder %v794_v37, 3 }
 0x1ab   : > { %v797_v38 = vshrl.u32 %v4096_v51, %v796_v49  ;;  %v799_v5 = vshrl.u32 %v4094_v53, %v796_v49  ;;  %v802_v43 = vshrl.u32 %v4092_v33, %v796_v49  ;;  %v805_v46 = vshrl.u32 %v4088_v27, %v796_v49 }
 0x1ac   : > { %v808_v6 = vshrl.u32 %v4084_v39, %v796_v49  ;;  %v811_v50 = vshrl.u32 %v4086_v57, %v796_v49  ;;  %vm816_vm14 = vcmp.lt.s32.totalorder %v794_v37, 4  ;;  %v899_v61 = vsub.s32 32, %v898_v44 }
 0x1ad   : > { %v800_v7 = vor.u32 %v799_v5, %v798_v52  ;;  %v803_v58 = vor.u32 %v802_v43, %v801_v54  ;;  %v806_v59 = vor.u32 %v805_v46, %v804_v55  ;;  %vm814_vm15 = vcmp.lt.s32.totalorder %v794_v37, 2 }
 0x1ae   : > { %v809_v0 = vor.u32 %v808_v6, %v807_v10  ;;  %v812_v2 = vor.u32 %v811_v50, %v810_v56  ;;  %v901_v4 = vshll.u32 %v4096_v51, %v898_v44  ;;  %v904_v19 = vshll.u32 %v4094_v53, %v898_v44 }
 0x1af   : > { %v817_v9 = vsel %vm813_vm12, %v797_v38, %v800_v7  ;;  %v818_v13 = vsel %vm816_vm14, %v806_v59, 2102212464  ;;  %v821_v14 = vsel %vm813_vm12, %v800_v7, %v803_v58  ;;  %v825_v15 = vsel %vm813_vm12, %v803_v58, %v806_v59 }
 0x1b0   : > { %v819_v16 = vsel %vm815_vm13, %v803_v58, %v818_v13  ;;  %v822_v17 = vsel %vm816_vm14, %v809_v0, 920167782  ;;  %v826_v18 = vsel %vm816_vm14, %v812_v2, 1326507024  ;;  %v900_v23 = vshrl.u32 %v4096_v51, %v899_v61 }
 0x1b1   : > { %v823_v20 = vsel %vm815_vm13, %v806_v59, %v822_v17  ;;  %v827_v21 = vsel %vm815_vm13, %v809_v0, %v826_v18  ;;  %v902_v24 = vshrl.u32 %v4094_v53, %v899_v61  ;;  %v820_v25 = vsel %vm814_vm15, %v817_v9, %v819_v16 }
 0x1b2   : > { %v824_v26 = vsel %vm814_vm15, %v821_v14, %v823_v20  ;;  %v828_v28 = vsel %vm814_vm15, %v825_v15, %v827_v21  ;;  %v905_v32 = vshrl.u32 %v4092_v33, %v899_v61  ;;  %v907_v10 = vshll.u32 %v4092_v33, %v898_v44 }
 0x1b3   : > { %v2987_v40 = vmul.u32.u64.low %v2949_v41, %v828_v28  ;;  %v2988_v42 = vmul.u32.u64.high %v2949_v41, %v828_v28, %v2987_v40  ;;  %v2991_v49 = vmul.u32.u64.low %v2949_v41, %v824_v26  ;;  %v2992_v52 = vmul.u32.u64.high %v2949_v41, %v824_v26, %v2991_v49 }
 0x1b4   : > { %v903_v54 = vor.u32 %v902_v24, %v901_v4  ;;  %v906_v55 = vor.u32 %v905_v32, %v904_v19  ;;  %v908_v56 = vshrl.u32 %v4088_v27, %v899_v61  ;;  %v910_v37 = vshll.u32 %v4088_v27, %v898_v44 }
 0x1b5   : > { %v911_v38 = vshrl.u32 %v4084_v39, %v899_v61  ;;  %v913_v5 = vshll.u32 %v4084_v39, %v898_v44  ;;  %v914_v43 = vshrl.u32 %v4086_v57, %v899_v61  ;;  %v836_v46 = vmul.u32 %v2949_v41, %v820_v25 }
 0x1b6   : > { %v909_v6 = vor.u32 %v908_v56, %v907_v10  ;;  %vm916_vm3 = vcmp.lt.s32.totalorder %v2961_v34, 1  ;;  %vm917_vm6 = vcmp.lt.s32.totalorder %v2961_v34, 2  ;;  %vm838_vm9 = vc.u32 %v2988_v42, %v2991_v49 }
 0x1b7   : > { %v839_v50 = vadd.s32 1, %v2992_v52  ;;  %v912_v7 = vor.u32 %v911_v38, %v910_v37  ;;  %vm918_vm10 = vcmp.lt.s32.totalorder %v2961_v34, 3  ;;  %v915_v58 = vor.u32 %v914_v43, %v913_v5 }
 0x1b8   : > { %vm919_vm5 = vcmp.lt.s32.totalorder %v2961_v34, 4  ;;  %v920_v44 = vsel %vm916_vm3, %v900_v23, %v903_v54  ;;  %v924_v59 = vsel %vm916_vm3, %v903_v54, %v906_v55  ;;  %v928_v2 = vsel %vm916_vm3, %v906_v55, %v909_v6  ;;  %v3034_v54 = vpop.f32.mrb[1].mxu1 }
 0x1b9   : > { %v840_v41 = vsel %vm838_vm9, %v839_v50, %v2992_v52  ;;  %v921_v61 = vsel %vm919_vm5, %v909_v6, 2102212464  ;;  %v925_v0 = vsel %vm919_vm5, %v912_v7, 920167782  ;;  %v929_v14 = vsel %vm919_vm5, %v915_v58, 1326507024 }
 0x1ba   : > { %v841_v4 = vadd.s32 %v840_v41, %v836_v46  ;;  %v922_v9 = vsel %vm918_vm10, %v906_v55, %v921_v61  ;;  %v926_v13 = vsel %vm918_vm10, %v909_v6, %v925_v0  ;;  %v930_v16 = vsel %vm918_vm10, %v912_v7, %v929_v14 }
 0x1bb   : > { %v927_v15 = vsel %vm917_vm6, %v924_v59, %v926_v13  ;;  %v1097_v17 = vand.u32 8388607, %v4081_v35  ;;  %v1102_v18 = vsel %vm1101_vm2, %v2953_v11, 0  ;;  %v931_v20 = vsel %vm917_vm6, %v928_v2, %v930_v16 }
 0x1bc   : > { %v842_v19 = vadd.s32 536870912, %v841_v4  ;;  %v3020_v21 = vmul.u32.u64.low %v2951_v45, %v927_v15  ;;  %v3021_v23 = vmul.u32.u64.high %v2951_v45, %v927_v15, %v3020_v21  ;;  %v923_v24 = vsel %vm917_vm6, %v920_v44, %v922_v9 }
 0x1bd   : > { %v3027_v25 = vmul.u32.u64.low %v2951_v45, %v931_v20  ;;  %v3028_v26 = vmul.u32.u64.high %v2951_v45, %v931_v20, %v3027_v25  ;;  %v1197_v28 = vshrl.u32 %v1196_v47, 23  ;;  %v1103_v32 = vshrl.u32 %v1102_v18, 5 }
 0x1be   : > { %v3032_v11 = vshrl.u32 %v842_v19, 30  ;;  %v1104_v40 = vand.u32 31, %v1102_v18  ;;  %v1098_v52 = vor.u32 8388608, %v1097_v17  ;;  %v939_v10 = vmul.u32 %v2951_v45, %v923_v24 }
 0x1bf   : > { %v942_v34 = vadd.s32 1, %v3021_v23  ;;  %vm941_vm1 = vc.u32 %v3028_v26, %v3020_v21  ;;  %v2313_v38 = vadd.s32 4294967169, %v1197_v28  ;;  %vm1122_vm7 = vcmp.lt.s32.totalorder %v1103_v32, 1 }
 0x1c0   : > { %v844_v55 = vshll.u32 %v3032_v11, 30  ;;  %v1105_v56 = vsub.s32 32, %v1104_v40  ;;  %v1107_v37 = vshll.u32 %v4096_v51, %v1104_v40  ;;  %v1110_v47 = vshll.u32 %v4094_v53, %v1104_v40 }
 0x1c1   : > { %v943_v43 = vsel %vm941_vm1, %v942_v34, %v3021_v23  ;;  %vm1125_vm8 = vcmp.lt.s32.totalorder %v1103_v32, 4  ;;  %v1113_v58 = vshll.u32 %v4092_v33, %v1104_v40  ;;  %v1116_v59 = vshll.u32 %v4088_v27, %v1104_v40 }
 0x1c2   : > { %v3043_v5 = vsub.s32 %v841_v4, %v844_v55  ;;  %v944_v46 = vadd.s32 %v943_v43, %v939_v10  ;;  %v1106_v45 = vshrl.u32 %v4096_v51, %v1105_v56  ;;  %v1108_v6 = vshrl.u32 %v4094_v53, %v1105_v56 }
 0x1c3   : > { %v1111_v50 = vshrl.u32 %v4092_v33, %v1105_v56  ;;  %v1114_v44 = vshrl.u32 %v4088_v27, %v1105_v56  ;;  %v1117_v2 = vshrl.u32 %v4084_v39, %v1105_v56  ;;  %v1119_v13 = vshll.u32 %v4084_v39, %v1104_v40 }
 0x1c4   : > { %v847_v7 = vsub.s32 0, %v3043_v5  ;;  %v945_v41 = vadd.s32 536870912, %v944_v46  ;;  %v1109_v61 = vor.u32 %v1108_v6, %v1107_v37  ;;  %v1120_v14 = vshrl.u32 %v4086_v57, %v1105_v56 }
 0x1c5   : > { %v1112_v0 = vor.u32 %v1111_v50, %v1110_v47  ;;  %v1115_v9 = vor.u32 %v1114_v44, %v1113_v58  ;;  %v1118_v16 = vor.u32 %v1117_v2, %v1116_v59  ;;  %vm1123_vm11 = vcmp.lt.s32.totalorder %v1103_v32, 2 }
 0x1c6   : > { %v2298_v4 = vmin.u32 %v847_v7, %v3043_v5  ;;  %v3057_v15 = vshrl.u32 %v945_v41, 30  ;;  %vm1124_vm0 = vcmp.lt.s32.totalorder %v1103_v32, 3  ;;  %v1121_v18 = vor.u32 %v1120_v14, %v1119_v13 }
 0x1c7   : > { %v1127_v19 = vsel %vm1125_vm8, %v1115_v9, 2102212464  ;;  %v1130_v20 = vsel %vm1122_vm7, %v1109_v61, %v1112_v0  ;;  %v1131_v24 = vsel %vm1125_vm8, %v1118_v16, 920167782  ;;  %v1134_v25 = vsel %vm1122_vm7, %v1112_v0, %v1115_v9 }
 0x1c8   : > { %v849_v17 = vclz %v2298_v4  ;;  %v947_v23 = vshll.u32 %v3057_v15, 30  ;;  %v1138_v28 = vshll.u32 %v1098_v52, 8  ;;  %v1126_v40 = vsel %vm1122_vm7, %v1106_v45, %v1109_v61  ;;  %v3087_v4 = vpop.f32.mrb[2].mxu1 }
 0x1c9   : > { %v1132_v55 = vsel %vm1124_vm0, %v1115_v9, %v1131_v24  ;;  %v1135_v10 = vsel %vm1125_vm8, %v1121_v18, 1326507024  ;;  %v1203_v34 = vadd.s32 1, %v2313_v38  ;;  %v1128_v37 = vsel %vm1124_vm0, %v1112_v0, %v1127_v19  ;;  %v3093_v19 = vpop.permute.xlu1 %645 }
 0x1ca   : > { %v3067_v56 = vsub.s32 %v944_v46, %v947_v23  ;;  %v1133_v47 = vsel %vm1123_vm11, %v1130_v20, %v1132_v55  ;;  %v1136_v43 = vsel %vm1124_vm0, %v1118_v16, %v1135_v10  ;;  %v2299_v6 = vadd.s32 4294967294, %v849_v17 }
 0x1cb   : > { %v1137_v50 = vsel %vm1123_vm11, %v1134_v25, %v1136_v43  ;;  %v3073_v7 = vmul.u32.u64.low %v1138_v28, %v1133_v47  ;;  %v3074_v52 = vmul.u32.u64.high %v1138_v28, %v1133_v47, %v3073_v7  ;;  %v1129_v38 = vsel %vm1123_vm11, %v1126_v40, %v1128_v37 }
 0x1cc   : > { %v950_v45 = vsub.s32 0, %v3067_v56  ;;  %v3078_v58 = vmul.u32.u64.low %v1138_v28, %v1137_v50  ;;  %v3079_v44 = vmul.u32.u64.high %v1138_v28, %v1137_v50, %v3078_v58  ;;  %vm1204_vm4 = vcmp.gt.s32.totalorder %v1203_v34, 0 }
 0x1cd   : > { %v1205_v59 = vsel %vm1204_vm4, %v1203_v34, 0  ;;  %vm2300_vm12 = vcmp.lt.s32.totalorder %v2299_v6, 0  ;;  %v1148_v41 = vadd.s32 1, %v3074_v52  ;;  %v1145_v61 = vmul.u32 %v1138_v28, %v1129_v38 }
 0x1ce   : > { %v2302_v46 = vmin.u32 %v950_v45, %v3067_v56  ;;  %vm1147_vm13 = vc.u32 %v3079_v44, %v3073_v7  ;;  %v1207_v0 = vand.u32 31, %v1205_v59  ;;  %v3089_v9 = vsel %vm2300_vm12, 0, %v2299_v6 }
 0x1cf   : > { %v1149_v2 = vsel %vm1147_vm13, %v1148_v41, %v3074_v52  ;;  %v4079_v17 = vand.u32 2147483647, %v2940_v29  ;;  %v857_v18 = vsub.s32 4294967266, %v3089_v9  ;;  %v1206_v47 = vshrl.u32 %v1205_v59, 5 }
 0x1d0   : > { %v952_v32 = vclz %v2302_v46  ;;  %v1150_v13 = vadd.s32 %v1149_v2, %v1145_v61  ;;  %v1208_v14 = vsub.s32 32, %v1207_v0  ;;  %v1210_v24 = vshll.u32 %v4096_v51, %v1207_v0 }
 0x1d1   : > { %v1213_v28 = vshll.u32 %v4094_v53, %v1207_v0  ;;  %v1216_v55 = vshll.u32 %v4092_v33, %v1207_v0  ;;  %v1200_v37 = vand.u32 8388607, %v4079_v17  ;;  %v3108_v43 = vadd.f32 %v2937_v22, %v3093_v19 }
 0x1d2   : > { %v1151_v16 = vadd.s32 536870912, %v1150_v13  ;;  %v2303_v20 = vadd.s32 4294967294, %v952_v32  ;;  %v1211_v25 = vshrl.u32 %v4094_v53, %v1208_v14  ;;  %v1214_v40 = vshrl.u32 %v4092_v33, %v1208_v14 }
 0x1d3   : > { %v1217_v10 = vshrl.u32 %v4088_v27, %v1208_v14  ;;  %4142 = vst [vmem:[#allocation4_spill] sm:$0xff] %v3108_v43  ;;  %v837_v6 = vadd.s32 %v2991_v49, %v2988_v42  ;;  %v1219_v50 = vshll.u32 %v4088_v27, %v1207_v0  ;;  %v1220_v52 = vshrl.u32 %v4084_v39, %v1208_v14 }
 0x1d4   : > { %v3095_v23 = vshrl.u32 %v1151_v16, 30  ;;  %v1222_v45 = vshll.u32 %v4084_v39, %v1207_v0  ;;  %v858_v58 = vadd.s32 127, %v857_v18  ;;  %vm2304_vm14 = vcmp.lt.s32.totalorder %v2303_v20, 0 }
 0x1d5   : > { %v1212_v46 = vor.u32 %v1211_v25, %v1210_v24  ;;  %v1215_v41 = vor.u32 %v1214_v40, %v1213_v28  ;;  %v1218_v59 = vor.u32 %v1217_v10, %v1216_v55  ;;  %v1221_v61 = vor.u32 %v1220_v52, %v1219_v50 }
 0x1d6   : > { %v1153_v34 = vshll.u32 %v3095_v23, 30  ;;  %v1223_v22 = vshrl.u32 %v4086_v57, %v1208_v14  ;;  %v853_v2 = vsub.s32 32, %v3089_v9  ;;  %v1201_v49 = vor.u32 8388608, %v1200_v37 }
 0x1d7   : > { %vm1225_vm15 = vcmp.lt.s32.totalorder %v1206_v47, 1  ;;  %v854_v32 = vshll.u32 %v3043_v5, %v3089_v9  ;;  %v3122_v0 = vsel %vm2304_vm14, 0, %v2303_v20  ;;  %vm1227_vm2 = vcmp.lt.s32.totalorder %v1206_v47, 3 }
 0x1d8   : > { %v3115_v38 = vsub.s32 %v1150_v13, %v1153_v34  ;;  %v1224_v16 = vor.u32 %v1223_v22, %v1222_v45  ;;  %v1209_v18 = vshrl.u32 %v4096_v51, %v1208_v14  ;;  %vm1226_vm3 = vcmp.lt.s32.totalorder %v1206_v47, 2 }
 0x1d9   : > { %vm1228_vm6 = vcmp.lt.s32.totalorder %v1206_v47, 4  ;;  %v859_v24 = vshll.u32 %v858_v58, 23  ;;  %v1233_v28 = vsel %vm1225_vm15, %v1212_v46, %v1215_v41  ;;  %v960_v55 = vsub.s32 4294967266, %v3122_v0 }
 0x1da   : > { %v1156_v42 = vsub.s32 0, %v3115_v38  ;;  %v1230_v25 = vsel %vm1228_vm6, %v1218_v59, 2102212464  ;;  %v1234_v40 = vsel %vm1228_vm6, %v1221_v61, 920167782  ;;  %v1241_v9 = vshll.u32 %v1201_v49, 8 }
 0x1db   : > { %v1235_v5 = vsel %vm1227_vm2, %v1218_v59, %v1234_v40  ;;  %v855_v20 = vshrl.u32 %v837_v6, %v853_v2  ;;  %v1237_v37 = vsel %vm1225_vm15, %v1215_v41, %v1218_v59  ;;  %v1238_v50 = vsel %vm1228_vm6, %v1224_v16, 1326507024 }
 0x1dc   : > { %v2310_v13 = vmin.u32 %v1156_v42, %v3115_v38  ;;  %v1236_v34 = vsel %vm1226_vm3, %v1233_v28, %v1235_v5  ;;  %v1229_v52 = vsel %vm1225_vm15, %v1209_v18, %v1212_v46  ;;  %v1231_v45 = vsel %vm1227_vm2, %v1215_v41, %v1230_v25 }
 0x1dd   : > { %v1239_v58 = vsel %vm1227_vm2, %v1221_v61, %v1238_v50  ;;  %v860_v22 = vor.u32 4788187, %v859_v24  ;;  %v961_v6 = vadd.s32 127, %v960_v55  ;;  %v856_v59 = vor.u32 %v855_v20, %v854_v32 }
 0x1de   : > { %v1158_v10 = vclz %v2310_v13  ;;  %v1240_v42 = vsel %vm1226_vm3, %v1237_v37, %v1239_v58  ;;  %v3135_v13 = vmul.u32.u64.low %v1241_v9, %v1236_v34  ;;  %v3136_v17 = vmul.u32.u64.high %v1241_v9, %v1236_v34, %v3135_v13 }
 0x1df   : > { %v3139_v2 = vmul.u32.u64.low %v1241_v9, %v1240_v42  ;;  %v3140_v49 = vmul.u32.u64.high %v1241_v9, %v1240_v42, %v3139_v2  ;;  %v1232_v16 = vsel %vm1226_vm3, %v1229_v52, %v1231_v45  ;;  %v1402_v46 = vand.u32 2139095040, %v3108_v43 }
 0x1e0   : > { %v2311_v14 = vadd.s32 4294967294, %v1158_v10  ;;  %v940_v41 = vadd.s32 %v3020_v21, %v3028_v26  ;;  %v861_v61 = vand.u32 2147483647, %v860_v22  ;;  %v956_v18 = vsub.s32 32, %v3122_v0  ;;  %v3154_v26 = vpop.f32.mrb[3].mxu1 }
 0x1e1   : > { %v1251_v24 = vadd.s32 1, %v3136_v17  ;;  %v1403_v25 = vshrl.u32 %v1402_v46, 23  ;;  %v962_v28 = vshll.u32 %v961_v6, 23  ;;  %v1248_v40 = vmul.u32 %v1241_v9, %v1232_v16 }
 0x1e2   : > { %vm2312_vm9 = vcmp.lt.s32.totalorder %v2311_v14, 0  ;;  %vm1250_vm10 = vc.u32 %v3140_v49, %v3135_v13  ;;  %v4080_v47 = vand.u32 2147483647, %v3108_v43  ;;  %v863_v32 = vcvt.s32.f32 %v856_v59 }
 0x1e3   : > { %v3151_v55 = vsel %vm2312_vm9, 0, %v2311_v14  ;;  %v1252_v10 = vsel %vm1250_vm10, %v1251_v24, %v3136_v17  ;;  %v2321_v21 = vadd.s32 4294967169, %v1403_v25  ;;  %v867_v5 = vsub.s32 4, %v3032_v11 }
 0x1e4   : > { %v1253_v20 = vadd.s32 %v1252_v10, %v1248_v40  ;;  %v3159_v34 = vadd.f32 %v2942_v30, %v3093_v19  ;;  %v3161_v9 = vmul.f32 %v863_v32, %v861_v61  ;;  %v958_v37 = vshrl.u32 %v940_v41, %v956_v18 }
 0x1e5   : > { %v1409_v50 = vadd.s32 1, %v2321_v21  ;;  %v3163_v52 = vor.u32 4788187, %v962_v28  ;;  %v1166_v14 = vsub.s32 4294967266, %v3151_v55  ;;  %v1406_v17 = vand.u32 8388607, %v4080_v47 }
 0x1e6   : > { %v1254_v45 = vadd.s32 536870912, %v1253_v20  ;;  %vm783_vm5 = vcmp.lt.s32.totalorder %v2920_v63, 0  ;;  %v957_v58 = vshll.u32 %v3067_v56, %v3122_v0  ;;  %v1505_v6 = vand.u32 2139095040, %v3159_v34 }
 0x1e7   : > { %vm1410_vm1 = vcmp.gt.s32.totalorder %v1409_v50, 0  ;;  %v3174_v30 = vsel %vm783_vm5, %v867_v5, %v3032_v11  ;;  %v865_v2 = vxor.u32 2147483648, %v3161_v9  ;;  %v1146_v16 = vadd.s32 %v3073_v7, %v3079_v44 }
 0x1e8   : > { %4143 = vst [vmem:[#allocation5_spill] sm:$0xff] %v3174_v30  ;;  %v3176_v22 = vshrl.u32 %v1254_v45, 30  ;;  %v1411_v42 = vsel %vm1410_vm1, %v1409_v50, 0  ;;  %v3180_v59 = vor.u32 %v958_v37, %v957_v58  ;;  %v964_v56 = vand.u32 2147483647, %v3163_v52 }
 0x1e9   : > { %v1413_v46 = vand.u32 31, %v1411_v42  ;;  %v1167_v0 = vadd.s32 127, %v1166_v14  ;;  %v1407_v11 = vor.u32 8388608, %v1406_v17  ;;  %v1506_v44 = vshrl.u32 %v1505_v6, 23 }
 0x1ea   : > { %v1256_v41 = vshll.u32 %v3176_v22, 30  ;;  %v1412_v32 = vshrl.u32 %v1411_v42, 5  ;;  %v1162_v37 = vsub.s32 32, %v3151_v55  ;;  %vm886_vm6 = vcmp.lt.s32.totalorder %v2923_v1, 0 }
 0x1eb   : > { %v1414_v61 = vsub.s32 32, %v1413_v46  ;;  %v1416_v18 = vshll.u32 %v4096_v51, %v1413_v46  ;;  %v1419_v24 = vshll.u32 %v4094_v53, %v1413_v46  ;;  %v1422_v25 = vshll.u32 %v4092_v33, %v1413_v46 }
 0x1ec   : > { %v3189_v28 = vsub.s32 %v1253_v20, %v1256_v41  ;;  %v1425_v40 = vshll.u32 %v4088_v27, %v1413_v46  ;;  %v1428_v7 = vshll.u32 %v4084_v39, %v1413_v46  ;;  %v1168_v14 = vshll.u32 %v1167_v0, 23 }
 0x1ed   : > { %v1417_v10 = vshrl.u32 %v4094_v53, %v1414_v61  ;;  %v1420_v21 = vshrl.u32 %v4092_v33, %v1414_v61  ;;  %v1423_v5 = vshrl.u32 %v4088_v27, %v1414_v61  ;;  %v1426_v52 = vshrl.u32 %v4084_v39, %v1414_v61 }
 0x1ee   : > { %v1259_v50 = vsub.s32 0, %v3189_v28  ;;  %v1429_v20 = vshrl.u32 %v4086_v57, %v1414_v61  ;;  %v1415_v6 = vshrl.u32 %v4096_v51, %v1414_v61  ;;  %vm1431_vm7 = vcmp.lt.s32.totalorder %v1412_v32, 1 }
 0x1ef   : > { %v1418_v45 = vor.u32 %v1417_v10, %v1416_v18  ;;  %v1421_v17 = vor.u32 %v1420_v21, %v1419_v24  ;;  %v1424_v58 = vor.u32 %v1423_v5, %v1422_v25  ;;  %v1427_v46 = vor.u32 %v1426_v52, %v1425_v40 }
 0x1f0   : > { %v2314_v42 = vmin.u32 %v1259_v50, %v3189_v28  ;;  %v1430_v41 = vor.u32 %v1429_v20, %v1428_v7  ;;  %vm1433_vm8 = vcmp.lt.s32.totalorder %v1412_v32, 3  ;;  %v1447_v47 = vshll.u32 %v1407_v11, 8 }
 0x1f1   : > { %v2325_v35 = vadd.s32 4294967169, %v1506_v44  ;;  %vm1432_vm11 = vcmp.lt.s32.totalorder %v1412_v32, 2  ;;  %vm1434_vm0 = vcmp.lt.s32.totalorder %v1412_v32, 4  ;;  %v1439_v3 = vsel %vm1431_vm7, %v1418_v45, %v1421_v17 }
 0x1f2   : > { %v1261_v12 = vclz %v2314_v42  ;;  %v1436_v39 = vsel %vm1434_vm0, %v1424_v58, 2102212464  ;;  %v1440_v57 = vsel %vm1434_vm0, %v1427_v46, 920167782  ;;  %v1443_v0 = vsel %vm1431_vm7, %v1421_v17, %v1424_v58 }
 0x1f3   : > { %v1444_v18 = vsel %vm1434_vm0, %v1430_v41, 1326507024  ;;  %v1435_v25 = vsel %vm1431_vm7, %v1415_v6, %v1418_v45  ;;  %v1441_v10 = vsel %vm1433_vm8, %v1424_v58, %v1440_v57  ;;  %v1437_v5 = vsel %vm1433_vm8, %v1421_v17, %v1436_v39 }
 0x1f4   : > { %v2315_v24 = vadd.s32 4294967294, %v1261_v12  ;;  %v1445_v21 = vsel %vm1433_vm8, %v1427_v46, %v1444_v18  ;;  %v1442_v61 = vsel %vm1432_vm11, %v1439_v3, %v1441_v10  ;;  %v1512_v7 = vadd.s32 1, %v2325_v35 }
 0x1f5   : > { %v1446_v40 = vsel %vm1432_vm11, %v1443_v0, %v1445_v21  ;;  %v1164_v11 = vshrl.u32 %v1146_v16, %v1162_v37  ;;  %v1169_v44 = vor.u32 4788187, %v1168_v14  ;;  %v966_v20 = vcvt.s32.f32 %v3180_v59 }
 0x1f6   : > { %v3204_v50 = vmul.u32.u64.low %v1447_v47, %v1446_v40  ;;  %v3205_v52 = vmul.u32.u64.high %v1447_v47, %v1446_v40, %v3204_v50  ;;  %v3208_v42 = vmul.u32.u64.low %v1447_v47, %v1442_v61  ;;  %v3209_v27 = vmul.u32.u64.high %v1447_v47, %v1442_v61, %v3208_v42 }
 0x1f7   : > { %vm1513_vm4 = vcmp.gt.s32.totalorder %v1512_v7, 0  ;;  %v1163_v12 = vshll.u32 %v3115_v38, %v3151_v55  ;;  %vm2316_vm12 = vcmp.lt.s32.totalorder %v2315_v24, 0  ;;  %v1438_v3 = vsel %vm1432_vm11, %v1435_v25, %v1437_v5 }
 0x1f8   : > { %v1514_v39 = vsel %vm1513_vm4, %v1512_v7, 0  ;;  %v3220_v35 = vsel %vm783_vm5, %v865_v2, %v3161_v9  ;;  %v3222_v57 = vmul.f32 %v966_v20, %v964_v56  ;;  %v1249_v59 = vadd.s32 %v3135_v13, %v3140_v49  ;;  %v3232_v2 = vpop.permute.xlu0 %650 }
 0x1f9   : > { %v1516_v16 = vand.u32 31, %v1514_v39  ;;  %v1165_v37 = vor.u32 %v1164_v11, %v1163_v12  ;;  %v1170_v14 = vand.u32 2147483647, %v1169_v44  ;;  %vm1456_vm13 = vc.u32 %v3205_v52, %v3208_v42 }
 0x1fa   : > { %v4091_v38 = vand.u32 2147483647, %v3159_v34  ;;  %v3229_v55 = vsel %vm2316_vm12, 0, %v2315_v24  ;;  %v1454_v32 = vmul.u32 %v1447_v47, %v1438_v3  ;;  %v1457_v45 = vadd.s32 1, %v3209_v27 }
 0x1fb   : > { %v1517_v9 = vsub.s32 32, %v1516_v16  ;;  %v3234_v56 = vshrl.u32 %v1514_v39, 5  ;;  %v1519_v13 = vshll.u32 %v4096_v51, %v1516_v16  ;;  %v1522_v49 = vshll.u32 %v4094_v53, %v1516_v16 }
 0x1fc   : > { %v1525_v17 = vshll.u32 %v4092_v33, %v1516_v16  ;;  %v1458_v58 = vsel %vm1456_vm13, %v1457_v45, %v3209_v27  ;;  %v4144_v47 = vmov 2102212464   ;;  %v1172_v0 = vcvt.s32.f32 %v1165_v37 }
 0x1fd   : > { %v1520_v6 = vshrl.u32 %v4094_v53, %v1517_v9  ;;  %v1523_v46 = vshrl.u32 %v4092_v33, %v1517_v9  ;;  %v1528_v41 = vshll.u32 %v4144_v47, %v1516_v16  ;;  %v1459_v18 = vadd.s32 %v1458_v58, %v1454_v32 }
 0x1fe   : > { %v1526_v24 = vshrl.u32 %v4144_v47, %v1517_v9  ;;  %v3246_v25 = vadd.f32 %v2944_v31, %v3232_v2  ;;  %v1269_v10 = vsub.s32 4294967266, %v3229_v55  ;;  %v1509_v21 = vand.u32 8388607, %v4091_v38 }
 0x1ff   : > { %v4146_v27 = vmov 920167782   ;;  %v1460_v40 = vadd.s32 536870912, %v1459_v18  ;;  %v1521_v7 = vor.u32 %v1520_v6, %v1519_v13  ;;  %v1524_v11 = vor.u32 %v1523_v46, %v1522_v49 }
 0x200   : > { %4145 = vst [vmem:[#allocation6_spill] sm:$0xff] %v3246_v25  ;;  %v1529_v5 = vshrl.u32 %v4146_v27, %v1517_v9  ;;  %v1531_v61 = vshll.u32 %v4146_v27, %v1516_v16  ;;  %v4147_v44 = vmov 1326507024   ;;  %v1173_v20 = vmul.f32 %v1172_v0, %v1170_v14 }
 0x201   : > { %v1532_v50 = vshrl.u32 %v4147_v44, %v1517_v9  ;;  %v1527_v12 = vor.u32 %v1526_v24, %v1525_v17  ;;  %vm1534_vm14 = vcmp.lt.s32.totalorder %v3234_v56, 1  ;;  %v4148_v31 = vand.u32 2147483647, %v2920_v63 }
 0x202   : > { %v1530_v3 = vor.u32 %v1529_v5, %v1528_v41  ;;  %v3261_v37 = vshrl.u32 %v1460_v40, 30  ;;  %vm1536_vm2 = vcmp.lt.s32.totalorder %v3234_v56, 3  ;;  %vm1537_vm3 = vcmp.lt.s32.totalorder %v3234_v56, 4 }
 0x203   : > { %vm3257_vm15 = vcmp.le.f32.partialorder %v4148_v31, 0.7853982  ;;  %v1533_v32 = vor.u32 %v1532_v50, %v1531_v61  ;;  %v1265_v16 = vsub.s32 32, %v3229_v55  ;;  %v1510_v14 = vor.u32 8388608, %v1509_v21 }
 0x204   : > { %v1543_v45 = vsel %vm1537_vm3, %v1530_v3, 920167782  ;;  %v1711_v13 = vand.u32 2139095040, %v3246_v25  ;;  %vm1092_vm9 = vcmp.lt.s32.totalorder %v2928_v8, 0  ;;  %v1270_v49 = vadd.s32 127, %v1269_v10 }
 0x205   : > { %v1462_v17 = vshll.u32 %v3261_v37, 30  ;;  %vm1535_vm10 = vcmp.lt.s32.totalorder %v3234_v56, 2  ;;  %v1542_v58 = vsel %vm1534_vm14, %v1521_v7, %v1524_v11  ;;  %v1518_v6 = vshrl.u32 %v4096_v51, %v1517_v9 }
 0x206   : > { %v1544_v46 = vsel %vm1536_vm2, %v1527_v12, %v1543_v45  ;;  %v1546_v41 = vsel %vm1534_vm14, %v1524_v11, %v1527_v12  ;;  %v1547_v0 = vsel %vm1537_vm3, %v1533_v32, 1326507024  ;;  %v968_v24 = vxor.u32 2147483648, %v3222_v57 }
 0x207   : > { %v1174_v10 = vxor.u32 2147483648, %v1173_v20  ;;  %v3283_v21 = vsub.s32 %v1459_v18, %v1462_v17  ;;  %v1539_v5 = vsel %vm1537_vm3, %v1527_v12, 2102212464  ;;  %v1267_v61 = vshrl.u32 %v1249_v59, %v1265_v16 }
 0x208   : > { %v1545_v9 = vsel %vm1535_vm10, %v1542_v58, %v1544_v46  ;;  %v1548_v40 = vsel %vm1536_vm2, %v1530_v3, %v1547_v0  ;;  %v1550_v50 = vshll.u32 %v1510_v14, 8  ;;  %v4151_v31 = vand.u32 2147483647, %v2923_v1 }
 0x209   : > { %v1271_v45 = vshll.u32 %v1270_v49, 23  ;;  %v1465_v18 = vsub.s32 0, %v3283_v21  ;;  %v1549_v12 = vsel %vm1535_vm10, %v1546_v41, %v1548_v40  ;;  %v1712_v59 = vshrl.u32 %v1711_v13, 23 }
 0x20a   : > { %vm3293_vm5 = vcmp.le.f32.partialorder %v4151_v31, 0.7853982  ;;  %v1538_v16 = vsel %vm1534_vm14, %v1518_v6, %v1521_v7  ;;  %v1540_v3 = vsel %vm1536_vm2, %v1524_v11, %v1539_v5  ;;  %v4154_v41 = vand.u32 2147483647, %v2928_v8 }
 0x20b   : > { %v3304_v14 = vmul.u32.u64.low %v1550_v50, %v1549_v12  ;;  %v3305_v17 = vmul.u32.u64.high %v1550_v50, %v1549_v12, %v3304_v14  ;;  %v2322_v58 = vmin.u32 %v1465_v18, %v3283_v21  ;;  %v2333_v49 = vadd.s32 4294967169, %v1712_v59 }
 0x20c   : > { %v3308_v46 = vmul.u32.u64.low %v1550_v50, %v1545_v9  ;;  %v3309_v0 = vmul.u32.u64.high %v1550_v50, %v1545_v9, %v3308_v46  ;;  %vm3317_vm1 = vcmp.le.f32.partialorder %v4154_v41, 0.7853982  ;;  %v4155_v7 = vmov 0 }
 0x20d   : > { %v4156_v7 = vsel %vm3317_vm1, 4294967295, %v4155_v7  ;;  %v1176_v11 = vsub.s32 4, %v3095_v23  ;;  %v1266_v6 = vshll.u32 %v3189_v28, %v3229_v55  ;;  %v869_v5 = vsel %vm3257_vm15, %v2920_v63, %v3220_v35 }
 0x20e   : > { %4157 = vst [vmem:[#allocation7_spill] sm:$0xff] %v4156_v7  ;;  %v1467_v9 = vclz %v2322_v58  ;;  %v1541_v40 = vsel %vm1535_vm10, %v1538_v16, %v1540_v3  ;;  %v1718_v31 = vadd.s32 1, %v2333_v49  ;;  %v969_v18 = vsel %vm886_vm6, %v968_v24, %v3222_v57 }
 0x20f   : > { %v1175_v12 = vsel %vm1092_vm9, %v1174_v10, %v1173_v20  ;;  %v1268_v59 = vor.u32 %v1267_v61, %v1266_v6  ;;  %vm1559_vm7 = vc.u32 %v3305_v17, %v3308_v46  ;;  %v1272_v28 = vor.u32 4788187, %v1271_v45 }
 0x210   : > { %v2323_v55 = vadd.s32 4294967294, %v1467_v9  ;;  %v1560_v35 = vadd.s32 1, %v3309_v0  ;;  %vm1719_vm8 = vcmp.gt.s32.totalorder %v1718_v31, 0  ;;  %2508 = vcosq.f32 %v869_v5 }
 0x211   : > { %v3341_v56 = vsel %vm1092_vm9, %v1176_v11, %v3095_v23  ;;  %v1557_v16 = vmul.u32 %v1550_v50, %v1541_v40  ;;  %v1720_v57 = vsel %vm1719_vm8, %v1718_v31, 0  ;;  %v4090_v20 = vand.u32 2147483647, %v3246_v25 }
 0x212   : > { %4158 = vst [vmem:[#allocation8_spill] sm:$0xff] %v3341_v56  ;;  %v1561_v24 = vsel %vm1559_vm7, %v1560_v35, %v3309_v0  ;;  %v1722_v10 = vand.u32 31, %v1720_v57  ;;  %v3347_v61 = vadd.f32 %v2947_v36, %v3232_v2  ;;  %2510 = vsinq.f32 %v869_v5 }
 0x213   : > { %v3352_v45 = vsel %vm3293_vm5, %v2923_v1, %v969_v18  ;;  %v3357_v23 = vsel %vm3317_vm1, %v2928_v8, %v1175_v12  ;;  %v1562_v50 = vadd.s32 %v1561_v24, %v1557_v16  ;;  %v1273_v3 = vand.u32 2147483647, %v1272_v28 }
 0x214   : > { %v1275_v14 = vcvt.s32.f32 %v1268_v59  ;;  %vm2324_vm11 = vcmp.lt.s32.totalorder %v2323_v55, 0  ;;  %v1723_v58 = vsub.s32 32, %v1722_v10  ;;  %v1725_v36 = vshll.u32 %v4096_v51, %v1722_v10 }
 0x215   : > { %v1563_v0 = vadd.s32 536870912, %v1562_v50  ;;  %v1728_v49 = vshll.u32 %v4094_v53, %v1722_v10  ;;  %v1731_v41 = vshll.u32 %v4092_v33, %v1722_v10  ;;  %v1715_v11 = vand.u32 8388607, %v4090_v20 }
 0x216   : > { %v1721_v6 = vshrl.u32 %v1720_v57, 5  ;;  %v1726_v5 = vshrl.u32 %v4094_v53, %v1723_v58  ;;  %v1814_v9 = vand.u32 2139095040, %v3347_v61  ;;  %v1729_v31 = vshrl.u32 %v4092_v33, %v1723_v58 }
 0x217   : > { %v3366_v40 = vshrl.u32 %v1563_v0, 30  ;;  %v1732_v18 = vshrl.u32 %v4144_v47, %v1723_v58  ;;  %v1734_v12 = vshll.u32 %v4144_v47, %v1722_v10  ;;  %v3371_v59 = vmul.f32 %v1275_v14, %v1273_v3 }
 0x218   : > { %v3373_v28 = vsel %vm2324_vm11, 0, %v2323_v55  ;;  %v1727_v35 = vor.u32 %v1726_v5, %v1725_v36  ;;  %v1735_v16 = vshrl.u32 %v4146_v27, %v1723_v58  ;;  %v1730_v24 = vor.u32 %v1729_v31, %v1728_v49 }
 0x219   : > { %4159 = vst [vmem:[#allocation9_spill] sm:$0xff] %v3366_v40  ;;  %v1565_v57 = vshll.u32 %v3366_v40, 30  ;;  %v1733_v13 = vor.u32 %v1732_v18, %v1731_v41  ;;  %v1737_v0 = vshll.u32 %v4146_v27, %v1722_v10  ;;  %v1716_v20 = vor.u32 8388608, %v1715_v11 }
 0x21a   : > { %v1736_v38 = vor.u32 %v1735_v16, %v1734_v12  ;;  %v1738_v33 = vshrl.u32 %v4147_v44, %v1723_v58  ;;  %v1815_v53 = vshrl.u32 %v1814_v9, 23  ;;  %v3379_v51 = vpop.eup %2508  ;;  %v4161_v55 = vmov 683565275  }
 0x21b   : > { %4160 = vst [vmem:[#allocation10_spill] sm:$0xff] %v3379_v51  ;;  %v3381_v3 = vsub.s32 %v1562_v50, %v1565_v57  ;;  %v1724_v14 = vshrl.u32 %v4161_v55, %v1723_v58  ;;  %vm1740_vm0 = vcmp.lt.s32.totalorder %v1721_v6, 1  ;;  %vm1742_vm4 = vcmp.lt.s32.totalorder %v1721_v6, 3 }
 0x21c   : > { %v1475_v36 = vsub.s32 4294967266, %v3373_v28  ;;  %v1739_v5 = vor.u32 %v1738_v33, %v1737_v0  ;;  %vm1741_vm12 = vcmp.lt.s32.totalorder %v1721_v6, 2  ;;  %vm1743_vm13 = vcmp.lt.s32.totalorder %v1721_v6, 4  ;;  %v3385_v49 = vpop.eup %2510 }
 0x21d   : > { %4162 = vst [vmem:[#allocation11_spill] sm:$0xff] %v3385_v49  ;;  %v1568_v10 = vsub.s32 0, %v3381_v3  ;;  %v1745_v41 = vsel %vm1743_vm13, %v1733_v13, 2102212464  ;;  %v1748_v11 = vsel %vm1740_vm0, %v1727_v35, %v1730_v24  ;;  %v1749_v9 = vsel %vm1743_vm13, %v1736_v38, 920167782 }
 0x21e   : > { %v1750_v50 = vsel %vm1742_vm4, %v1733_v13, %v1749_v9  ;;  %v1752_v31 = vsel %vm1740_vm0, %v1730_v24, %v1733_v13  ;;  %v1756_v58 = vshll.u32 %v1716_v20, 8  ;;  %vm1195_vm14 = vcmp.lt.s32.totalorder %v2940_v29, 0 }
 0x21f   : > { %v2326_v33 = vmin.u32 %v1568_v10, %v3381_v3  ;;  %v1744_v12 = vsel %vm1740_vm0, %v1724_v14, %v1727_v35  ;;  %v1751_v16 = vsel %vm1741_vm12, %v1748_v11, %v1750_v50  ;;  %v1753_v57 = vsel %vm1743_vm13, %v1739_v5, 1326507024 }
 0x220   : > { %v1746_v0 = vsel %vm1742_vm4, %v1730_v24, %v1745_v41  ;;  %v1754_v8 = vsel %vm1742_vm4, %v1736_v38, %v1753_v57  ;;  %v3398_v40 = vmul.u32.u64.low %v1756_v58, %v1751_v16  ;;  %v3399_v9 = vmul.u32.u64.high %v1756_v58, %v1751_v16, %v3398_v40 }
 0x221   : > { %v1476_v13 = vadd.s32 127, %v1475_v36  ;;  %v1570_v20 = vclz %v2326_v33  ;;  %v1755_v18 = vsel %vm1741_vm12, %v1752_v31, %v1754_v8  ;;  %v2337_v63 = vadd.s32 4294967169, %v1815_v53 }
 0x222   : > { %2512 = vcosq.f32 %v3352_v45  ;;  %v3407_v14 = vmul.u32.u64.low %v1756_v58, %v1755_v18  ;;  %v3408_v5 = vmul.u32.u64.high %v1756_v58, %v1755_v18, %v3407_v14  ;;  %v1747_v24 = vsel %vm1741_vm12, %v1744_v12, %v1746_v0 }
 0x223   : > { %2514 = vsinq.f32 %v3352_v45  ;;  %v2327_v38 = vadd.s32 4294967294, %v1570_v20  ;;  %v1821_v10 = vadd.s32 1, %v2337_v63  ;;  %v1277_v8 = vxor.u32 2147483648, %v3371_v59 }
 0x224   : > { %2516 = vcosq.f32 %v3357_v23  ;;  %v1766_v53 = vadd.s32 1, %v3399_v9  ;;  %v4163_v36 = vand.u32 2147483647, %v3347_v61  ;;  %v1471_v11 = vsub.s32 32, %v3373_v28 }
 0x225   : > { %v1477_v50 = vshll.u32 %v1476_v13, 23  ;;  %vm2328_vm2 = vcmp.lt.s32.totalorder %v2327_v38, 0  ;;  %vm1822_vm3 = vcmp.gt.s32.totalorder %v1821_v10, 0  ;;  %2518 = vsinq.f32 %v3357_v23 }
 0x226   : > { %v1818_v41 = vand.u32 8388607, %v4163_v36  ;;  %v1763_v45 = vmul.u32 %v1756_v58, %v1747_v24  ;;  %vm1765_vm9 = vc.u32 %v3408_v5, %v3398_v40  ;;  %v1823_v63 = vsel %vm1822_vm3, %v1821_v10, 0 }
 0x227   : > { %v1455_v6 = vadd.s32 %v3208_v42, %v3205_v52  ;;  %v3424_v18 = vsel %vm2328_vm2, 0, %v2327_v38  ;;  %v1767_v33 = vsel %vm1765_vm9, %v1766_v53, %v3399_v9  ;;  %v3430_v12 = vsel %vm1195_vm14, %v1277_v8, %v3371_v59 }
 0x228   : > { %v1768_v23 = vadd.s32 %v1767_v33, %v1763_v45  ;;  %v1825_v58 = vand.u32 31, %v1823_v63  ;;  %v3434_v16 = vadd.f32 %v2967_v48, %v3093_v19  ;;  %v3436_v0 = vor.u32 4788187, %v1477_v50 }
 0x229   : > { %v1473_v57 = vshrl.u32 %v1455_v6, %v1471_v11  ;;  %v1558_v52 = vadd.s32 %v3308_v46, %v3305_v17  ;;  %v1819_v42 = vor.u32 8388608, %v1818_v41  ;;  %v1472_v9 = vshll.u32 %v3283_v21, %v3373_v28 }
 0x22a   : > { %4164 = vst [vmem:[#allocation12_spill] sm:$0xff] %v3434_v16  ;;  %v1578_v13 = vsub.s32 4294967266, %v3424_v18  ;;  %v1769_v59 = vadd.s32 536870912, %v1768_v23  ;;  %v1826_v20 = vsub.s32 32, %v1825_v58  ;;  %v3443_v14 = vshrl.u32 %v1823_v63, 5 }
 0x22b   : > { %v1828_v38 = vshll.u32 %v4161_v55, %v1825_v58  ;;  %v4165_v48 = vmov 2475754826   ;;  %v1837_v24 = vshll.u32 %v4144_v47, %v1825_v58  ;;  %v4166_v46 = vmov 2131351028  }
 0x22c   : > { %v1831_v19 = vshll.u32 %v4165_v48, %v1825_v58  ;;  %v3448_v10 = vpop.eup %2512  ;;  %v3450_v8 = vshrl.u32 %v1769_v59, 30  ;;  %v1829_v17 = vshrl.u32 %v4165_v48, %v1826_v20  ;;  %v1832_v21 = vshrl.u32 %v4166_v46, %v1826_v20 }
 0x22d   : > { %v1834_v28 = vshll.u32 %v4166_v46, %v1825_v58  ;;  %v3455_v53 = vpop.eup %2514  ;;  %v1474_v36 = vor.u32 %v1473_v57, %v1472_v9  ;;  %v1479_v41 = vand.u32 2147483647, %v3436_v0  ;;  %v1835_v11 = vshrl.u32 %v4144_v47, %v1826_v20 }
 0x22e   : > { %v1838_v50 = vshrl.u32 %v4146_v27, %v1826_v20  ;;  %v3460_v45 = vpop.eup %2516  ;;  %v1579_v63 = vadd.s32 127, %v1578_v13  ;;  %v1771_v6 = vshll.u32 %v3450_v8, 30  ;;  %v3463_v33 = vshll.u32 %v1819_v42, 8 }
 0x22f   : > { %4167 = vst [vmem:[#allocation13_spill] sm:$0xff] %v3460_v45  ;;  %v1830_v35 = vor.u32 %v1829_v17, %v1828_v38  ;;  %v1833_v31 = vor.u32 %v1832_v21, %v1831_v19  ;;  %v1840_v57 = vshll.u32 %v4146_v27, %v1825_v58  ;;  %v3467_v9 = vpop.eup %2518  ;;  %vm1401_vm10 = vcmp.lt.s32.totalorder %v3108_v43, 0 }
 0x230   : > { %v1839_v56 = vor.u32 %v1838_v50, %v1837_v24  ;;  %4168 = vst [vmem:[#allocation14_spill] sm:$0xff] %v3467_v9  ;;  %v3470_v0 = vsub.s32 %v1768_v23, %v1771_v6  ;;  %v1836_v7 = vor.u32 %v1835_v11, %v1834_v28  ;;  %v1841_v13 = vshrl.u32 %v4147_v44, %v1826_v20 }
 0x231   : > { %vm1843_vm7 = vcmp.lt.s32.totalorder %v3443_v14, 1  ;;  %v4169_v42 = vand.u32 2147483647, %v2940_v29  ;;  %v1574_v38 = vsub.s32 32, %v3424_v18  ;;  %v1575_v58 = vshll.u32 %v3381_v3, %v3424_v18 }
 0x232   : > { %vm1845_vm11 = vcmp.lt.s32.totalorder %v3443_v14, 3  ;;  %v1608_v23 = vand.u32 2139095040, %v3434_v16  ;;  %v1774_v19 = vsub.s32 0, %v3470_v0  ;;  %v1827_v24 = vshrl.u32 %v4161_v55, %v1826_v20 }
 0x233   : > { %vm3476_vm8 = vcmp.le.f32.partialorder %v4169_v42, 0.7853982  ;;  %v1842_v17 = vor.u32 %v1841_v13, %v1840_v57  ;;  %vm1846_vm0 = vcmp.lt.s32.totalorder %v3443_v14, 4  ;;  %v4172_v21 = vand.u32 2147483647, %v3108_v43 }
 0x234   : > { %v4173_v28 = vmov 0  ;;  %v1580_v11 = vshll.u32 %v1579_v63, 23  ;;  %vm1844_vm12 = vcmp.lt.s32.totalorder %v3443_v14, 2  ;;  %v1851_v3 = vsel %vm1843_vm7, %v1830_v35, %v1833_v31 }
 0x235   : > { %vm3490_vm4 = vcmp.le.f32.partialorder %v4172_v21, 0.7853982  ;;  %v1852_v18 = vsel %vm1846_vm0, %v1839_v56, 920167782  ;;  %v2334_v50 = vmin.u32 %v1774_v19, %v3470_v0  ;;  %v1848_v6 = vsel %vm1846_vm0, %v1836_v7, 2102212464 }
 0x236   : > { %v4174_v28 = vsel %vm3490_vm4, 4294967295, %v4173_v28  ;;  %v1853_v20 = vsel %vm1845_vm11, %v1836_v7, %v1852_v18  ;;  %v1855_v57 = vsel %vm1843_vm7, %v1833_v31, %v1836_v7  ;;  %v1576_v13 = vshrl.u32 %v1558_v52, %v1574_v38 }
 0x237   : > { %4175 = vst [vmem:[#allocation15_spill] sm:$0xff] %v4174_v28  ;;  %v1854_v42 = vsel %vm1844_vm12, %v1851_v3, %v1853_v20  ;;  %v1856_v63 = vsel %vm1846_vm0, %v1842_v17, 1326507024  ;;  %v1609_v21 = vshrl.u32 %v1608_v23, 23  ;;  %v1776_v45 = vclz %v2334_v50 }
 0x238   : > { %v1847_v9 = vsel %vm1843_vm7, %v1827_v24, %v1830_v35  ;;  %v1857_v19 = vsel %vm1845_vm11, %v1839_v56, %v1856_v63  ;;  %v4176_v51 = vand.u32 2147483647, %v3434_v16  ;;  %v1849_v18 = vsel %vm1845_vm11, %v1833_v31, %v1848_v6 }
 0x239   : > { %v1858_v7 = vsel %vm1844_vm12, %v1855_v57, %v1857_v19  ;;  %v3515_v52 = vmul.u32.u64.low %v3463_v33, %v1854_v42  ;;  %v3516_v38 = vmul.u32.u64.high %v3463_v33, %v1854_v42, %v3515_v52  ;;  %v1581_v23 = vor.u32 4788187, %v1580_v11 }
 0x23a   : > { %v1612_v49 = vand.u32 8388607, %v4176_v51  ;;  %v2335_v17 = vadd.s32 4294967294, %v1776_v45  ;;  %v3520_v35 = vmul.u32.u64.low %v3463_v33, %v1858_v7  ;;  %v3521_v24 = vmul.u32.u64.high %v3463_v33, %v1858_v7, %v3520_v35 }
 0x23b   : > { %v1481_v56 = vcvt.s32.f32 %v1474_v36  ;;  %v4177_v51 = vsub.s32 4, %v3261_v37  ;;  %v2329_v3 = vadd.s32 4294967169, %v1609_v21  ;;  %v3532_v50 = vadd.f32 %v3034_v54, %v2915_v60 }
 0x23c   : > { %v3538_v45 = vsel %vm3476_vm8, %v2940_v29, %v3430_v12  ;;  %v1577_v11 = vor.u32 %v1576_v13, %v1575_v58  ;;  %vm2336_vm13 = vcmp.lt.s32.totalorder %v2335_v17, 0  ;;  %v1850_v36 = vsel %vm1844_vm12, %v1847_v9, %v1849_v18 }
 0x23d   : > { %v3528_v31 = vsel %vm1401_vm10, %v4177_v51, %v3261_v37  ;;  %v3542_v6 = vmul.f32 %v1481_v56, %v1479_v41  ;;  %v3544_v37 = vsel %vm2336_vm13, 0, %v2335_v17  ;;  %v1869_v20 = vadd.s32 1, %v3516_v38 }
 0x23e   : > { %4178 = vst [vmem:[#allocation16_spill] sm:$0xff] %v3528_v31  ;;  %v1615_v57 = vadd.s32 1, %v2329_v3  ;;  %v1582_v54 = vand.u32 2147483647, %v1581_v23  ;;  %v1784_v12 = vsub.s32 4294967266, %v3544_v37  ;;  %v1613_v42 = vor.u32 8388608, %v1612_v49 }
 0x23f   : > { %v1866_v58 = vmul.u32 %v3463_v33, %v1850_v36  ;;  %vm1868_vm2 = vc.u32 %v3521_v24, %v3515_v52  ;;  %v990_v14 = vand.u32 2139095040, %v3532_v50  ;;  %v1584_v41 = vcvt.s32.f32 %v1577_v11 }
 0x240   : > { %vm1616_vm3 = vcmp.gt.s32.totalorder %v1615_v57, 0  ;;  %v1785_v9 = vadd.s32 127, %v1784_v12  ;;  %v1870_v13 = vsel %vm1868_vm2, %v1869_v20, %v3516_v38  ;;  %2520 = vcosq.f32 %v3538_v45 }
 0x241   : > { %v1617_v63 = vsel %vm1616_vm3, %v1615_v57, 0  ;;  %v1871_v19 = vadd.s32 %v1870_v13, %v1866_v58  ;;  %v3558_v49 = vmul.f32 %v1584_v41, %v1582_v54  ;;  %v1764_v33 = vadd.s32 %v3398_v40, %v3408_v5 }
 0x242   : > { %v1619_v18 = vand.u32 31, %v1617_v63  ;;  %v3562_v7 = vshll.u32 %v1613_v42, 8  ;;  %v1780_v17 = vsub.s32 32, %v3544_v37  ;;  %v991_v56 = vshrl.u32 %v990_v14, 23 }
 0x243   : > { %v1872_v35 = vadd.s32 536870912, %v1871_v19  ;;  %v1786_v51 = vshll.u32 %v1785_v9, 23  ;;  %v1618_v3 = vshrl.u32 %v1617_v63, 5  ;;  %v1781_v63 = vshll.u32 %v3470_v0, %v3544_v37 }
 0x244   : > { %v1620_v38 = vsub.s32 32, %v1619_v18  ;;  %v1622_v11 = vshll.u32 %v4161_v55, %v1619_v18  ;;  %v1625_v36 = vshll.u32 %v4165_v48, %v1619_v18  ;;  %v1628_v5 = vshll.u32 %v4166_v46, %v1619_v18 }
 0x245   : > { %v3568_v20 = vshrl.u32 %v1872_v35, 30  ;;  %v1631_v12 = vshll.u32 %v4144_v47, %v1619_v18  ;;  %v1634_v58 = vshll.u32 %v4146_v27, %v1619_v18  ;;  %v1782_v35 = vshrl.u32 %v1764_v33, %v1780_v17 }
 0x246   : > { %v1623_v57 = vshrl.u32 %v4165_v48, %v1620_v38  ;;  %v1626_v40 = vshrl.u32 %v4166_v46, %v1620_v38  ;;  %v1629_v54 = vshrl.u32 %v4144_v47, %v1620_v38  ;;  %v1632_v42 = vshrl.u32 %v4146_v27, %v1620_v38 }
 0x247   : > { %4179 = vst [vmem:[#allocation17_spill] sm:$0xff] %v3568_v20  ;;  %v1874_v14 = vshll.u32 %v3568_v20, 30  ;;  %v1635_v13 = vshrl.u32 %v4147_v44, %v1620_v38  ;;  %vm1637_vm9 = vcmp.lt.s32.totalorder %v1618_v3, 1  ;;  %v2305_v16 = vadd.s32 4294967169, %v991_v56 }
 0x248   : > { %v1624_v41 = vor.u32 %v1623_v57, %v1622_v11  ;;  %v1627_v9 = vor.u32 %v1626_v40, %v1625_v36  ;;  %v1630_v60 = vor.u32 %v1629_v54, %v1628_v5  ;;  %v1633_v21 = vor.u32 %v1632_v42, %v1631_v12 }
 0x249   : > { %v3581_v23 = vsub.s32 %v1871_v19, %v1874_v14  ;;  %v1636_v31 = vor.u32 %v1635_v13, %v1634_v58  ;;  %v1787_v30 = vor.u32 4788187, %v1786_v51  ;;  %v1621_v18 = vshrl.u32 %v4161_v55, %v1620_v38 }
 0x24a   : > { %vm1640_vm7 = vcmp.lt.s32.totalorder %v1618_v3, 4  ;;  %v1645_v11 = vsel %vm1637_vm9, %v1624_v41, %v1627_v9  ;;  %v3585_v36 = vpop.eup %2520  ;;  %vm1639_vm11 = vcmp.lt.s32.totalorder %v1618_v3, 3  ;;  %vm1638_vm0 = vcmp.lt.s32.totalorder %v1618_v3, 2 }
 0x24b   : > { %v1877_v57 = vsub.s32 0, %v3581_v23  ;;  %v1642_v0 = vsel %vm1640_vm7, %v1630_v60, 2102212464  ;;  %v1646_v37 = vsel %vm1640_vm7, %v1633_v21, 920167782  ;;  %v1649_v19 = vsel %vm1637_vm9, %v1627_v9, %v1630_v60 }
 0x24c   : > { %v1647_v33 = vsel %vm1639_vm11, %v1630_v60, %v1646_v37  ;;  %v1650_v17 = vsel %vm1640_vm7, %v1636_v31, 1326507024  ;;  %vm4126_vm12 = vcmp.lt.s32.totalorder %v3159_v34, 0  ;;  %v1783_v56 = vor.u32 %v1782_v35, %v1781_v63 }
 0x24d   : > { %v2338_v38 = vmin.u32 %v1877_v57, %v3581_v23  ;;  %v1641_v51 = vsel %vm1637_vm9, %v1621_v18, %v1624_v41  ;;  %v1648_v40 = vsel %vm1638_vm0, %v1645_v11, %v1647_v33  ;;  %v1643_v5 = vsel %vm1639_vm11, %v1627_v9, %v1642_v0 }
 0x24e   : > { %v1651_v54 = vsel %vm1639_vm11, %v1633_v21, %v1650_v17  ;;  %v3594_v12 = vmul.u32.u64.low %v3562_v7, %v1648_v40  ;;  %v3595_v42 = vmul.u32.u64.high %v3562_v7, %v1648_v40, %v3594_v12  ;;  %v1788_v58 = vand.u32 2147483647, %v1787_v30 }
 0x24f   : > { %v1879_v14 = vclz %v2338_v38  ;;  %v1652_v31 = vsel %vm1638_vm0, %v1649_v19, %v1651_v54  ;;  %v4180_v60 = vand.u32 2147483647, %v3532_v50  ;;  %v997_v41 = vadd.s32 1, %v2305_v16 }
 0x250   : > { %v3602_v63 = vmul.u32.u64.low %v3562_v7, %v1652_v31  ;;  %v3603_v35 = vmul.u32.u64.high %v3562_v7, %v1652_v31, %v3602_v63  ;;  %v3607_v21 = vadd.f32 %v3087_v4, %v3232_v2  ;;  %2522 = vsinq.f32 %v3538_v45 }
 0x251   : > { %v994_v13 = vand.u32 8388607, %v4180_v60  ;;  %v1790_v9 = vcvt.s32.f32 %v1783_v56  ;;  %v2339_v18 = vadd.s32 4294967294, %v1879_v14  ;;  %v1644_v30 = vsel %vm1638_vm0, %v1641_v51, %v1643_v5 }
 0x252   : > { %4181 = vst [vmem:[#allocation18_spill] sm:$0xff] %v3607_v21  ;;  %v4182_v11 = vxor.u32 2147483648, %v3542_v6  ;;  %v1586_v0 = vxor.u32 2147483648, %v3558_v49  ;;  %v1663_v16 = vadd.s32 1, %v3595_v42  ;;  %vm998_vm13 = vcmp.gt.s32.totalorder %v997_v41, 0 }
 0x253   : > { %v3618_v37 = vmul.f32 %v1790_v9, %v1788_v58  ;;  %vm2340_vm2 = vcmp.lt.s32.totalorder %v2339_v18, 0  ;;  %v995_v4 = vor.u32 8388608, %v994_v13  ;;  %v999_v2 = vsel %vm998_vm13, %v997_v41, 0 }
 0x254   : > { %v1484_v57 = vsel %vm1401_vm10, %v4182_v11, %v3542_v6  ;;  %v1882_v45 = vsel %vm2340_vm2, 0, %v2339_v18  ;;  %v1660_v3 = vmul.u32 %v3562_v7, %v1644_v30  ;;  %vm1662_vm3 = vc.u32 %v3603_v35, %v3594_v12 }
 0x255   : > { %v1917_v33 = vand.u32 2139095040, %v3607_v21  ;;  %v1883_v19 = vsub.s32 32, %v1882_v45  ;;  %v1887_v6 = vsub.s32 4294967266, %v1882_v45  ;;  %v1664_v17 = vsel %vm1662_vm3, %v1663_v16, %v3595_v42 }
 0x256   : > { %v3627_v56 = vadd.f32 %v3154_v26, %v2917_v62  ;;  %v3632_v38 = vsel %vm3490_vm4, %v3108_v43, %v1484_v57  ;;  %v3637_v7 = vsel %vm4126_vm12, %v1586_v0, %v3558_v49  ;;  %v1665_v51 = vadd.s32 %v1664_v17, %v1660_v3 }
 0x257   : > { %v1001_v40 = vand.u32 31, %v999_v2  ;;  %v1867_v5 = vadd.s32 %v3515_v52, %v3521_v24  ;;  %v1888_v54 = vadd.s32 127, %v1887_v6  ;;  %v3641_v42 = vshll.u32 %v995_v4, 8 }
 0x258   : > { %v1792_v26 = vxor.u32 2147483648, %v3618_v37  ;;  %v1666_v58 = vadd.s32 536870912, %v1665_v51  ;;  %v1918_v31 = vshrl.u32 %v1917_v33, 23  ;;  %v1000_v63 = vshrl.u32 %v999_v2, 5 }
 0x259   : > { %v1002_v14 = vsub.s32 32, %v1001_v40  ;;  %v1885_v60 = vshrl.u32 %v1867_v5, %v1883_v19  ;;  %v1889_v13 = vshll.u32 %v1888_v54, 23  ;;  %v1004_v49 = vshll.u32 %v4161_v55, %v1001_v40 }
 0x25a   : > { %v3646_v41 = vshrl.u32 %v1666_v58, 30  ;;  %v1007_v52 = vshll.u32 %v4165_v48, %v1001_v40  ;;  %v3651_v18 = vpop.eup %2522  ;;  %v1010_v30 = vshll.u32 %v4166_v46, %v1001_v40  ;;  %v1013_v57 = vshll.u32 %v4144_v47, %v1001_v40 }
 0x25b   : > { %v1005_v9 = vshrl.u32 %v4165_v48, %v1002_v14  ;;  %v1008_v24 = vshrl.u32 %v4166_v46, %v1002_v14  ;;  %v1011_v11 = vshrl.u32 %v4144_v47, %v1002_v14  ;;  %v1014_v0 = vshrl.u32 %v4146_v27, %v1002_v14 }
 0x25c   : > { %4183 = vst [vmem:[#allocation19_spill] sm:$0xff] %v3646_v41  ;;  %vm1710_vm10 = vcmp.lt.s32.totalorder %v3246_v25, 0  ;;  %v1884_v16 = vshll.u32 %v3581_v23, %v1882_v45  ;;  %v1668_v4 = vshll.u32 %v3646_v41, 30  ;;  %v1890_v33 = vor.u32 4788187, %v1889_v13 }
 0x25d   : > { %v1006_v2 = vor.u32 %v1005_v9, %v1004_v49  ;;  %v1009_v3 = vor.u32 %v1008_v24, %v1007_v52  ;;  %v1012_v19 = vor.u32 %v1011_v11, %v1010_v30  ;;  %v1015_v6 = vor.u32 %v1014_v0, %v1013_v57 }
 0x25e   : > { %vm1019_vm9 = vcmp.lt.s32.totalorder %v1000_v63, 1  ;;  %v4184_v17 = vand.u32 2147483647, %v3159_v34  ;;  %v3666_v54 = vsub.s32 %v1665_v51, %v1668_v4  ;;  %v1016_v58 = vshll.u32 %v4146_v27, %v1001_v40 }
 0x25f   : > { %v1017_v23 = vshrl.u32 %v4147_v44, %v1002_v14  ;;  %vm1021_vm11 = vcmp.lt.s32.totalorder %v1000_v63, 3  ;;  %v4187_v45 = vand.u32 2147483647, %v3246_v25  ;;  %v1886_v49 = vor.u32 %v1885_v60, %v1884_v16 }
 0x260   : > { %vm3662_vm7 = vcmp.le.f32.partialorder %v4184_v17, 0.7853982  ;;  %v1003_v9 = vshrl.u32 %v4161_v55, %v1002_v14  ;;  %vm1022_vm13 = vcmp.lt.s32.totalorder %v1000_v63, 4  ;;  %v1027_v52 = vsel %vm1019_vm9, %v1006_v2, %v1009_v3 }
 0x261   : > { %vm3672_vm0 = vcmp.le.f32.partialorder %v4187_v45, 0.7853982  ;;  %v1671_v51 = vsub.s32 0, %v3666_v54  ;;  %v1018_v24 = vor.u32 %v1017_v23, %v1016_v58  ;;  %v1024_v30 = vsel %vm1022_vm13, %v1012_v19, 2102212464 }
 0x262   : > { %v1028_v40 = vsel %vm1022_vm13, %v1015_v6, 920167782  ;;  %v1891_v11 = vand.u32 2147483647, %v1890_v33  ;;  %vm1020_vm2 = vcmp.lt.s32.totalorder %v1000_v63, 2  ;;  %v1031_v0 = vsel %vm1019_vm9, %v1009_v3, %v1012_v19 }
 0x263   : > { %v1029_v57 = vsel %vm1021_vm11, %v1012_v19, %v1028_v40  ;;  %v2330_v4 = vmin.u32 %v1671_v51, %v3666_v54  ;;  %v1023_v60 = vsel %vm1019_vm9, %v1003_v9, %v1006_v2  ;;  %v1032_v16 = vsel %vm1022_vm13, %v1018_v24, 1326507024 }
 0x264   : > { %v1030_v14 = vsel %vm1020_vm2, %v1027_v52, %v1029_v57  ;;  %v1025_v17 = vsel %vm1021_vm11, %v1009_v3, %v1024_v30  ;;  %v1033_v45 = vsel %vm1021_vm11, %v1015_v6, %v1032_v16  ;;  %v1893_v33 = vcvt.s32.f32 %v1886_v49 }
 0x265   : > { %v3687_v58 = vmul.u32.u64.low %v3641_v42, %v1030_v14  ;;  %v3688_v23 = vmul.u32.u64.high %v3641_v42, %v1030_v14, %v3687_v58  ;;  %v1673_v40 = vclz %v2330_v4  ;;  %v1034_v19 = vsel %vm1020_vm2, %v1031_v0, %v1033_v45 }
 0x266   : > { %v2341_v62 = vadd.s32 4294967169, %v1918_v31  ;;  %2524 = vcosq.f32 %v3632_v38  ;;  %v1793_v2 = vsel %vm1710_vm10, %v1792_v26, %v3618_v37  ;;  %vm4125_vm3 = vcmp.lt.s32.totalorder %v3347_v61, 0 }
 0x267   : > { %v3698_v3 = vmul.u32.u64.low %v3641_v42, %v1034_v19  ;;  %v3699_v6 = vmul.u32.u64.high %v3641_v42, %v1034_v19, %v3698_v3  ;;  %v1894_v9 = vmul.f32 %v1893_v33, %v1891_v11  ;;  %v2331_v52 = vadd.s32 4294967294, %v1673_v40 }
 0x268   : > { %v1026_v49 = vsel %vm1020_vm2, %v1023_v60, %v1025_v17  ;;  %v1924_v51 = vadd.s32 1, %v2341_v62  ;;  %2526 = vsinq.f32 %v3632_v38  ;;  %v1590_v31 = vsel %vm3662_vm7, %v3159_v34, %v3637_v7 }
 0x269   : > { %v1794_v37 = vsub.s32 4, %v3450_v8  ;;  %v1045_v26 = vadd.s32 1, %v3688_v23  ;;  %v3712_v24 = vsel %vm3672_vm0, %v3246_v25, %v1793_v2  ;;  %vm2332_vm9 = vcmp.lt.s32.totalorder %v2331_v52, 0 }
 0x26a   : > { %v4190_v63 = vand.u32 2147483647, %v3607_v21  ;;  %vm1925_vm11 = vcmp.gt.s32.totalorder %v1924_v51, 0  ;;  %v3716_v38 = vsel %vm2332_vm9, 0, %v2331_v52  ;;  %v1042_v30 = vmul.u32 %v3641_v42, %v1026_v49 }
 0x26b   : > { %vm1044_vm13 = vc.u32 %v3699_v6, %v3687_v58  ;;  %v1926_v7 = vsel %vm1925_vm11, %v1924_v51, 0  ;;  %2528 = vcosq.f32 %v1590_v31  ;;  %v1895_v11 = vxor.u32 2147483648, %v1894_v9 }
 0x26c   : > { %v1921_v62 = vand.u32 8388607, %v4190_v63  ;;  %v1681_v57 = vsub.s32 4294967266, %v3716_v38  ;;  %v1046_v0 = vsel %vm1044_vm13, %v1045_v26, %v3688_v23  ;;  %2530 = vsinq.f32 %v1590_v31 }
 0x26d   : > { %v3726_v4 = vsel %vm1710_vm10, %v1794_v37, %v3450_v8  ;;  %v1047_v60 = vadd.s32 %v1046_v0, %v1042_v30  ;;  %v1928_v14 = vand.u32 31, %v1926_v7  ;;  %2532 = vcosq.f32 %v3712_v24 }
 0x26e   : > { %v1682_v42 = vadd.s32 127, %v1681_v57  ;;  %v1299_v17 = vand.u32 2139095040, %v3627_v56  ;;  %v1661_v45 = vadd.s32 %v3594_v12, %v3603_v35  ;;  %v1922_v23 = vor.u32 8388608, %v1921_v62 }
 0x26f   : > { %v1048_v33 = vadd.s32 536870912, %v1047_v60  ;;  %v1929_v40 = vsub.s32 32, %v1928_v14  ;;  %v1896_v19 = vsel %vm4125_vm3, %v1895_v11, %v1894_v9  ;;  %v1677_v8 = vsub.s32 32, %v3716_v38 }
 0x270   : > { %v1931_v2 = vshll.u32 %v4161_v55, %v1928_v14  ;;  %v1934_v3 = vshll.u32 %v4165_v48, %v1928_v14  ;;  %v3738_v52 = vpop.eup %2524  ;;  %v1683_v49 = vshll.u32 %v1682_v42, 23  ;;  %v1937_v35 = vshll.u32 %v4166_v46, %v1928_v14 }
 0x271   : > { %4191 = vst [vmem:[#allocation20_spill] sm:$0xff] %v3738_v52  ;;  %v3740_v51 = vshrl.u32 %v1048_v33, 30  ;;  %v1932_v31 = vshrl.u32 %v4165_v48, %v1929_v40  ;;  %v1935_v12 = vshrl.u32 %v4166_v46, %v1929_v40  ;;  %v1938_v37 = vshrl.u32 %v4144_v47, %v1929_v40 }
 0x272   : > { %v1940_v9 = vshll.u32 %v4144_v47, %v1928_v14  ;;  %v1941_v26 = vshrl.u32 %v4146_v27, %v1929_v40  ;;  %v3748_v63 = vpop.eup %2526  ;;  %v1927_v30 = vshrl.u32 %v1926_v7, 5  ;;  %v3751_v11 = vshll.u32 %v1922_v23, 8 }
 0x273   : > { %4192 = vst [vmem:[#allocation21_spill] sm:$0xff] %v3748_v63  ;;  %v1050_v62 = vshll.u32 %v3740_v51, 30  ;;  %v1300_v57 = vshrl.u32 %v1299_v17, 23  ;;  %v1933_v0 = vor.u32 %v1932_v31, %v1931_v2  ;;  %v1936_v42 = vor.u32 %v1935_v12, %v1934_v3 }
 0x274   : > { %v1939_v33 = vor.u32 %v1938_v37, %v1937_v35  ;;  %v1942_v16 = vor.u32 %v1941_v26, %v1940_v9  ;;  %v4193_v41 = vand.u32 2147483647, %v3347_v61  ;;  %v1943_v52 = vshll.u32 %v4146_v27, %v1928_v14 }
 0x275   : > { %v3759_v43 = vsub.s32 %v1047_v60, %v1050_v62  ;;  %v1944_v63 = vshrl.u32 %v4147_v44, %v1929_v40  ;;  %v970_v7 = vsub.s32 4, %v3057_v15  ;;  %v3764_v23 = vpop.eup %2528  ;;  %v1678_v17 = vshll.u32 %v3666_v54, %v3716_v38 }
 0x276   : > { %vm3755_vm10 = vcmp.le.f32.partialorder %v4193_v41, 0.7853982  ;;  %v1679_v2 = vshrl.u32 %v1661_v45, %v1677_v8  ;;  %v1684_v3 = vor.u32 4788187, %v1683_v49  ;;  %v1930_v41 = vshrl.u32 %v4161_v55, %v1929_v40  ;;  %v3769_v31 = vpop.eup %2530 }
 0x277   : > { %v1053_v60 = vsub.s32 0, %v3759_v43  ;;  %v1945_v12 = vor.u32 %v1944_v63, %v1943_v52  ;;  %vm1946_vm2 = vcmp.lt.s32.totalorder %v1927_v30, 1  ;;  %vm1949_vm9 = vcmp.lt.s32.totalorder %v1927_v30, 4  ;;  %v3772_v14 = vpop.eup %2532 }
 0x278   : > { %4196 = vst [vmem:[#allocation22_spill] sm:$0xff] %v3772_v14  ;;  %vm1948_vm11 = vcmp.lt.s32.totalorder %v1927_v30, 3  ;;  %v1951_v35 = vsel %vm1949_vm9, %v1939_v33, 2102212464  ;;  %v1954_v37 = vsel %vm1946_vm2, %v1933_v0, %v1936_v42  ;;  %v1955_v9 = vsel %vm1949_vm9, %v1942_v16, 920167782 }
 0x279   : > { %v2306_v54 = vmin.u32 %v1053_v60, %v3759_v43  ;;  %vm1947_vm13 = vcmp.lt.s32.totalorder %v1927_v30, 2  ;;  %v1956_v38 = vsel %vm1948_vm11, %v1939_v33, %v1955_v9  ;;  %v1958_v45 = vsel %vm1946_vm2, %v1936_v42, %v1939_v33 }
 0x27a   : > { %v1680_v40 = vor.u32 %v1679_v2, %v1678_v17  ;;  %v1957_v8 = vsel %vm1947_vm13, %v1954_v37, %v1956_v38  ;;  %v1959_v49 = vsel %vm1949_vm9, %v1945_v12, 1326507024  ;;  %v2317_v52 = vadd.s32 4294967169, %v1300_v57  ;;  %v4221_v25 = vld [vmem:[#allocation21_spill] sm:$0xff] }
 0x27b   : > { %v1055_v26 = vclz %v2306_v54  ;;  %v1950_v63 = vsel %vm1946_vm2, %v1930_v41, %v1933_v0  ;;  %v1952_v62 = vsel %vm1948_vm11, %v1936_v42, %v1951_v35  ;;  %v1960_v14 = vsel %vm1948_vm11, %v1942_v16, %v1959_v49 }
 0x27c   : > { %v1685_v28 = vand.u32 2147483647, %v1684_v3  ;;  %v1961_v21 = vsel %vm1947_vm13, %v1958_v45, %v1960_v14  ;;  %v3781_v20 = vmul.u32.u64.low %v3751_v11, %v1957_v8  ;;  %v3782_v60 = vmul.u32.u64.high %v3751_v11, %v1957_v8, %v3781_v20 }
 0x27d   : > { %v2307_v9 = vadd.s32 4294967294, %v1055_v26  ;;  %v3786_v33 = vmul.u32.u64.low %v3751_v11, %v1961_v21  ;;  %v3787_v17 = vmul.u32.u64.high %v3751_v11, %v1961_v21, %v3786_v33  ;;  %v4197_v57 = vand.u32 2147483647, %v3627_v56 }
 0x27e   : > { %v1899_v16 = vsel %vm3755_vm10, %v3347_v61, %v1896_v19  ;;  %v1687_v0 = vcvt.s32.f32 %v1680_v40  ;;  %v1953_v42 = vsel %vm1947_vm13, %v1950_v63, %v1952_v62  ;;  %v1306_v3 = vadd.s32 1, %v2317_v52 }
 0x27f   : > { %v1303_v2 = vand.u32 8388607, %v4197_v57  ;;  %v1797_v41 = vsel %vm3672_vm0, 0, %v3726_v4  ;;  %2534 = vsinq.f32 %v3712_v24  ;;  %vm2308_vm2 = vcmp.lt.s32.totalorder %v2307_v9, 0 }
 0x280   : > { %v971_v21 = vsel %vm886_vm6, %v970_v7, %v3057_v15  ;;  %v3802_v12 = vmul.f32 %v1687_v0, %v1685_v28  ;;  %v1058_v14 = vsel %vm2308_vm2, 0, %v2307_v9  ;;  %v1972_v19 = vadd.s32 1, %v3782_v60 }
 0x281   : > { %vm1307_vm9 = vcmp.gt.s32.totalorder %v1306_v3, 0  ;;  %2536 = vcosq.f32 %v1899_v16  ;;  %v1063_v30 = vsub.s32 4294967266, %v1058_v14  ;;  %v1969_v35 = vmul.u32 %v3751_v11, %v1953_v42 }
 0x282   : > { %v1304_v37 = vor.u32 8388608, %v1303_v2  ;;  %v1059_v54 = vsub.s32 32, %v1058_v14  ;;  %vm1971_vm11 = vc.u32 %v3787_v17, %v3781_v20  ;;  %v1308_v24 = vsel %vm1307_vm9, %v1306_v3, 0 }
 0x283   : > { %v973_v38 = vsel %vm3293_vm5, 0, %v971_v21  ;;  %2538 = vsinq.f32 %v1899_v16  ;;  %v1064_v15 = vadd.s32 127, %v1063_v30  ;;  %v1973_v28 = vsel %vm1971_vm11, %v1972_v19, %v3782_v60 }
 0x284   : > { %v980_v7 = vxor.u32 2147483648, %v3455_v53  ;;  %v1689_v45 = vxor.u32 2147483648, %v3802_v12  ;;  %v1043_v11 = vadd.s32 %v3687_v58, %v3699_v6  ;;  %v1974_v40 = vadd.s32 %v1973_v28, %v1969_v35 }
 0x285   : > { %v1310_v8 = vand.u32 31, %v1308_v24  ;;  %v1065_v49 = vshll.u32 %v1064_v15, 23  ;;  %v3815_v52 = vshll.u32 %v1304_v37, 8  ;;  %v3817_v26 = vand.u32 3, %v973_v38 }
 0x286   : > { %v983_v32 = vxor.u32 2147483648, %v3448_v10  ;;  %v1061_v63 = vshrl.u32 %v1043_v11, %v1059_v54  ;;  %v1975_v62 = vadd.s32 536870912, %v1974_v40  ;;  %v1279_v60 = vsub.s32 4, %v3176_v22 }
 0x287   : > { %v1311_v9 = vsub.s32 32, %v1310_v8  ;;  %v1060_v33 = vshll.u32 %v3759_v43, %v1058_v14  ;;  %v1309_v57 = vshrl.u32 %v1308_v24, 5  ;;  %v1313_v2 = vshll.u32 %v4161_v55, %v1310_v8 }
 0x288   : > { %v1316_v58 = vshll.u32 %v4165_v48, %v1310_v8  ;;  %v1066_v6 = vor.u32 4788187, %v1065_v49  ;;  %v3824_v16 = vshrl.u32 %v1975_v62, 30  ;;  %v1319_v21 = vshll.u32 %v4166_v46, %v1310_v8 }
 0x289   : > { %v1314_v0 = vshrl.u32 %v4165_v48, %v1311_v9  ;;  %v1317_v42 = vshrl.u32 %v4166_v46, %v1311_v9  ;;  %v3828_v3 = vpop.eup %2534  ;;  %v1320_v19 = vshrl.u32 %v4144_v47, %v1311_v9  ;;  %v1322_v43 = vshll.u32 %v4144_v47, %v1310_v8 }
 0x28a   : > { %v1323_v14 = vshrl.u32 %v4146_v27, %v1311_v9  ;;  %v1062_v30 = vor.u32 %v1061_v63, %v1060_v33  ;;  %v1977_v35 = vshll.u32 %v3824_v16, 30  ;;  %v1325_v15 = vshll.u32 %v4146_v27, %v1310_v8 }
 0x28b   : > { %v1315_v37 = vor.u32 %v1314_v0, %v1313_v2  ;;  %v1318_v54 = vor.u32 %v1317_v42, %v1316_v58  ;;  %v3835_v24 = vpop.eup %2536  ;;  %v1321_v48 = vor.u32 %v1320_v19, %v1319_v21  ;;  %v1326_v28 = vshrl.u32 %v4147_v44, %v1311_v9 }
 0x28c   : > { %v1324_v38 = vor.u32 %v1323_v14, %v1322_v43  ;;  %vm978_vm6 = vcmp.lt.s32.totalorder %v3817_v26, 2  ;;  %v3840_v46 = vsub.s32 %v1974_v40, %v1977_v35  ;;  %v1312_v47 = vshrl.u32 %v4161_v55, %v1311_v9 }
 0x28d   : > { %vm1328_vm5 = vcmp.lt.s32.totalorder %v1309_v57, 1  ;;  %vm979_vm13 = vcmp.eq.s32.totalorder %v3817_v26, 0  ;;  %v3844_v11 = vpop.eup %2538  ;;  %v1067_v49 = vand.u32 2147483647, %v1066_v6  ;;  %v1327_v63 = vor.u32 %v1326_v28, %v1325_v15 }
 0x28e   : > { %vm1330_vm2 = vcmp.lt.s32.totalorder %v1309_v57, 3  ;;  %vm1331_vm9 = vcmp.lt.s32.totalorder %v1309_v57, 4  ;;  %v1980_v62 = vsub.s32 0, %v3840_v46  ;;  %v1336_v44 = vsel %vm1328_vm5, %v1315_v37, %v1318_v54 }
 0x28f   : > { %v1333_v27 = vsel %vm1331_vm9, %v1321_v48, 2102212464  ;;  %v1337_v8 = vsel %vm1331_vm9, %v1324_v38, 920167782  ;;  %vm976_vm11 = vweird.f32 %v2923_v1  ;;  %v1069_v40 = vcvt.s32.f32 %v1062_v30 }
 0x290   : > { %vm1329_vm3 = vcmp.lt.s32.totalorder %v1309_v57, 2  ;;  %v1332_v55 = vsel %vm1328_vm5, %v1312_v47, %v1315_v37  ;;  %v1338_v9 = vsel %vm1330_vm2, %v1321_v48, %v1337_v8  ;;  %v2342_v33 = vmin.u32 %v1980_v62, %v3840_v46 }
 0x291   : > { %v1334_v2 = vsel %vm1330_vm2, %v1318_v54, %v1333_v27  ;;  %v1339_v58 = vsel %vm1329_vm3, %v1336_v44, %v1338_v9  ;;  %v1340_v6 = vsel %vm1328_vm5, %v1318_v54, %v1321_v48  ;;  %v1341_v0 = vsel %vm1331_vm9, %v1327_v63, 1326507024  ;;  %v4198_v63 = vld [vmem:[#allocation5_spill] sm:$0xff]  ;;  %v4200_v44 = vld [vmem:[#allocation11_spill] sm:$0xff] }
 0x292   : > { %v3855_v42 = vmul.u32.u64.low %v3815_v52, %v1339_v58  ;;  %v3856_v21 = vmul.u32.u64.high %v3815_v52, %v1339_v58, %v3855_v42  ;;  %v981_v19 = vsel %vm979_vm13, %v3448_v10, %v980_v7  ;;  %v1070_v43 = vmul.f32 %v1069_v40, %v1067_v49 }
 0x293   : > { %v1982_v14 = vclz %v2342_v33  ;;  %v1342_v30 = vsel %vm1330_vm2, %v1324_v38, %v1341_v0  ;;  %vm982_vm12 = vcmp.eq.s32.totalorder %v3817_v26, 2  ;;  %v1335_v35 = vsel %vm1329_vm3, %v1332_v55, %v1334_v2 }
 0x294   : > { %v1343_v37 = vsel %vm1329_vm3, %v1340_v6, %v1342_v30  ;;  %v984_v54 = vsel %vm982_vm12, %v983_v32, %v3455_v53  ;;  %v1280_v48 = vsel %vm1195_vm14, %v1279_v60, %v3176_v22  ;;  %vm989_vm5 = vcmp.lt.s32.totalorder %v3532_v50, 0  ;;  %v4203_v6 = vld [vmem:[#allocation8_spill] sm:$0xff] }
 0x295   : > { %v2343_v15 = vadd.s32 4294967294, %v1982_v14  ;;  %v3869_v28 = vmul.u32.u64.low %v3815_v52, %v1343_v37  ;;  %v3870_v47 = vmul.u32.u64.high %v3815_v52, %v1343_v37, %v3869_v28  ;;  %v985_v10 = vsel %vm978_vm6, %v981_v19, %v984_v54  ;;  %v4205_v37 = vld [vmem:[#allocation12_spill] sm:$0xff] }
 0x296   : > { %v1970_v7 = vadd.s32 %v3781_v20, %v3787_v17  ;;  %v1282_v53 = vsel %vm3476_vm8, 0, %v1280_v48  ;;  %vm1285_vm12 = vweird.f32 %v2940_v29  ;;  %v1289_v22 = vxor.u32 2147483648, %v3651_v18 }
 0x297   : > { %v1071_v32 = vxor.u32 2147483648, %v1070_v43  ;;  %vm2344_vm14 = vcmp.lt.s32.totalorder %v2343_v15, 0  ;;  %v1354_v60 = vadd.s32 1, %v3856_v21  ;;  %v1286_v57 = vand.u32 3, %v1282_v53 }
 0x298   : > { %v1985_v38 = vsel %vm2344_vm14, 0, %v2343_v15  ;;  %v1351_v26 = vmul.u32 %v3815_v52, %v1335_v35  ;;  %v986_v49 = vsel %vm976_vm11, nan, %v985_v10  ;;  %v1292_v20 = vxor.u32 2147483648, %v3585_v36  ;;  %v4201_v52 = vld [vmem:[#allocation10_spill] sm:$0xff] }
 0x299   : > { %v1986_v17 = vsub.s32 32, %v1985_v38  ;;  %v1990_v59 = vsub.s32 4294967266, %v1985_v38  ;;  %v4199_v62 = vsel %vm3257_vm15, 0, %v4198_v63  ;;  %v877_v8 = vxor.u32 2147483648, %v4200_v44 }
 0x29a   : > { %v874_v27 = vand.u32 3, %v4199_v62  ;;  %vm1353_vm8 = vc.u32 %v3870_v47, %v3855_v42  ;;  %vm1288_vm3 = vcmp.eq.s32.totalorder %v1286_v57, 0  ;;  %vm1291_vm6 = vcmp.eq.s32.totalorder %v1286_v57, 2 }
 0x29b   : > { %v880_v40 = vxor.u32 2147483648, %v4201_v52  ;;  %v1988_v1 = vshrl.u32 %v1970_v7, %v1986_v17  ;;  %v1991_v55 = vadd.s32 127, %v1990_v59  ;;  %v1355_v9 = vsel %vm1353_vm8, %v1354_v60, %v3856_v21  ;;  %v4206_v7 = vld [vmem:[#allocation14_spill] sm:$0xff]  ;;  %v4208_v60 = vld [vmem:[#allocation13_spill] sm:$0xff] }
 0x29c   : > { %v1290_v33 = vsel %vm1288_vm3, %v3585_v36, %v1289_v22  ;;  %v1356_v2 = vadd.s32 %v1355_v9, %v1351_v26  ;;  %vm1287_vm13 = vcmp.lt.s32.totalorder %v1286_v57, 2  ;;  %v1293_v39 = vsel %vm1291_vm6, %v1292_v20, %v3651_v18  ;;  %v4207_v22 = vld [vmem:[#allocation2_spill] sm:$0xff]  ;;  %v4210_v20 = vld [vmem:[#allocation3_spill] sm:$0xff] }
 0x29d   : > { %v4204_v0 = vsel %vm3317_vm1, 0, %v4203_v6  ;;  %v1987_v14 = vshll.u32 %v3840_v46, %v1985_v38  ;;  %v1992_v30 = vshll.u32 %v1991_v55, 23  ;;  %v1294_v35 = vsel %vm1287_vm13, %v1290_v33, %v1293_v39  ;;  %v4215_v6 = vld [vmem:[#allocation17_spill] sm:$0xff] }
 0x29e   : > { %v1183_v19 = vand.u32 3, %v4204_v0  ;;  %vm876_vm15 = vcmp.eq.s32.totalorder %v874_v27, 0  ;;  %vm1607_vm2 = vcmp.lt.s32.totalorder %v4205_v37, 0  ;;  %v1357_v54 = vadd.s32 536870912, %v1356_v2 }
 0x29f   : > { %v1295_v36 = vsel %vm1285_vm12, nan, %v1294_v35  ;;  %v878_v21 = vsel %vm876_vm15, %v4201_v52, %v877_v8  ;;  %vm879_vm9 = vcmp.eq.s32.totalorder %v874_v27, 2  ;;  %v1072_v18 = vsel %vm989_vm5, %v1071_v32, %v1070_v43  ;;  %v4209_v32 = vld [vmem:[#allocation9_spill] sm:$0xff] }
 0x2a0   : > { %v1989_v48 = vor.u32 %v1988_v1, %v1987_v14  ;;  %v2383_v15 = vpack.c.bf16 %v1295_v36, %v986_v49  ;;  %v881_v28 = vsel %vm879_vm9, %v880_v40, %v4200_v44  ;;  %v1993_v46 = vor.u32 4788187, %v1992_v30 }
 0x2a1   : > { %v3909_v10 = vshrl.u32 %v1357_v54, 30  ;;  %vm875_vm1 = vcmp.lt.s32.totalorder %v874_v27, 2  ;;  %v1186_v53 = vxor.u32 2147483648, %v4206_v7  ;;  %vm873_vm11 = vweird.f32 %v4207_v22  ;;  %v4217_v54 = vld [vmem:[#allocation18_spill] sm:$0xff] }
 0x2a2   : > { %2384 = vmatprep.subr.bf16.mxu1 %v2383_v15  ;;  %v882_v29 = vsel %vm875_vm1, %v878_v21, %v881_v28  ;;  %vm1185_vm12 = vcmp.eq.s32.totalorder %v1183_v19, 0  ;;  %v1189_v57 = vxor.u32 2147483648, %v4208_v60  ;;  %vm1188_vm14 = vcmp.eq.s32.totalorder %v1183_v19, 2 }
 0x2a3   : > { %v1359_v38 = vshll.u32 %v3909_v10, 30  ;;  %v1187_v43 = vsel %vm1185_vm12, %v4208_v60, %v1186_v53  ;;  %v1588_v26 = vsub.s32 4, %v4209_v32  ;;  %v1996_v49 = vcvt.s32.f32 %v1989_v48 }
 0x2a4   : > { %vm1182_vm8 = vweird.f32 %v4210_v20  ;;  %vm1184_vm3 = vcmp.lt.s32.totalorder %v1183_v19, 2  ;;  %v1190_v17 = vsel %vm1188_vm14, %v1189_v57, %v4206_v7  ;;  %v1994_v59 = vand.u32 2147483647, %v1993_v46  ;;  %v4219_v7 = vld [vmem:[#allocation16_spill] sm:$0xff] }
 0x2a5   : > { %v3919_v63 = vsub.s32 %v1356_v2, %v1359_v38  ;;  %v1191_v62 = vsel %vm1184_vm3, %v1187_v43, %v1190_v17  ;;  %vm4211_vm6 = vcmp.lt.s32.totalorder %v3159_v34, 0  ;;  %v883_v44 = vsel %vm873_vm11, nan, %v882_v29  ;;  %v4225_v43 = vld [vmem:[#allocation20_spill] sm:$0xff] }
 0x2a6   : > { %v1589_v27 = vsel %vm4211_vm6, %v1588_v26, %v4209_v32  ;;  %v1192_v8 = vsel %vm1182_vm8, nan, %v1191_v62  ;;  %v1598_v40 = vxor.u32 2147483648, %v3769_v31  ;;  %v1601_v33 = vxor.u32 2147483648, %v3764_v23 }
 0x2a7   : > { %v1591_v52 = vsel %vm3662_vm7, 0, %v1589_v27  ;;  %v1362_v1 = vsub.s32 0, %v3919_v63  ;;  %v2385_v55 = vpack.c.bf16 %v1192_v8, %v883_v44  ;;  %v3936_v2 = vsel %vm1607_vm2, %v1689_v45, %v3802_v12 }
 0x2a8   : > { %v1595_v9 = vand.u32 3, %v1591_v52  ;;  %v4212_v39 = vand.u32 2147483647, %v3532_v50  ;;  %v1073_v58 = vsub.s32 4, %v3740_v51  ;;  %v1897_v0 = vsub.s32 4, %v4215_v6 }
 0x2a9   : > { %v1997_v14 = vmul.f32 %v1996_v49, %v1994_v59  ;;  %v2318_v30 = vmin.u32 %v1362_v1, %v3919_v63  ;;  %2386 = vmatpush1.bf16.msra.mxu1 %v2385_v55  ;;  %v1352_v12 = vadd.s32 %v3855_v42, %v3870_v47  ;;  %vm4216_vm9 = vcmp.lt.s32.totalorder %v3347_v61, 0 }
 0x2aa   : > { %vm3940_vm13 = vcmp.le.f32.partialorder %v4212_v39, 0.7853982  ;;  %vm1597_vm7 = vcmp.eq.s32.totalorder %v1595_v9, 0  ;;  %vm1600_vm15 = vcmp.eq.s32.totalorder %v1595_v9, 2  ;;  %v1898_v35 = vsel %vm4216_vm9, %v1897_v0, %v4215_v6 }
 0x2ab   : > { %v1075_v19 = vsel %vm3940_vm13, %v3532_v50, %v1072_v18  ;;  %v1599_v45 = vsel %vm1597_vm7, %v3764_v23, %v1598_v40  ;;  %vm1916_vm1 = vcmp.lt.s32.totalorder %v4217_v54, 0  ;;  %v1364_v36 = vclz %v2318_v30  ;;  %v4230_v30 = vld [vmem:[#allocation4_spill] sm:$0xff] }
 0x2ac   : > { %v1602_v21 = vsel %vm1600_vm15, %v1601_v33, %v3769_v31  ;;  %v1900_v18 = vsel %vm3755_vm10, 0, %v1898_v35  ;;  %v1907_v48 = vxor.u32 2147483648, %v3844_v11  ;;  %vm1594_vm11 = vweird.f32 %v3159_v34 }
 0x2ad   : > { %vm1596_vm12 = vcmp.lt.s32.totalorder %v1595_v9, 2  ;;  %v1904_v42 = vand.u32 3, %v1900_v18  ;;  %v1910_v23 = vxor.u32 2147483648, %v3835_v24  ;;  %v1998_v47 = vxor.u32 2147483648, %v1997_v14 }
 0x2ae   : > { %v2319_v15 = vadd.s32 4294967294, %v1364_v36  ;;  %v1603_v28 = vsel %vm1596_vm12, %v1599_v45, %v1602_v21  ;;  %v4220_v53 = vsel %vm3490_vm4, 0, %v4219_v7  ;;  %v1495_v31 = vxor.u32 2147483648, %v4221_v25 }
 0x2af   : > { %v1492_v22 = vand.u32 3, %v4220_v53  ;;  %vm1905_vm14 = vcmp.lt.s32.totalorder %v1904_v42, 2  ;;  %vm1906_vm8 = vcmp.eq.s32.totalorder %v1904_v42, 0  ;;  %vm1909_vm3 = vcmp.eq.s32.totalorder %v1904_v42, 2 }
 0x2b0   : > { %v4222_v29 = vand.u32 2147483647, %v4217_v54  ;;  %vm2320_vm6 = vcmp.lt.s32.totalorder %v2319_v15, 0  ;;  %v1908_v57 = vsel %vm1906_vm8, %v3835_v24, %v1907_v48  ;;  %v1911_v38 = vsel %vm1909_vm3, %v1910_v23, %v3844_v11 }
 0x2b1   : > { %v1498_v32 = vxor.u32 2147483648, %v4225_v43  ;;  %v1367_v26 = vsel %vm2320_vm6, 0, %v2319_v15  ;;  %v1604_v49 = vsel %vm1594_vm11, nan, %v1603_v28  ;;  %vm1903_vm4 = vweird.f32 %v3347_v61  ;;  %v4232_v15 = vld [vmem:[#allocation19_spill] sm:$0xff] }
 0x2b2   : > { %vm3970_vm10 = vcmp.le.f32.partialorder %v4222_v29, 0.7853982  ;;  %v1912_v20 = vsel %vm1905_vm14, %v1908_v57, %v1911_v38  ;;  %v4226_v17 = vand.u32 2147483647, %v4205_v37  ;;  %v1368_v62 = vsub.s32 32, %v1367_v26 }
 0x2b3   : > { %v1372_v27 = vsub.s32 4294967266, %v1367_v26  ;;  %v1913_v24 = vsel %vm1903_vm4, nan, %v1912_v20  ;;  %vm1494_vm15 = vcmp.eq.s32.totalorder %v1492_v22, 0  ;;  %v1369_v11 = vshll.u32 %v3919_v63, %v1367_v26  ;;  %v4229_v63 = vld [vmem:[#allocation22_spill] sm:$0xff] }
 0x2b4   : > { %vm3982_vm7 = vcmp.le.f32.partialorder %v4226_v17, 0.7853982  ;;  %v2387_v44 = vpack.c.bf16 %v1913_v24, %v1604_v49  ;;  %v1496_v8 = vsel %vm1494_vm15, %v4225_v43, %v1495_v31  ;;  %vm1497_vm9 = vcmp.eq.s32.totalorder %v1492_v22, 2 }
 0x2b5   : > { %v1370_v34 = vshrl.u32 %v1352_v12, %v1368_v62  ;;  %v1373_v52 = vadd.s32 127, %v1372_v27  ;;  %v1499_v61 = vsel %vm1497_vm9, %v1498_v32, %v4221_v25  ;;  %v1801_v40 = vand.u32 3, %v1797_v41  ;;  %v4231_v12 = vld [vmem:[#allocation6_spill] sm:$0xff] }
 0x2b6   : > { %v1999_v1 = vsel %vm1916_vm1, %v1998_v47, %v1997_v14  ;;  %2388 = vmatprep.subr.bf16.mxu1 %v2387_v44  ;;  %v1804_v55 = vxor.u32 2147483648, %v3828_v3  ;;  %v1807_v9 = vxor.u32 2147483648, %v4229_v63  ;;  %vm1493_vm11 = vcmp.lt.s32.totalorder %v1492_v22, 2 }
 0x2b7   : > { %v1371_v33 = vor.u32 %v1370_v34, %v1369_v11  ;;  %v1374_v39 = vshll.u32 %v1373_v52, 23  ;;  %vm1803_vm12 = vcmp.eq.s32.totalorder %v1801_v40, 0  ;;  %v2597_v6 = vmov 0.0|0.0  }
 0x2b8   : > { %2391 = vmatprep.subr.bf16.mxu0 %v2597_v6  ;;  %2540 = vcosq.f32 %v1075_v19  ;;  %v1500_v13 = vsel %vm1493_vm11, %v1496_v8, %v1499_v61  ;;  %v1805_v4 = vsel %vm1803_vm12, %v4229_v63, %v1804_v55  ;;  %vm1806_vm0 = vcmp.eq.s32.totalorder %v1801_v40, 2 }
 0x2b9   : > { %2542 = vsinq.f32 %v1075_v19  ;;  %v1375_v41 = vor.u32 4788187, %v1374_v39  ;;  %vm1802_vm14 = vcmp.lt.s32.totalorder %v1801_v40, 2  ;;  %v1808_v0 = vsel %vm1806_vm0, %v1807_v9, %v3828_v3 }
 0x2ba   : > { %v2002_v14 = vsel %vm3970_vm10, %v4217_v54, %v1999_v1  ;;  %vm1491_vm8 = vweird.f32 %v4230_v30  ;;  %vm1800_vm3 = vweird.f32 %v4231_v12  ;;  %v1809_v45 = vsel %vm1802_vm14, %v1805_v4, %v1808_v0 }
 0x2bb   : > { %v1376_v35 = vand.u32 2147483647, %v1375_v41  ;;  %v1378_v36 = vcvt.s32.f32 %v1371_v33  ;;  %v1501_v21 = vsel %vm1491_vm8, nan, %v1500_v13  ;;  %v1810_v18 = vsel %vm1800_vm3, nan, %v1809_v45 }
 0x2bc   : > { %v1693_v19 = vsel %vm3982_vm7, %v4205_v37, %v3936_v2  ;;  %v2389_v48 = vpack.c.bf16 %v1810_v18, %v1501_v21  ;;  %2544 = vcosq.f32 %v2002_v14  ;;  %v1074_v42 = vsel %vm989_vm5, %v1073_v58, %v3740_v51  ;;  %v4027_v51 = vld [vmem:[%s4074_s4] sm:$0xff] }
 0x2bd   : > { %v1379_v3 = vmul.f32 %v1378_v36, %v1376_v35  ;;  %2546 = vsinq.f32 %v2002_v14  ;;  %v2000_v47 = vsub.s32 4, %v3824_v16  ;;  %vm1298_vm6 = vcmp.lt.s32.totalorder %v3627_v56, 0 }
 0x2be   : > { %2390 = vmatpush1.bf16.msra.mxu1 %v2389_v48  ;;  %2548 = vcosq.f32 %v1693_v19  ;;  %v1382_v2 = vsub.s32 4, %v3909_v10  ;;  %v1691_v28 = vsub.s32 4, %v4232_v15  ;;  %v4233_v46 = vand.u32 2147483647, %v3627_v56 }
 0x2bf   : > { %v1380_v23 = vxor.u32 2147483648, %v1379_v3  ;;  %2550 = vsinq.f32 %v1693_v19  ;;  %v1076_v22 = vsel %vm3940_vm13, 0, %v1074_v42  ;;  %vm2018_vm5 = vcmask 261120  }
 0x2c0   : > { %vm4020_vm4 = vcmp.le.f32.partialorder %v4233_v46, 0.7853982  ;;  %v2598_v29 = vmov 0.0   ;;  %v2001_v57 = vsel %vm1916_vm1, %v2000_v47, %v3824_v16  ;;  %v1383_v38 = vsel %vm1298_vm6, %v1382_v2, %v3909_v10 }
 0x2c1   : > { %v1381_v53 = vsel %vm1298_vm6, %v1380_v23, %v1379_v3  ;;  %2086 = vmatprep.mubr.f32.mxu1 %v2598_v29  ;;  %v1080_v5 = vand.u32 3, %v1076_v22  ;;  %v1692_v43 = vsel %vm1607_vm2, %v1691_v28, %v4232_v15  ;;  %vm2599_vm13 = vmmov 0  }
 0x2c2   : > { %v2541_v58 = vpop.eup %2540  ;;  %v1384_v25 = vsel %vm4020_vm4, %v3627_v56, %v1381_v53  ;;  %2345 = vmatmul.mubr.msk.f32.vlgmr.msra.gmra.mrb[4].mxu1 %vm2018_vm5, %v4027_v51  ;;  %2380 = vmatprep.mubr.msk.f32.mxu0 %vm2599_vm13, %v2598_v29  ;;  %v2003_v20 = vsel %vm3970_vm10, 0, %v2001_v57  ;;  %v1385_v16 = vsel %vm4020_vm4, 0, %v1383_v38  ;;  %v1694_v62 = vsel %vm3982_vm7, 0, %v1692_v43 }
 0x2c3   : > { %v2543_v31 = vpop.eup %2542  ;;  %2552 = vcosq.f32 %v1384_v25  ;;  %v1086_v26 = vxor.u32 2147483648, %v2541_v58  ;;  %vm1082_vm1 = vcmp.eq.s32.totalorder %v1080_v5, 0  ;;  %vm1085_vm15 = vcmp.eq.s32.totalorder %v1080_v5, 2 }
 0x2c4   : > { %2554 = vsinq.f32 %v1384_v25  ;;  %v1083_v32 = vxor.u32 2147483648, %v2543_v31  ;;  %v1389_v44 = vand.u32 3, %v1385_v16  ;;  %v2007_v8 = vand.u32 3, %v2003_v20 }
 0x2c5   : > { %v1087_v11 = vsel %vm1085_vm15, %v1086_v26, %v2543_v31  ;;  %vm1081_vm2 = vcmp.lt.s32.totalorder %v1080_v5, 2  ;;  %v1698_v60 = vand.u32 3, %v1694_v62  ;;  %vm1079_vm3 = vweird.f32 %v3532_v50 }
 0x2c6   : > { %v2545_v49 = vpop.eup %2544  ;;  %v1084_v24 = vsel %vm1082_vm1, %v2541_v58, %v1083_v32  ;;  %vm1390_vm10 = vcmp.lt.s32.totalorder %v1389_v44, 2  ;;  %vm2009_vm9 = vcmp.eq.s32.totalorder %v2007_v8, 0  ;;  %vm2012_vm7 = vcmp.eq.s32.totalorder %v2007_v8, 2 }
 0x2c7   : > { %v2547_v10 = vpop.eup %2546  ;;  %v2013_v52 = vxor.u32 2147483648, %v2545_v49  ;;  %v1088_v40 = vsel %vm1081_vm2, %v1084_v24, %v1087_v11  ;;  %vm1394_vm11 = vcmp.eq.s32.totalorder %v1389_v44, 2  ;;  %vm1391_vm12 = vcmp.eq.s32.totalorder %v1389_v44, 0 }
 0x2c8   : > { %v2549_v17 = vpop.eup %2548  ;;  %v2010_v34 = vxor.u32 2147483648, %v2547_v10  ;;  %vm1700_vm0 = vcmp.eq.s32.totalorder %v1698_v60, 0  ;;  %vm1703_vm14 = vcmp.eq.s32.totalorder %v1698_v60, 2  ;;  %vm2008_vm8 = vcmp.lt.s32.totalorder %v2007_v8, 2 }
 0x2c9   : > { %v2551_v27 = vpop.eup %2550  ;;  %v1704_v55 = vxor.u32 2147483648, %v2549_v17  ;;  %v2014_v39 = vsel %vm2012_vm7, %v2013_v52, %v2547_v10  ;;  %vm1388_vm6 = vweird.f32 %v3627_v56  ;;  %v1089_v12 = vsel %vm1079_vm3, nan, %v1088_v40 }
 0x2ca   : > { %v1701_v1 = vxor.u32 2147483648, %v2551_v27  ;;  %v2011_v33 = vsel %vm2009_vm9, %v2545_v49, %v2010_v34  ;;  %vm1699_vm4 = vcmp.lt.s32.totalorder %v1698_v60, 2  ;;  %vm2006_vm13 = vweird.f32 %v4217_v54 }
 0x2cb   : > { %v1705_v0 = vsel %vm1703_vm14, %v1704_v55, %v2551_v27  ;;  %v2015_v30 = vsel %vm2008_vm8, %v2011_v33, %v2014_v39  ;;  %vm1697_vm1 = vweird.f32 %v4205_v37 }
 0x2cc   : > { %v1702_v41 = vsel %vm1700_vm0, %v2549_v17, %v1701_v1  ;;  %v2016_v21 = vsel %vm2006_vm13, nan, %v2015_v30 }
 0x2cd   : > { %v2553_v61 = vpop.eup %2552  ;;  %v1706_v36 = vsel %vm1699_vm4, %v1702_v41, %v1705_v0 }
 0x2ce   : > { %v2555_v63 = vpop.eup %2554  ;;  %v1395_v9 = vxor.u32 2147483648, %v2553_v61  ;;  %v1707_v50 = vsel %vm1697_vm1, nan, %v1706_v36 }
 0x2cf   : > { %v1392_v59 = vxor.u32 2147483648, %v2555_v63  ;;  %v2395_v18 = vpack.c.bf16 %v2016_v21, %v1707_v50 }
 0x2d0   : > { %v1396_v13 = vsel %vm1394_vm11, %v1395_v9, %v2555_v63 }
 0x2d1   : > { %v1393_v4 = vsel %vm1391_vm12, %v2553_v61, %v1392_v59 }
 0x2d2   : > { %v1397_v14 = vsel %vm1390_vm10, %v1393_v4, %v1396_v13 }
 0x2d3   : > { %v1398_v45 = vsel %vm1388_vm6, nan, %v1397_v14 }
 0x2d4   : > { %v2392_v35 = vpack.c.bf16 %v1398_v45, %v1089_v12 }
 0x2d6   : > { %2393 = vmatpush3.bf16.msra.mxu0 %v2392_v35 }
 0x2d7   : > { %2394 = vmatprep.subr.bf16.mxu0 %v2597_v6 }
 0x2da   : > { %2396 = vmatpush3.bf16.msra.mxu0 %v2395_v18 }
 0x2dd   : > { %2381 = vmatmul.mubr.msk.f32.vlgmr.msra.gmra.mrb[8].mxu0 %vm2018_vm5, %v4027_v51 }
 0x395   : > { %v2088_v56 = vpop.f32.mrb[4].mxu1 }
 0x396   : > { %v2090_v19 = vpop.f32.mrb[5].mxu1 }
 0x397   : > { %v2353_v54 = vpack.c.bf16 %v2090_v19, %v2088_v56 }
 0x399   : > { %2176 = vst [vmem:[%s327_s9] sm:$0xff] %v2353_v54 }
 0x3b0   : > { %v2159_v48 = vpop.f32.mrb[8].mxu0 }
 0x3b1   : > { %v2354_v3 = vpack.c.bf16 %v2159_v48, %v2159_v48  ;;  %v2382_v37 = vpop.f32.mrb[9].mxu0 }
 0x3b3   : > { %2177 = vst [vmem:[%s327_s9 + $0x8] sm:$0xf] %v2354_v3 }
 0x3b4 PF: > { %s15_s20 = sadd.s32 1, %s2578_s20   ;;  %s4236_s18 = smov %s2574_s19 }
 0x3b5   : > { %p12_p5 = scmp.ge.s32.totalorder %s15_s20, 4   ;;  %s4237_s19 = smov %s4239_s21 }
 0x3b7   :  { %14 = sbr.rel (!%p12_p5) target bundleno = 2 (0x2), region = 73 }

// kernel: _lambda_.3
= control target key start
LH: loop header
LB: loop body
LE: loop exit
PB: predicated region body
PF: predicated region fallthrough
CT: control target
= control target key end

     0   :  { %s2569_s18 = smov 0   ;;  %s2571_s19 = smov 0   ;;  %s3907_s0 = inlined_call_operand.vmem [shape: bf16[16,1,522], index: 0, kind: input, shape index: {}, may-alias: {0,1}]   ;;  %s3908_s1 = inlined_call_operand.vmem [shape: bf16[16,1,522], index: 1, kind: input, shape index: {}, may-alias: {0,1}]   ;;  %s3909_s2 = inlined_call_operand.vmem [shape: bf16[32,9], index: 2, kind: input, shape index: {}]   ;;  %s3910_s3 = inlined_call_operand.vmem [shape: f32[32,1], index: 3, kind: input, shape index: {}]   ;;  %s3911_s4 = inlined_call_operand.vmem [shape: f32[8,32], index: 4, kind: input, shape index: {}]   ;;  %s3912_s5 = inlined_call_operand.vmem [shape: f32[16,8,384], index: 5, kind: output, shape index: {}]  }
   0x1   :  { %s2573_s20 = smov 0  }
   0x2 LB: > { %s27_s21 = sadd.s32 1, %s2513_s19  ;;  %p2219_p0 = scmp.ge.s32.totalorder %s2517_s20, 1  ;;  %s2517_s20 = sphi %s2573_s20, %s15_s20   ;;  %s2513_s19 = sphi %s2571_s19, %s4064_s19   ;;  %s2509_s18 = sphi %s2569_s18, %s4063_s18  }
   0x3   : > { %p29_p1 = scmp.ge.s32.totalorder %s27_s21, 16  ;;  %p237_p2 = scmp.lt.s32.totalorder %s2517_s20, 17 }
   0x5   : > { %s4066_s21 = smov (%p29_p1, %s27_s21), 0  ;;  %p238_p3 = pnand %p2219_p0, %p237_p2 }
   0x7   : > { %241 = sbr.rel (%p238_p3) target bundleno = 935 (0x3a7), region = 40 }
   0xe   : > { %p290_p4 = scmp.lt.s32.totalorder %s2509_s18, 15  ;;  %v338_v0 = vlaneseq  ;;  %v2519_v1 = vmov 1966171168   ;;  %s2520_s30 = smov 127   ;;  %v2640_v43 = vld [vmem:[%s3909_s2] sm:$0xff]   ;;  %v2527_v44 = vmov 0  }
   0xf   : > { %v336_v2 = vunpack.c.l.s4 %v2519_v1  ;;  %s2521_s6 = smov 126   ;;  %s2522_s7 = smov 109   ;;  %661 = vmatprep.mubr.bf16.mxu0 %v2527_v44  ;;  %vm3913_vm0 = vcmask 72704   ;;  %2443 = vset.pattern.permute.xlu0 %v2527_v44  ;;  %v579_v51 = vld [vmem:[%s3910_s3] sm:$0xff]  ;;  %v580_v52 = vld [vmem:[%s3910_s3 + $0x8] sm:$0xff]  ;;  %v581_v53 = vld [vmem:[%s3910_s3 + $0x10] sm:$0xff] }
  0x10   : > { %s4068_s18 = smov (!%p290_p4, %s2509_s18), 15  ;;  %v339_v3 = vshrl.u32 %v338_v0, 7  ;;  %s2523_s8 = smov 110   ;;  %2290 = vmatprep.mubr.msk.bf16.mxu1 %vm3913_vm0, %v2640_v43  ;;  %2444 = vset.pattern.permute.xlu1 %v2527_v44  ;;  %v582_v54 = vld [vmem:[%s3910_s3 + $0x18] sm:$0xff]  ;;  %vm373_vm1 = vcmask 1039360   ;;  %vm502_vm2 = vcmask 1040384  }
  0x11   : > { %v337_v4 = vunpack.c.0.s8 %v336_v2  ;;  %s2319_s22 = smul.u32 5, %s4068_s18  ;;  %s2524_s9 = smov 108   ;;  %vm503_vm3 = vsmask.f32 256  ;;  %vm3914_vm5 = vcmask 900096   ;;  %vm3915_vm6 = vcmask 1041408  }
  0x12   : > { %s2525_s10 = smov 92   ;;  %s2526_s11 = smov 91   ;;  %vm2690_vm4 = vmand %vm502_vm2, %vm503_vm3  ;;  %vm522_vm7 = vsmask.f32 1280  ;;  %vm393_vm8 = vcmask 1031168   ;;  %vm444_vm10 = vcmask 883712  }
  0x13   : > { %v340_v5 = vsub.s32 %v337_v4, %v339_v3  ;;  %s296_s25 = scalar_lea.vmem %s3907_s0, %s2319_s22  ;;  %s309_s26 = sadd.s32 3, %s2319_s22  ;;  %vm2704_vm9 = vmand %vm3915_vm6, %vm522_vm7  ;;  %vm540_vm11 = vcmask 1042432   ;;  %vm541_vm12 = vsmask.f32 2304  ;;  %vm428_vm13 = vcmask 891904  }
  0x14   : > { %s310_s29 = scalar_lea.vmem %s3908_s1, %s309_s26  ;;  %v2221_v6 = vld.sshfl [vmem:[%s296_s25] sm:$0x13 pattern:$0x75316420]  ;;  %s2528_s14 = smov 90   ;;  %vm463_vm14 = vcmask 752640   ;;  %vm2726_vm3 = vmand %vm540_vm11, %vm541_vm12 }
  0x15   : > { %v2596_v7 = vld [vmem:[%s310_s29] sm:$0x1]  ;;  %v2598_v8 = vrot.slane %v2221_v6, %v340_v5  ;;  %v334_v9 = vcombine.high %v2221_v6, %v2221_v6  ;;  %vm479_vm15 = vcmask 744448   ;;  %vm559_vm7 = vcmask 1043456  }
  0x16   : > { %v2601_v10 = vshll.u32 %v2596_v7, 16  ;;  %v384_v40 = vrot.slane %v2596_v7, 7  ;;  %v419_v46 = vrot.slane %v2596_v7, 6  ;;  %v454_v48 = vrot.slane %v2596_v7, 5 }
  0x17   : > { %v354_v11 = vshll.u32 %v2598_v8, 16  ;;  %v2604_v12 = vrot.slane %v334_v9, %v340_v5  ;;  %v2608_v13 = vcombine.high %v2598_v8, %v2598_v8  ;;  %v381_v16 = vrot.slane %v2598_v8, 7 }
  0x18   : > { %v400_v23 = vrot.slane %v2601_v10, 7  ;;  %v416_v24 = vrot.slane %v2598_v8, 6  ;;  %v451_v38 = vrot.slane %v2598_v8, 5  ;;  %v486_v45 = vrot.slane %v2598_v8, 4 }
  0x19   : > { %v2413_v14 = vpack.i.bf16 %v2601_v10, %v354_v11  ;;  %v382_v15 = vrot.slane %v2604_v12, 7  ;;  %v383_v17 = vrot.slane %v2608_v13, 7  ;;  %v357_v18 = vshll.u32 %v2604_v12, 16 }
  0x1a   : > { %v360_v19 = vshll.u32 %v2608_v13, 16  ;;  %v417_v20 = vrot.slane %v2604_v12, 6  ;;  %v397_v22 = vrot.slane %v354_v11, 7  ;;  %v418_v28 = vrot.slane %v2608_v13, 6 }
  0x1b   : > { %2414 = vrot.lane.b32.xlu0 %v2413_v14, %s2520_s30  ;;  %387 = vrot.lane.b32.xlu1 %v382_v15, %s2521_s6  ;;  %v398_v26 = vrot.slane %v357_v18, 7  ;;  %v433_v30 = vrot.slane %v357_v18, 6  ;;  %v432_v33 = vrot.slane %v354_v11, 6  ;;  %v452_v34 = vrot.slane %v2604_v12, 5 }
  0x1c   : > { %v2418_v21 = vpack.i.bf16 %v360_v19, %v357_v18  ;;  %v2423_v25 = vpack.i.bf16 %v400_v23, %v397_v22  ;;  %v399_v27 = vrot.slane %v360_v19, 7  ;;  %v434_v31 = vrot.slane %v360_v19, 6 }
  0x1d   : > { %v453_v35 = vrot.slane %v2608_v13, 5  ;;  %v468_v36 = vrot.slane %v357_v18, 5  ;;  %v469_v37 = vrot.slane %v360_v19, 5  ;;  %v467_v41 = vrot.slane %v354_v11, 5 }
  0x1e   : > { %v2428_v29 = vpack.i.bf16 %v399_v27, %v398_v26  ;;  %v2433_v32 = vpack.i.bf16 %v434_v31, %v433_v30  ;;  %v487_v42 = vrot.slane %v2604_v12, 4  ;;  %v435_v47 = vrot.slane %v2601_v10, 6 }
  0x1f   : > { %385 = vrot.lane.b32.xlu0 %v381_v16, %s2521_s6  ;;  %389 = vrot.lane.b32.xlu1 %v383_v17, %s2521_s6  ;;  %v2438_v39 = vpack.i.bf16 %v469_v37, %v468_v36  ;;  %v470_v49 = vrot.slane %v2601_v10, 5  ;;  %v489_v50 = vrot.slane %v2596_v7, 4  ;;  %vm560_vm0 = vsmask.f32 3328 }
  0x20   : > { %vm620_vm12 = vcmask 1044480  }
  0x23   : > { %422 = vrot.lane.b32.xlu1 %v417_v20, %s2522_s7  ;;  %2419 = vrot.lane.b32.xlu0 %v2418_v21, %s2520_s30 }
  0x27   : > { %420 = vrot.lane.b32.xlu1 %v416_v24, %s2522_s7  ;;  %2424 = vrot.lane.b32.xlu0 %v2423_v25, %s2523_s8 }
  0x2b   : > { %424 = vrot.lane.b32.xlu0 %v418_v28, %s2522_s7  ;;  %2429 = vrot.lane.b32.xlu1 %v2428_v29, %s2523_s8 }
  0x2f   : > { %2434 = vrot.lane.b32.xlu0 %v2433_v32, %s2524_s9  ;;  %436 = vrot.lane.b32.xlu1 %v432_v33, %s2524_s9 }
  0x33   : > { %457 = vrot.lane.b32.xlu0 %v452_v34, %s2525_s10  ;;  %459 = vrot.lane.b32.xlu1 %v453_v35, %s2525_s10 }
  0x37   : > { %455 = vrot.lane.b32.xlu0 %v451_v38, %s2525_s10  ;;  %2439 = vrot.lane.b32.xlu1 %v2438_v39, %s2526_s11  ;;  %v2529_v38 = vmov 65535  }
  0x38   : > { %v621_v39 = vsel %vm559_vm7, 4294967295, %v2529_v38 }
  0x3b   : > { %391 = vrot.lane.b32.xlu0 %v384_v40, %s2521_s6  ;;  %471 = vrot.lane.b32.xlu1 %v467_v41, %s2526_s11  ;;  %s2320_s6 = smul.u32 24, %s4068_s18 }
  0x3f   : > { %492 = vrot.lane.b32.xlu0 %v487_v42, %s2528_s14  ;;  %494 = vrot.lane.b32.xlu1 %v2608_v13, %s2528_s14 }
  0x43   : > { %490 = vrot.lane.b32.xlu0 %v486_v45, %s2528_s14  ;;  %426 = vrot.lane.b32.xlu1 %v419_v46, %s2522_s7 }
  0x47   : > { %442 = vrot.lane.b32.xlu0 %v435_v47, %s2524_s9  ;;  %461 = vrot.lane.b32.xlu1 %v454_v48, %s2525_s10  ;;  %s321_s9 = scalar_lea.vmem %s3912_s5, %s2320_s6 }
  0x4b   : > { %477 = vrot.lane.b32.xlu0 %v470_v49, %s2526_s11  ;;  %496 = vrot.lane.b32.xlu1 %v489_v50, %s2528_s14 }
  0x4f   : > { %585 = vperm.xlu0 %2443, %v579_v51   ;;  %590 = vperm.xlu1 %2444, %v580_v52   ;;  %v622_v52 = vsel %vm620_vm12, %v621_v39, 0 }
  0x53   : > { %595 = vperm.xlu1 %2444, %v581_v53   ;;  %600 = vperm.xlu0 %2443, %v582_v54  }
  0x8d   : > { %v2669_v55 = vpop.permute.xlu0 %2414  ;;  %v388_v56 = vpop.permute.xlu1 %387 }
  0x8e   : > { %v2416_v15 = vunpack.i.l.bf16 %v2669_v55  ;;  %v2417_v40 = vunpack.i.h.bf16 %v2669_v55 }
  0x91   : > { %v386_v57 = vpop.permute.xlu0 %385  ;;  %v2671_v58 = vpop.permute.xlu1 %389 }
  0x92   : > { %v395_v20 = vsel %vm393_vm8, %v388_v56, %v2671_v58  ;;  %v394_v36 = vsel %vm393_vm8, %v386_v57, %v388_v56 }
  0x95   : > { %v2673_v59 = vpop.permute.xlu1 %422  ;;  %v2675_v60 = vpop.permute.xlu0 %2419 }
  0x96   : > { %v2422_v1 = vunpack.i.h.bf16 %v2675_v60  ;;  %v2421_v2 = vunpack.i.l.bf16 %v2675_v60 }
  0x98   : > { %v375_v6 = vsel %vm373_vm1, %v2421_v2, %v2422_v1  ;;  %v376_v47 = vsel %vm373_vm1, %v2422_v1, %v2417_v40 }
  0x99   : > { %v2677_v61 = vpop.permute.xlu1 %420  ;;  %v2679_v62 = vpop.permute.xlu0 %2424  ;;  %v506_v14 = vsel %vm2690_vm4, %v2604_v12, %v375_v6  ;;  %v374_v12 = vsel %vm373_vm1, %v2416_v15, %v2421_v2  ;;  %v507_v6 = vsel %vm2690_vm4, %v2608_v13, %v376_v47  ;;  %vm3973_vm1 = vcmask 900096  }
  0x9a   : > { %v515_v21 = vsel %vm502_vm2, %v506_v14, %v395_v20  ;;  %v2426_v25 = vunpack.i.l.bf16 %v2679_v62  ;;  %v505_v30 = vsel %vm2690_vm4, %v2598_v8, %v374_v12  ;;  %v429_v53 = vsel %vm428_vm13, %v2677_v61, %v2673_v59 }
  0x9b   : > { %v511_v41 = vsel %vm502_vm2, %v505_v30, %v394_v36  ;;  %v2427_v14 = vunpack.i.h.bf16 %v2679_v62  ;;  %vm3975_vm4 = vcmask 72704  }
  0x9d   : > { %v2681_v63 = vpop.permute.xlu0 %424  ;;  %v2683_v0 = vpop.permute.xlu1 %2429 }
  0x9e   : > { %v2432_v7 = vunpack.i.h.bf16 %v2683_v0  ;;  %v2431_v9 = vunpack.i.l.bf16 %v2683_v0  ;;  %v430_v31 = vsel %vm428_vm13, %v2673_v59, %v2681_v63 }
  0xa0   : > { %v411_v17 = vsel %vm3914_vm5, %v2431_v9, %v2432_v7  ;;  %v410_v32 = vsel %vm3914_vm5, %v2426_v25, %v2431_v9  ;;  %vm2749_vm5 = vmand %vm559_vm7, %vm560_vm0  ;;  %vm3972_vm0 = vcmask 1041408   ;;  %v412_v13 = vsel %vm3973_vm1, %v2432_v7, %v2427_v14 }
  0xa1   : > { %v2687_v3 = vpop.permute.xlu0 %2434  ;;  %v437_v4 = vpop.permute.xlu1 %436  ;;  %v525_v24 = vsel %vm2704_vm9, %v515_v21, %v411_v17  ;;  %v524_v46 = vsel %vm2704_vm9, %v511_v41, %v410_v32 }
  0xa2   : > { %v2437_v18 = vunpack.i.h.bf16 %v2687_v3  ;;  %v2436_v19 = vunpack.i.l.bf16 %v2687_v3  ;;  %v534_v33 = vsel %vm3915_vm6, %v525_v24, %v430_v31  ;;  %vm498_vm6 = vcmask 736256  }
  0xa3   : > { %v530_v57 = vsel %vm3972_vm0, %v524_v46, %v429_v53 }
  0xa4   : > { %v446_v26 = vsel %vm444_vm10, %v2436_v19, %v2437_v18  ;;  %v445_v48 = vsel %vm444_vm10, %v437_v4, %v2436_v19 }
  0xa5   : > { %v458_v10 = vpop.permute.xlu0 %457  ;;  %v2697_v11 = vpop.permute.xlu1 %459  ;;  %v544_v8 = vsel %vm2726_vm3, %v534_v33, %v446_v26  ;;  %v543_v4 = vsel %vm2726_vm3, %v530_v57, %v445_v48 }
  0xa6   : > { %v465_v37 = vsel %vm463_vm14, %v458_v10, %v2697_v11 }
  0xa7   : > { %v553_v49 = vsel %vm540_vm11, %v544_v8, %v465_v37 }
  0xa9   : > { %v456_v22 = vpop.permute.xlu0 %455  ;;  %v2717_v23 = vpop.permute.xlu1 %2439 }
  0xaa   : > { %v2442_v28 = vunpack.i.h.bf16 %v2717_v23  ;;  %v2441_v29 = vunpack.i.l.bf16 %v2717_v23  ;;  %v464_v54 = vsel %vm463_vm14, %v456_v22, %v458_v10 }
  0xab   : > { %v549_v61 = vsel %vm540_vm11, %v543_v4, %v464_v54 }
  0xac   : > { %v481_v45 = vsel %vm479_vm15, %v2441_v29, %v2442_v28 }
  0xad   : > { %v392_v34 = vpop.permute.xlu0 %391  ;;  %v472_v35 = vpop.permute.xlu1 %471  ;;  %v563_v56 = vsel %vm2749_vm5, %v553_v49, %v481_v45 }
  0xae   : > { %v396_v60 = vsel %vm393_vm8, %v2671_v58, %v392_v34  ;;  %v480_v1 = vsel %vm479_vm15, %v472_v35, %v2441_v29  ;;  %vm3976_vm8 = vmmov %vm3975_vm4 }
  0xaf   : > { %v519_v58 = vsel %vm502_vm2, %v507_v6, %v396_v60  ;;  %v562_v15 = vsel %vm2749_vm5, %v549_v61, %v480_v1  ;;  %vm3974_vm2 = vmmov %vm3972_vm0 }
  0xb0   : > { %v526_v62 = vsel %vm2704_vm9, %v519_v58, %v412_v13  ;;  %vm3977_vm9 = vmmov %vm3975_vm4 }
  0xb1   : > { %v493_v50 = vpop.permute.xlu0 %492  ;;  %v495_v51 = vpop.permute.xlu1 %494 }
  0xb2   : > { %v500_v55 = vsel %vm498_vm6, %v493_v50, %v495_v51 }
  0xb3   : > { %v571_v2 = vsel %vm559_vm7, %v563_v56, %v500_v55 }
  0xb4   : > { %v625_v59 = vand.u32 %v622_v52, %v571_v2 }
  0xb5   : > { %v491_v9 = vpop.permute.xlu0 %490  ;;  %v427_v10 = vpop.permute.xlu1 %426 }
  0xb6   : > { %v499_v17 = vsel %vm498_vm6, %v491_v9, %v493_v50  ;;  %629 = vmatprep.subr.bf16.mxu0 %v625_v59  ;;  %v431_v19 = vsel %vm428_vm13, %v2681_v63, %v427_v10 }
  0xb7   : > { %v568_v20 = vsel %vm559_vm7, %v562_v15, %v499_v17  ;;  %v538_v22 = vsel %vm3974_vm2, %v526_v62, %v431_v19  ;;  %v3925_v17 = vmov 683565275  }
  0xb8   : > { %v623_v5 = vand.u32 %v622_v52, %v568_v20  ;;  %v3922_v20 = vmov 2475754826  }
  0xb9   : > { %v443_v12 = vpop.permute.xlu0 %442  ;;  %v462_v21 = vpop.permute.xlu1 %461 }
  0xba   : > { %v447_v24 = vsel %vm444_vm10, %v2437_v18, %v443_v12  ;;  %630 = vmatpush1.bf16.msra.mxu0 %v623_v5  ;;  %v466_v0 = vsel %vm463_vm14, %v2697_v11, %v462_v21  ;;  %v3920_v5 = vmov 2131351028   ;;  %v3929_v21 = vmov 2102212464  }
  0xbb   : > { %v545_v63 = vsel %vm2726_vm3, %v538_v22, %v447_v24  ;;  %v3935_v24 = vmov 920167782  }
  0xbc   : > { %v557_v16 = vsel %vm540_vm11, %v545_v63, %v466_v0 }
  0xbd   : > { %v478_v7 = vpop.permute.xlu0 %477  ;;  %v497_v25 = vpop.permute.xlu1 %496  ;;  %2224 = vmatmul.mubr.msk.bf16.vlgmr.msra.gmra.mrb[0].mxu0 %vm3975_vm4, %v2640_v43  ;;  %v2446_v43 = vld [vmem:[%s3909_s2 + $0x8] sm:$0xff]  }
  0xbe   : > { %v482_v3 = vsel %vm479_vm15, %v2442_v28, %v478_v7  ;;  %v501_v18 = vsel %vm498_vm6, %v495_v51, %v497_v25  ;;  %671 = vmatprep.mubr.bf16.mxu0 %v2527_v44 }
  0xbf   : > { %v564_v26 = vsel %vm2749_vm5, %v557_v16, %v482_v3 }
  0xc0   : > { %v574_v11 = vsel %vm559_vm7, %v564_v26, %v501_v18  ;;  %v3933_v26 = vmov 1326507024  }
  0xc1   : > { %v627_v27 = vand.u32 %v622_v52, %v574_v11 }
  0xc3   : > { %2288 = vmatprep.subr.bf16.mxu1 %v627_v27 }
  0xc4   : > { %2289 = vmatpush3.bf16.msra.mxu1 %v627_v27 }
  0xc5   : > { %2225 = vmatmul.mubr.msk.bf16.gmra.mrb[4].mxu0 %vm3976_vm8, %v2446_v43 }
  0xc7   : > { %2291 = vmatmul.mubr.msk.bf16.vlgmr.msra.gmra.mrb[0].mxu1 %vm3977_vm9, %v2446_v43 }
  0xce   : > { %v2817_v23 = vpop.permute.xlu0 %585  ;;  %v2819_v44 = vpop.permute.xlu1 %590 }
 0x190   : > { %v663_v28 = vpop.f32.mrb[0].mxu0 }
 0x191   : > { %v2822_v29 = vadd.f32 %v663_v28, %v2817_v23  ;;  %v665_v30 = vpop.f32.mrb[1].mxu0 }
 0x192   : > { %v2825_v31 = vadd.f32 %v665_v30, %v2817_v23  ;;  %v667_v32 = vpop.f32.mrb[2].mxu0 }
 0x193   : > { %3978 = vst [vmem:[#allocation2_spill] sm:$0xff] %v2822_v29  ;;  %v731_v33 = vand.u32 2147483647, %v2822_v29  ;;  %v734_v34 = vand.u32 2139095040, %v2822_v29  ;;  %v2830_v35 = vadd.f32 %v667_v32, %v2819_v44  ;;  %v669_v36 = vpop.f32.mrb[3].mxu0 }
 0x194   : > { %v834_v37 = vand.u32 2147483647, %v2825_v31  ;;  %v837_v8 = vand.u32 2139095040, %v2825_v31  ;;  %v2843_v55 = vadd.f32 %v669_v36, %v2819_v44 }
 0x195   : > { %3979 = vst [vmem:[#allocation3_spill] sm:$0xff] %v2830_v35  ;;  %v735_v38 = vshrl.u32 %v734_v34, 23  ;;  %v738_v39 = vand.u32 8388607, %v731_v33  ;;  %v1043_v42 = vand.u32 2139095040, %v2830_v35 }
 0x196   : > { %v838_v40 = vshrl.u32 %v837_v8, 23  ;;  %v841_v41 = vand.u32 8388607, %v834_v37  ;;  %v3919_v51 = vand.u32 2147483647, %v2830_v35  ;;  %v1146_v58 = vand.u32 2139095040, %v2843_v55 }
 0x197   : > { %v2228_v45 = vadd.s32 4294967169, %v735_v38  ;;  %v739_v46 = vor.u32 8388608, %v738_v39  ;;  %v1044_v48 = vshrl.u32 %v1043_v42, 23 }
 0x198   : > { %v2232_v47 = vadd.s32 4294967169, %v838_v40  ;;  %v2839_v49 = vpop.f32.mrb[4].mxu0  ;;  %v842_v52 = vor.u32 8388608, %v841_v41  ;;  %v2855_v6 = vand.u32 8388607, %v3919_v51 }
 0x199   : > { %v741_v50 = vadd.s32 1, %v2228_v45  ;;  %v2240_v54 = vadd.s32 4294967169, %v1044_v48  ;;  %v2845_v56 = vpop.f32.mrb[5].mxu0  ;;  %v2849_v1 = vshll.u32 %v739_v46, 8 }
 0x19a   : > { %v844_v53 = vadd.s32 1, %v2232_v47  ;;  %v2847_v57 = vpop.f32.mrb[6].mxu0  ;;  %v2851_v2 = vpop.f32.mrb[0].mxu1  ;;  %v2857_v10 = vshll.u32 %v842_v52, 8 }
 0x19b   : > { %vm742_vm5 = vcmp.gt.s32.totalorder %v741_v50, 0  ;;  %v2859_v14 = vadd.s32 1, %v2240_v54  ;;  %v2865_v12 = vpop.f32.mrb[7].mxu0 }
 0x19c   : > { %v743_v60 = vsel %vm742_vm5, %v741_v50, 0  ;;  %vm845_vm6 = vcmp.gt.s32.totalorder %v844_v53, 0 }
 0x19d   : > { %v744_v4 = vshrl.u32 %v743_v60, 5  ;;  %v745_v59 = vand.u32 31, %v743_v60  ;;  %v846_v61 = vsel %vm845_vm6, %v844_v53, 0  ;;  %vm1051_vm15 = vcmp.gt.s32.totalorder %v2859_v14, 0 }
 0x19e   : > { %v848_v9 = vand.u32 31, %v846_v61  ;;  %v2869_v0 = vshrl.u32 %v846_v61, 5 }
 0x19f   : > { %v746_v15 = vsub.s32 32, %v745_v59  ;;  %v748_v19 = vshll.u32 %v3925_v17, %v745_v59  ;;  %v751_v13 = vshll.u32 %v3922_v20, %v745_v59  ;;  %v754_v62 = vshll.u32 %v3920_v5, %v745_v59 }
 0x1a0   : > { %v757_v22 = vshll.u32 %v3929_v21, %v745_v59  ;;  %v760_v63 = vshll.u32 %v3935_v24, %v745_v59  ;;  %vm763_vm10 = vcmp.lt.s32.totalorder %v744_v4, 1  ;;  %vm764_vm11 = vcmp.lt.s32.totalorder %v744_v4, 2 }
 0x1a1   : > { %v747_v7 = vshrl.u32 %v3925_v17, %v746_v15  ;;  %v749_v25 = vshrl.u32 %v3922_v20, %v746_v15  ;;  %v752_v16 = vshrl.u32 %v3920_v5, %v746_v15  ;;  %v755_v3 = vshrl.u32 %v3929_v21, %v746_v15 }
 0x1a2   : > { %v758_v18 = vshrl.u32 %v3935_v24, %v746_v15  ;;  %v761_v11 = vshrl.u32 %v3933_v26, %v746_v15  ;;  %vm765_vm13 = vcmp.lt.s32.totalorder %v744_v4, 3  ;;  %v849_v30 = vsub.s32 32, %v848_v9 }
 0x1a3   : > { %v750_v27 = vor.u32 %v749_v25, %v748_v19  ;;  %v753_v43 = vor.u32 %v752_v16, %v751_v13  ;;  %v756_v28 = vor.u32 %v755_v3, %v754_v62  ;;  %vm766_vm14 = vcmp.lt.s32.totalorder %v744_v4, 4 }
 0x1a4   : > { %v759_v32 = vor.u32 %v758_v18, %v757_v22  ;;  %v762_v34 = vor.u32 %v761_v11, %v760_v63  ;;  %v851_v36 = vshll.u32 %v3925_v17, %v848_v9  ;;  %v854_v46 = vshll.u32 %v3922_v20, %v848_v9 }
 0x1a5   : > { %v767_v8 = vsel %vm763_vm10, %v747_v7, %v750_v27  ;;  %v768_v38 = vsel %vm766_vm14, %v756_v28, 2102212464  ;;  %v771_v39 = vsel %vm763_vm10, %v750_v27, %v753_v43  ;;  %v775_v40 = vsel %vm763_vm10, %v753_v43, %v756_v28 }
 0x1a6   : > { %v769_v41 = vsel %vm765_vm13, %v753_v43, %v768_v38  ;;  %v772_v42 = vsel %vm766_vm14, %v759_v32, 920167782  ;;  %v776_v45 = vsel %vm766_vm14, %v762_v34, 1326507024  ;;  %v850_v50 = vshrl.u32 %v3925_v17, %v849_v30 }
 0x1a7   : > { %v773_v47 = vsel %vm765_vm13, %v756_v28, %v772_v42  ;;  %v777_v48 = vsel %vm765_vm13, %v759_v32, %v776_v45  ;;  %v852_v52 = vshrl.u32 %v3922_v20, %v849_v30  ;;  %v770_v53 = vsel %vm764_vm11, %v767_v8, %v769_v41 }
 0x1a8   : > { %v774_v54 = vsel %vm764_vm11, %v771_v39, %v773_v47  ;;  %v778_v60 = vsel %vm764_vm11, %v775_v40, %v777_v48  ;;  %v855_v59 = vshrl.u32 %v3920_v5, %v849_v30  ;;  %v857_v63 = vshll.u32 %v3920_v5, %v848_v9 }
 0x1a9   : > { %v2893_v61 = vmul.u32.u64.low %v2849_v1, %v778_v60  ;;  %v2894_v15 = vmul.u32.u64.high %v2849_v1, %v778_v60, %v2893_v61  ;;  %v2897_v19 = vmul.u32.u64.low %v2849_v1, %v774_v54  ;;  %v2898_v13 = vmul.u32.u64.high %v2849_v1, %v774_v54, %v2897_v19 }
 0x1aa   : > { %v853_v62 = vor.u32 %v852_v52, %v851_v36  ;;  %v856_v22 = vor.u32 %v855_v59, %v854_v46  ;;  %v858_v7 = vshrl.u32 %v3929_v21, %v849_v30  ;;  %v860_v4 = vshll.u32 %v3929_v21, %v848_v9 }
 0x1ab   : > { %v861_v25 = vshrl.u32 %v3935_v24, %v849_v30  ;;  %v863_v16 = vshll.u32 %v3935_v24, %v848_v9  ;;  %v864_v3 = vshrl.u32 %v3933_v26, %v849_v30  ;;  %v786_v18 = vmul.u32 %v2849_v1, %v770_v53 }
 0x1ac   : > { %v859_v11 = vor.u32 %v858_v7, %v857_v63  ;;  %vm866_vm3 = vcmp.lt.s32.totalorder %v2869_v0, 1  ;;  %vm867_vm7 = vcmp.lt.s32.totalorder %v2869_v0, 2  ;;  %vm788_vm12 = vc.u32 %v2894_v15, %v2897_v19 }
 0x1ad   : > { %v789_v27 = vadd.s32 1, %v2898_v13  ;;  %v862_v43 = vor.u32 %v861_v25, %v860_v4  ;;  %vm868_vm0 = vcmp.lt.s32.totalorder %v2869_v0, 3  ;;  %v865_v28 = vor.u32 %v864_v3, %v863_v16 }
 0x1ae   : > { %vm869_vm1 = vcmp.lt.s32.totalorder %v2869_v0, 4  ;;  %v870_v9 = vsel %vm866_vm3, %v850_v50, %v853_v62  ;;  %v874_v30 = vsel %vm866_vm3, %v853_v62, %v856_v22  ;;  %v878_v36 = vsel %vm866_vm3, %v856_v22, %v859_v11  ;;  %v2941_v62 = vpop.f32.mrb[1].mxu1 }
 0x1af   : > { %v790_v1 = vsel %vm788_vm12, %v789_v27, %v2898_v13  ;;  %v871_v32 = vsel %vm869_vm1, %v859_v11, 2102212464  ;;  %v875_v34 = vsel %vm869_vm1, %v862_v43, 920167782  ;;  %v879_v40 = vsel %vm869_vm1, %v865_v28, 1326507024 }
 0x1b0   : > { %v791_v8 = vadd.s32 %v790_v1, %v786_v18  ;;  %v872_v38 = vsel %vm868_vm0, %v856_v22, %v871_v32  ;;  %v876_v39 = vsel %vm868_vm0, %v859_v11, %v875_v34  ;;  %v880_v42 = vsel %vm868_vm0, %v862_v43, %v879_v40 }
 0x1b1   : > { %v877_v41 = vsel %vm867_vm7, %v874_v30, %v876_v39  ;;  %v1048_v45 = vor.u32 8388608, %v2855_v6  ;;  %v1052_v46 = vsel %vm1051_vm15, %v2859_v14, 0  ;;  %v881_v48 = vsel %vm867_vm7, %v878_v36, %v880_v42 }
 0x1b2   : > { %v792_v47 = vadd.s32 536870912, %v791_v8  ;;  %v2925_v50 = vmul.u32.u64.low %v2857_v10, %v877_v41  ;;  %v2926_v52 = vmul.u32.u64.high %v2857_v10, %v877_v41, %v2925_v50  ;;  %v873_v53 = vsel %vm867_vm7, %v870_v9, %v872_v38 }
 0x1b3   : > { %v2932_v54 = vmul.u32.u64.low %v2857_v10, %v881_v48  ;;  %v2933_v60 = vmul.u32.u64.high %v2857_v10, %v881_v48, %v2932_v54  ;;  %v1147_v6 = vshrl.u32 %v1146_v58, 23  ;;  %v1053_v59 = vshrl.u32 %v1052_v46, 5 }
 0x1b4   : > { %v2937_v14 = vshrl.u32 %v792_v47, 30  ;;  %v1054_v61 = vand.u32 31, %v1052_v46  ;;  %v2939_v13 = vshll.u32 %v1048_v45, 8  ;;  %v889_v0 = vmul.u32 %v2857_v10, %v873_v53 }
 0x1b5   : > { %v892_v63 = vadd.s32 1, %v2926_v52  ;;  %vm891_vm2 = vc.u32 %v2933_v60, %v2925_v50  ;;  %v2244_v25 = vadd.s32 4294967169, %v1147_v6  ;;  %vm1072_vm4 = vcmp.lt.s32.totalorder %v1053_v59, 1 }
 0x1b6   : > { %v794_v22 = vshll.u32 %v2937_v14, 30  ;;  %v1055_v7 = vsub.s32 32, %v1054_v61  ;;  %v1057_v58 = vshll.u32 %v3925_v17, %v1054_v61  ;;  %v1060_v4 = vshll.u32 %v3922_v20, %v1054_v61 }
 0x1b7   : > { %v893_v3 = vsel %vm891_vm2, %v892_v63, %v2926_v52  ;;  %vm1073_vm8 = vcmp.lt.s32.totalorder %v1053_v59, 2  ;;  %v1063_v28 = vshll.u32 %v3920_v5, %v1054_v61  ;;  %v1066_v30 = vshll.u32 %v3929_v21, %v1054_v61 }
 0x1b8   : > { %v2950_v16 = vsub.s32 %v791_v8, %v794_v22  ;;  %v894_v18 = vadd.s32 %v893_v3, %v889_v0  ;;  %v1056_v10 = vshrl.u32 %v3925_v17, %v1055_v7  ;;  %v1058_v11 = vshrl.u32 %v3922_v20, %v1055_v7 }
 0x1b9   : > { %v1061_v27 = vshrl.u32 %v3920_v5, %v1055_v7  ;;  %v1064_v9 = vshrl.u32 %v3929_v21, %v1055_v7  ;;  %v1067_v36 = vshrl.u32 %v3935_v24, %v1055_v7  ;;  %v1069_v39 = vshll.u32 %v3935_v24, %v1054_v61 }
 0x1ba   : > { %v797_v43 = vsub.s32 0, %v2950_v16  ;;  %v895_v1 = vadd.s32 536870912, %v894_v18  ;;  %v1059_v32 = vor.u32 %v1058_v11, %v1057_v58  ;;  %v1070_v40 = vshrl.u32 %v3933_v26, %v1055_v7 }
 0x1bb   : > { %v1062_v34 = vor.u32 %v1061_v27, %v1060_v4  ;;  %v1065_v38 = vor.u32 %v1064_v9, %v1063_v28  ;;  %v1068_v42 = vor.u32 %v1067_v36, %v1066_v30  ;;  %vm1074_vm9 = vcmp.lt.s32.totalorder %v1053_v59, 3 }
 0x1bc   : > { %v2229_v8 = vmin.u32 %v797_v43, %v2950_v16  ;;  %v2964_v41 = vshrl.u32 %v895_v1, 30  ;;  %vm1075_vm5 = vcmp.lt.s32.totalorder %v1053_v59, 4  ;;  %v1071_v46 = vor.u32 %v1070_v40, %v1069_v39  ;;  %v2995_v59 = vpop.f32.mrb[2].mxu1 }
 0x1bd   : > { %v1077_v47 = vsel %vm1075_vm5, %v1065_v38, 2102212464  ;;  %v1080_v48 = vsel %vm1072_vm4, %v1059_v32, %v1062_v34  ;;  %v1076_v53 = vsel %vm1072_vm4, %v1056_v10, %v1059_v32  ;;  %v1081_v54 = vsel %vm1075_vm5, %v1068_v42, 920167782 }
 0x1be   : > { %v799_v45 = vclz %v2229_v8  ;;  %v897_v52 = vshll.u32 %v2964_v41, 30  ;;  %v1084_v6 = vsel %vm1072_vm4, %v1062_v34, %v1065_v38  ;;  %v1082_v22 = vsel %vm1074_vm9, %v1065_v38, %v1081_v54 }
 0x1bf   : > { %v1085_v0 = vsel %vm1075_vm5, %v1071_v46, 1326507024  ;;  %v1153_v63 = vadd.s32 1, %v2244_v25  ;;  %v1078_v58 = vsel %vm1074_vm9, %v1062_v34, %v1077_v47  ;;  %v1083_v4 = vsel %vm1073_vm8, %v1080_v48, %v1082_v22  ;;  %v2997_v48 = vpop.permute.xlu1 %595 }
 0x1c0   : > { %v2230_v61 = vadd.s32 4294967294, %v799_v45  ;;  %v2971_v7 = vsub.s32 %v894_v18, %v897_v52  ;;  %v1086_v3 = vsel %vm1074_vm9, %v1068_v42, %v1085_v0  ;;  %v1079_v30 = vsel %vm1073_vm8, %v1076_v53, %v1078_v58 }
 0x1c1   : > { %v1087_v11 = vsel %vm1073_vm8, %v1084_v6, %v1086_v3  ;;  %v2978_v10 = vmul.u32.u64.low %v2939_v13, %v1083_v4  ;;  %v2979_v27 = vmul.u32.u64.high %v2939_v13, %v1083_v4, %v2978_v10  ;;  %vm1154_vm10 = vcmp.gt.s32.totalorder %v1153_v63, 0 }
 0x1c2   : > { %vm2231_vm6 = vcmp.lt.s32.totalorder %v2230_v61, 0  ;;  %v900_v28 = vsub.s32 0, %v2971_v7  ;;  %v2984_v25 = vmul.u32.u64.low %v2939_v13, %v1087_v11  ;;  %v2985_v18 = vmul.u32.u64.high %v2939_v13, %v1087_v11, %v2984_v25 }
 0x1c3   : > { %v802_v43 = vsel %vm2231_vm6, 0, %v2230_v61  ;;  %v1155_v32 = vsel %vm1154_vm10, %v1153_v63, 0  ;;  %v1098_v34 = vadd.s32 1, %v2979_v27  ;;  %v3918_v36 = vand.u32 2147483647, %v2843_v55 }
 0x1c4   : > { %v807_v9 = vsub.s32 4294967266, %v802_v43  ;;  %v2233_v1 = vmin.u32 %v900_v28, %v2971_v7  ;;  %v1095_v38 = vmul.u32 %v2939_v13, %v1079_v30  ;;  %vm1097_vm11 = vc.u32 %v2985_v18, %v2978_v10 }
 0x1c5   : > { %v1157_v39 = vand.u32 31, %v1155_v32  ;;  %v1099_v42 = vsel %vm1097_vm11, %v1098_v34, %v2979_v27  ;;  %v803_v52 = vsub.s32 32, %v802_v43  ;;  %v1150_v53 = vand.u32 8388607, %v3918_v36 }
 0x1c6   : > { %v902_v8 = vclz %v2233_v1  ;;  %v808_v40 = vadd.s32 127, %v807_v9  ;;  %v1100_v46 = vadd.s32 %v1099_v42, %v1095_v38  ;;  %v787_v54 = vadd.s32 %v2897_v19, %v2894_v15 }
 0x1c7   : > { %v1158_v47 = vsub.s32 32, %v1157_v39  ;;  %v3005_v22 = vadd.f32 %v2839_v49, %v2997_v48  ;;  %v804_v3 = vshll.u32 %v2950_v16, %v802_v43  ;;  %v1151_v27 = vor.u32 8388608, %v1150_v53 }
 0x1c8   : > { %v2234_v45 = vadd.s32 4294967294, %v902_v8  ;;  %v1101_v13 = vadd.s32 536870912, %v1100_v46  ;;  %v809_v6 = vshll.u32 %v808_v40, 23  ;;  %v805_v11 = vshrl.u32 %v787_v54, %v803_v52 }
 0x1c9   : > { %3980 = vst [vmem:[#allocation4_spill] sm:$0xff] %v3005_v22  ;;  %v1161_v58 = vshrl.u32 %v3922_v20, %v1158_v47  ;;  %v1164_v4 = vshrl.u32 %v3920_v5, %v1158_v47  ;;  %v1167_v28 = vshrl.u32 %v3929_v21, %v1158_v47  ;;  %v1156_v19 = vshrl.u32 %v1155_v32, 5 }
 0x1ca   : > { %vm2235_vm13 = vcmp.lt.s32.totalorder %v2234_v45, 0  ;;  %v3007_v63 = vshrl.u32 %v1101_v13, 30  ;;  %v1160_v25 = vshll.u32 %v3925_v17, %v1157_v39  ;;  %v1163_v49 = vshll.u32 %v3922_v20, %v1157_v39 }
 0x1cb   : > { %v905_v61 = vsel %vm2235_vm13, 0, %v2234_v45  ;;  %v810_v9 = vor.u32 4788187, %v809_v6  ;;  %v1166_v30 = vshll.u32 %v3920_v5, %v1157_v39  ;;  %v1169_v1 = vshll.u32 %v3929_v21, %v1157_v39 }
 0x1cc   : > { %v910_v0 = vsub.s32 4294967266, %v905_v61  ;;  %v1103_v15 = vshll.u32 %v3007_v63, 30  ;;  %v1170_v34 = vshrl.u32 %v3935_v24, %v1158_v47  ;;  %v1162_v43 = vor.u32 %v1161_v58, %v1160_v25 }
 0x1cd   : > { %v1165_v38 = vor.u32 %v1164_v4, %v1163_v49  ;;  %v1168_v40 = vor.u32 %v1167_v28, %v1166_v30  ;;  %v1172_v32 = vshll.u32 %v3935_v24, %v1157_v39  ;;  %v1173_v45 = vshrl.u32 %v3933_v26, %v1158_v47 }
 0x1ce   : > { %v911_v8 = vadd.s32 127, %v910_v0  ;;  %v3019_v16 = vsub.s32 %v1100_v46, %v1103_v15  ;;  %v1171_v42 = vor.u32 %v1170_v34, %v1169_v1  ;;  %v806_v52 = vor.u32 %v805_v11, %v804_v3 }
 0x1cf   : > { %v890_v53 = vadd.s32 %v2925_v50, %v2933_v60  ;;  %v1191_v54 = vshll.u32 %v1151_v27, 8  ;;  %v906_v6 = vsub.s32 32, %v905_v61  ;;  %v1159_v0 = vshrl.u32 %v3925_v17, %v1158_v47 }
 0x1d0   : > { %v1106_v13 = vsub.s32 0, %v3019_v16  ;;  %v1174_v46 = vor.u32 %v1173_v45, %v1172_v32  ;;  %vm1175_vm14 = vcmp.lt.s32.totalorder %v1156_v19, 1  ;;  %v811_v58 = vand.u32 2147483647, %v810_v9 }
 0x1d1   : > { %v912_v4 = vshll.u32 %v911_v8, 23  ;;  %vm1178_vm15 = vcmp.lt.s32.totalorder %v1156_v19, 4  ;;  %vm1177_vm3 = vcmp.lt.s32.totalorder %v1156_v19, 3  ;;  %v1183_v3 = vsel %vm1175_vm14, %v1162_v43, %v1165_v38 }
 0x1d2   : > { %v2241_v28 = vmin.u32 %v1106_v13, %v3019_v16  ;;  %v1180_v39 = vsel %vm1178_vm15, %v1168_v40, 2102212464  ;;  %v1184_v11 = vsel %vm1178_vm15, %v1171_v42, 920167782  ;;  %v907_v50 = vshll.u32 %v2971_v7, %v905_v61 }
 0x1d3   : > { %vm1176_vm7 = vcmp.lt.s32.totalorder %v1156_v19, 2  ;;  %v1185_v27 = vsel %vm1177_vm3, %v1168_v40, %v1184_v11  ;;  %v908_v15 = vshrl.u32 %v890_v53, %v906_v6  ;;  %v1187_v25 = vsel %vm1175_vm14, %v1165_v38, %v1168_v40 }
 0x1d4   : > { %v1108_v60 = vclz %v2241_v28  ;;  %v1186_v47 = vsel %vm1176_vm7, %v1183_v3, %v1185_v27  ;;  %v1188_v49 = vsel %vm1178_vm15, %v1174_v46, 1326507024  ;;  %v1179_v30 = vsel %vm1175_vm14, %v1159_v0, %v1162_v43 }
 0x1d5   : > { %v1181_v1 = vsel %vm1177_vm3, %v1165_v38, %v1180_v39  ;;  %v1189_v34 = vsel %vm1177_vm3, %v1171_v42, %v1188_v49  ;;  %v913_v8 = vor.u32 4788187, %v912_v4  ;;  %v813_v53 = vcvt.s32.f32 %v806_v52 }
 0x1d6   : > { %v2242_v9 = vadd.s32 4294967294, %v1108_v60  ;;  %v1190_v32 = vsel %vm1176_vm7, %v1187_v25, %v1189_v34  ;;  %v3034_v45 = vmul.u32.u64.low %v1191_v54, %v1186_v47  ;;  %v3035_v13 = vmul.u32.u64.high %v1191_v54, %v1186_v47, %v3034_v45 }
 0x1d7   : > { %v3038_v7 = vmul.u32.u64.low %v1191_v54, %v1190_v32  ;;  %v3039_v61 = vmul.u32.u64.high %v1191_v54, %v1190_v32, %v3038_v7  ;;  %v909_v6 = vor.u32 %v908_v15, %v907_v50  ;;  %v1182_v40 = vsel %vm1176_vm7, %v1179_v30, %v1181_v1  ;;  %v3049_v50 = vpop.f32.mrb[3].mxu1 }
 0x1d8   : > { %v1352_v46 = vand.u32 2139095040, %v3005_v22  ;;  %vm2243_vm12 = vcmp.lt.s32.totalorder %v2242_v9, 0  ;;  %v814_v43 = vmul.f32 %v813_v53, %v811_v58  ;;  %v914_v38 = vand.u32 2147483647, %v913_v8 }
 0x1d9   : > { %v1201_v42 = vadd.s32 1, %v3035_v13  ;;  %v817_v4 = vsub.s32 4, %v2937_v14  ;;  %v1198_v28 = vmul.u32 %v1191_v54, %v1182_v40  ;;  %vm1200_vm0 = vc.u32 %v3039_v61, %v3034_v45 }
 0x1da   : > { %v1353_v0 = vshrl.u32 %v1352_v46, 23  ;;  %v3916_v39 = vand.u32 2147483647, %v3005_v22  ;;  %v916_v52 = vcvt.s32.f32 %v909_v6  ;;  %v1111_v3 = vsel %vm2243_vm12, 0, %v2242_v9 }
 0x1db   : > { %v1202_v19 = vsel %vm1200_vm0, %v1201_v42, %v3035_v13  ;;  %v3053_v60 = vadd.f32 %v2845_v56, %v2997_v48  ;;  %vm733_vm1 = vcmp.lt.s32.totalorder %v2822_v29, 0  ;;  %v815_v54 = vxor.u32 2147483648, %v814_v43 }
 0x1dc   : > { %v2252_v11 = vadd.s32 4294967169, %v1353_v0  ;;  %v1203_v58 = vadd.s32 %v1202_v19, %v1198_v28  ;;  %v3056_v27 = vmul.f32 %v916_v52, %v914_v38  ;;  %v1112_v47 = vsub.s32 32, %v1111_v3 }
 0x1dd   : > { %v1116_v25 = vsub.s32 4294967266, %v1111_v3  ;;  %v1356_v9 = vand.u32 8388607, %v3916_v39  ;;  %v3061_v30 = vsel %vm733_vm1, %v817_v4, %v2937_v14  ;;  %v1096_v56 = vadd.s32 %v2978_v10, %v2985_v18 }
 0x1de   : > { %v1359_v15 = vadd.s32 1, %v2252_v11  ;;  %v1204_v49 = vadd.s32 536870912, %v1203_v58  ;;  %3981 = vst [vmem:[#allocation5_spill] sm:$0xff] %v3061_v30  ;;  %v1455_v8 = vand.u32 2139095040, %v3053_v60  ;;  %v816_v32 = vsel %vm733_vm1, %v815_v54, %v814_v43 }
 0x1df   : > { %v918_v13 = vxor.u32 2147483648, %v3056_v27  ;;  %v1113_v7 = vshll.u32 %v3019_v16, %v1111_v3  ;;  %v1114_v6 = vshrl.u32 %v1096_v56, %v1112_v47  ;;  %v3070_v40 = vadd.s32 127, %v1116_v25 }
 0x1e0   : > { %vm1360_vm2 = vcmp.gt.s32.totalorder %v1359_v15, 0  ;;  %v3065_v1 = vshrl.u32 %v1204_v49, 30  ;;  %v1357_v46 = vor.u32 8388608, %v1356_v9  ;;  %v1456_v4 = vshrl.u32 %v1455_v8, 23 }
 0x1e1   : > { %v1361_v34 = vsel %vm1360_vm2, %v1359_v15, 0  ;;  %v3083_v11 = vor.u32 %v1114_v6, %v1113_v7  ;;  %vm3090_vm4 = vcmp.le.f32.partialorder %v731_v33, 0.7853982  ;;  %v3982_v47 = vmov 0 }
 0x1e2   : > { %v1363_v53 = vand.u32 31, %v1361_v34  ;;  %v1206_v14 = vshll.u32 %v3065_v1, 30  ;;  %v1362_v28 = vshrl.u32 %v1361_v34, 5  ;;  %v3983_v47 = vsel %vm3090_vm4, 4294967295, %v3982_v47 }
 0x1e3   : > { %3984 = vst [vmem:[#allocation6_spill] sm:$0xff] %v3983_v47  ;;  %v1118_v25 = vshll.u32 %v3070_v40, 23  ;;  %vm836_vm8 = vcmp.lt.s32.totalorder %v2825_v31, 0  ;;  %v3917_v33 = vand.u32 2147483647, %v3053_v60  ;;  %vm1042_vm15 = vcmp.lt.s32.totalorder %v2830_v35, 0 }
 0x1e4   : > { %v1364_v38 = vsub.s32 32, %v1363_v53  ;;  %v1366_v10 = vshll.u32 %v3925_v17, %v1363_v53  ;;  %v1369_v18 = vshll.u32 %v3922_v20, %v1363_v53  ;;  %v1372_v42 = vshll.u32 %v3920_v5, %v1363_v53 }
 0x1e5   : > { %v3076_v0 = vsub.s32 %v1203_v58, %v1206_v14  ;;  %v1375_v43 = vshll.u32 %v3929_v21, %v1363_v53  ;;  %v1378_v16 = vshll.u32 %v3935_v24, %v1363_v53  ;;  %v1397_v53 = vshll.u32 %v1357_v46, 8 }
 0x1e6   : > { %v1367_v52 = vshrl.u32 %v3922_v20, %v1364_v38  ;;  %v1370_v3 = vshrl.u32 %v3920_v5, %v1364_v38  ;;  %v1373_v19 = vshrl.u32 %v3929_v21, %v1364_v38  ;;  %v1376_v15 = vshrl.u32 %v3935_v24, %v1364_v38 }
 0x1e7   : > { %v1209_v54 = vsub.s32 0, %v3076_v0  ;;  %v1379_v58 = vshrl.u32 %v3933_v26, %v1364_v38  ;;  %v1365_v6 = vshrl.u32 %v3925_v17, %v1364_v38  ;;  %vm1381_vm9 = vcmp.lt.s32.totalorder %v1362_v28, 1 }
 0x1e8   : > { %v1368_v49 = vor.u32 %v1367_v52, %v1366_v10  ;;  %v1371_v9 = vor.u32 %v1370_v3, %v1369_v18  ;;  %v1374_v56 = vor.u32 %v1373_v19, %v1372_v42  ;;  %v1377_v8 = vor.u32 %v1376_v15, %v1375_v43 }
 0x1e9   : > { %v2245_v34 = vmin.u32 %v1209_v54, %v3076_v0  ;;  %v1380_v7 = vor.u32 %v1379_v58, %v1378_v16  ;;  %v2256_v14 = vadd.s32 4294967169, %v1456_v4  ;;  %vm1383_vm5 = vcmp.lt.s32.totalorder %v1362_v28, 3 }
 0x1ea   : > { %vm1384_vm6 = vcmp.lt.s32.totalorder %v1362_v28, 4  ;;  %v1389_v40 = vsel %vm1381_vm9, %v1368_v49, %v1371_v9  ;;  %v1393_v42 = vsel %vm1381_vm9, %v1371_v9, %v1374_v56  ;;  %vm1382_vm10 = vcmp.lt.s32.totalorder %v1362_v28, 2 }
 0x1eb   : > { %v1211_v39 = vclz %v2245_v34  ;;  %v1386_v10 = vsel %vm1384_vm6, %v1374_v56, 2102212464  ;;  %v1390_v18 = vsel %vm1384_vm6, %v1377_v8, 920167782  ;;  %v1394_v52 = vsel %vm1384_vm6, %v1380_v7, 1326507024 }
 0x1ec   : > { %v1391_v43 = vsel %vm1383_vm5, %v1374_v56, %v1390_v18  ;;  %v1395_v46 = vsel %vm1383_vm5, %v1377_v8, %v1394_v52  ;;  %v1385_v16 = vsel %vm1381_vm9, %v1365_v6, %v1368_v49  ;;  %v1462_v4 = vadd.s32 1, %v2256_v14  ;;  %v3113_v56 = vpop.permute.xlu0 %600 }
 0x1ed   : > { %v2246_v3 = vadd.s32 4294967294, %v1211_v39  ;;  %v1392_v38 = vsel %vm1382_vm10, %v1389_v40, %v1391_v43  ;;  %v1396_v19 = vsel %vm1382_vm10, %v1393_v42, %v1395_v46  ;;  %v1387_v54 = vsel %vm1383_vm5, %v1371_v9, %v1386_v10 }
 0x1ee   : > { %v3104_v15 = vmul.u32.u64.low %v1397_v53, %v1396_v19  ;;  %v3105_v58 = vmul.u32.u64.high %v1397_v53, %v1396_v19, %v3104_v15  ;;  %v3109_v39 = vmul.u32.u64.low %v1397_v53, %v1392_v38  ;;  %v3110_v7 = vmul.u32.u64.high %v1397_v53, %v1392_v38, %v3109_v39 }
 0x1ef   : > { %vm2247_vm11 = vcmp.lt.s32.totalorder %v2246_v3, 0  ;;  %vm1463_vm13 = vcmp.gt.s32.totalorder %v1462_v4, 0  ;;  %v3118_v49 = vsel %vm3090_vm4, %v2822_v29, %v816_v32  ;;  %v1126_v8 = vsub.s32 4, %v3007_v63 }
 0x1f0   : > { %v3107_v34 = vsel %vm2247_vm11, 0, %v2246_v3  ;;  %v1464_v6 = vsel %vm1463_vm13, %v1462_v4, 0  ;;  %v3127_v14 = vsel %vm836_vm8, %v918_v13, %v3056_v27  ;;  %v1199_v40 = vadd.s32 %v3034_v45, %v3039_v61 }
 0x1f1   : > { %v1219_v9 = vsub.s32 4294967266, %v3107_v34  ;;  %v1388_v10 = vsel %vm1382_vm10, %v1385_v16, %v1387_v54  ;;  %v1466_v18 = vand.u32 31, %v1464_v6  ;;  %v1119_v32 = vor.u32 4788187, %v1118_v25 }
 0x1f2   : > { %v1122_v42 = vcvt.s32.f32 %v3083_v11  ;;  %vm1406_vm14 = vc.u32 %v3105_v58, %v3109_v39  ;;  %v3137_v52 = vadd.f32 %v2847_v57, %v3113_v56  ;;  %v1407_v27 = vadd.s32 1, %v3110_v7 }
 0x1f3   : > { %v1220_v3 = vadd.s32 127, %v1219_v9  ;;  %v1459_v13 = vand.u32 8388607, %v3917_v33  ;;  %v1467_v45 = vsub.s32 32, %v1466_v18  ;;  %v1404_v61 = vmul.u32 %v1397_v53, %v1388_v10 }
 0x1f4   : > { %3985 = vst [vmem:[#allocation7_spill] sm:$0xff] %v3137_v52  ;;  %v1469_v28 = vshll.u32 %v3925_v17, %v1466_v18  ;;  %v1472_v25 = vshll.u32 %v3922_v20, %v1466_v18  ;;  %v1475_v11 = vshll.u32 %v3920_v5, %v1466_v18  ;;  %v1408_v43 = vsel %vm1406_vm14, %v1407_v27, %v3110_v7 }
 0x1f5   : > { %v1470_v46 = vshrl.u32 %v3922_v20, %v1467_v45  ;;  %v1473_v57 = vshrl.u32 %v3920_v5, %v1467_v45  ;;  %v1478_v16 = vshll.u32 %v3929_v21, %v1466_v18  ;;  %v1120_v38 = vand.u32 2147483647, %v1119_v32 }
 0x1f6   : > { %v1409_v19 = vadd.s32 %v1408_v43, %v1404_v61  ;;  %v1465_v4 = vshrl.u32 %v1464_v6, 5  ;;  %v1476_v54 = vshrl.u32 %v3929_v21, %v1467_v45  ;;  %v1215_v53 = vsub.s32 32, %v3107_v34 }
 0x1f7   : > { %v1221_v15 = vshll.u32 %v1220_v3, 23  ;;  %v1479_v9 = vshrl.u32 %v3935_v24, %v1467_v45  ;;  %v1481_v10 = vshll.u32 %v3935_v24, %v1466_v18  ;;  %v1471_v7 = vor.u32 %v1470_v46, %v1469_v28 }
 0x1f8   : > { %v1410_v33 = vadd.s32 536870912, %v1409_v19  ;;  %v1474_v27 = vor.u32 %v1473_v57, %v1472_v25  ;;  %v1482_v36 = vshrl.u32 %v3933_v26, %v1467_v45  ;;  %v1460_v51 = vor.u32 8388608, %v1459_v13 }
 0x1f9   : > { %v1477_v5 = vor.u32 %v1476_v54, %v1475_v11  ;;  %v1480_v20 = vor.u32 %v1479_v9, %v1478_v16  ;;  %v3924_v32 = vand.u32 2147483647, %v3137_v52  ;;  %vm1487_vm3 = vcmp.lt.s32.totalorder %v1465_v4, 4 }
 0x1fa   : > { %v3156_v6 = vshrl.u32 %v1410_v33, 30  ;;  %v1483_v61 = vor.u32 %v1482_v36, %v1481_v10  ;;  %v1661_v3 = vand.u32 2139095040, %v3137_v52  ;;  %v1216_v18 = vshll.u32 %v3076_v0, %v3107_v34 }
 0x1fb   : > { %v1217_v28 = vshrl.u32 %v1199_v40, %v1215_v53  ;;  %vm1484_vm7 = vcmp.lt.s32.totalorder %v1465_v4, 1  ;;  %v1493_v25 = vsel %vm1487_vm3, %v1480_v20, 920167782  ;;  %vm3164_vm12 = vcmp.le.f32.partialorder %v834_v37, 0.7853982 }
 0x1fc   : > { %v1222_v11 = vor.u32 4788187, %v1221_v15  ;;  %v1412_v33 = vshll.u32 %v3156_v6, 30  ;;  %vm1486_vm0 = vcmp.lt.s32.totalorder %v1465_v4, 3  ;;  %v1492_v36 = vsel %vm1484_vm7, %v1471_v7, %v1474_v27 }
 0x1fd   : > { %v1468_v43 = vshrl.u32 %v3925_v17, %v1467_v45  ;;  %v1494_v0 = vsel %vm1486_vm0, %v1477_v5, %v1493_v25  ;;  %v1496_v34 = vsel %vm1484_vm7, %v1474_v27, %v1477_v5  ;;  %v1497_v40 = vsel %vm1487_vm3, %v1483_v61, 1326507024 }
 0x1fe   : > { %v1123_v46 = vmul.f32 %v1122_v42, %v1120_v38  ;;  %v3174_v57 = vsub.s32 %v1409_v19, %v1412_v33  ;;  %vm1485_vm1 = vcmp.lt.s32.totalorder %v1465_v4, 2  ;;  %v1489_v37 = vsel %vm1487_vm3, %v1477_v5, 2102212464 }
 0x1ff   : > { %v1218_v16 = vor.u32 %v1217_v28, %v1216_v18  ;;  %v1495_v54 = vsel %vm1485_vm1, %v1492_v36, %v1494_v0  ;;  %v1498_v53 = vsel %vm1486_vm0, %v1480_v20, %v1497_v40  ;;  %v1500_v15 = vshll.u32 %v1460_v51, 8 }
 0x200   : > { %v1223_v9 = vand.u32 2147483647, %v1222_v11  ;;  %v1415_v45 = vsub.s32 0, %v3174_v57  ;;  %v1499_v10 = vsel %vm1485_vm1, %v1496_v34, %v1498_v53  ;;  %v1662_v25 = vshrl.u32 %v1661_v3, 23 }
 0x201   : > { %v1488_v61 = vsel %vm1484_vm7, %v1468_v43, %v1471_v7  ;;  %v1490_v42 = vsel %vm1486_vm0, %v1474_v27, %v1489_v37  ;;  %v3183_v38 = vmul.u32.u64.low %v1500_v15, %v1499_v10  ;;  %v3184_v19 = vmul.u32.u64.high %v1500_v15, %v1499_v10, %v3183_v38 }
 0x202   : > { %v2253_v5 = vmin.u32 %v1415_v45, %v3174_v57  ;;  %v3187_v18 = vmul.u32.u64.low %v1500_v15, %v1495_v54  ;;  %v3188_v28 = vmul.u32.u64.high %v1500_v15, %v1495_v54, %v3187_v18  ;;  %v2264_v51 = vadd.s32 4294967169, %v1662_v25 }
 0x203   : > { %v3199_v7 = vsel %vm1042_vm15, %v1126_v8, %v3007_v63  ;;  %v1225_v27 = vcvt.s32.f32 %v1218_v16  ;;  %v1665_v3 = vand.u32 8388607, %v3924_v32  ;;  %2447 = vcosq.f32 %v3118_v49 }
 0x204   : > { %3988 = vst [vmem:[#allocation8_spill] sm:$0xff] %v3199_v7  ;;  %v1417_v11 = vclz %v2253_v5  ;;  %v1491_v33 = vsel %vm1485_vm1, %v1488_v61, %v1490_v42  ;;  %v1668_v36 = vadd.s32 1, %v2264_v51  ;;  %v3209_v43 = vsel %vm3164_vm12, %v2825_v31, %v3127_v14 }
 0x205   : > { %v1124_v0 = vxor.u32 2147483648, %v1123_v46  ;;  %v3211_v34 = vmul.f32 %v1225_v27, %v1223_v9  ;;  %vm1509_vm2 = vc.u32 %v3184_v19, %v3187_v18  ;;  %v1510_v8 = vadd.s32 1, %v3188_v28 }
 0x206   : > { %v2254_v63 = vadd.s32 4294967294, %v1417_v11  ;;  %vm1669_vm9 = vcmp.gt.s32.totalorder %v1668_v36, 0  ;;  %v3218_v4 = vadd.f32 %v2851_v2, %v2997_v48  ;;  %2449 = vsinq.f32 %v3118_v49 }
 0x207   : > { %v1507_v40 = vmul.u32 %v1500_v15, %v1491_v33  ;;  %v1666_v37 = vor.u32 8388608, %v1665_v3  ;;  %v1670_v14 = vsel %vm1669_vm9, %v1668_v36, 0  ;;  %2451 = vcosq.f32 %v3209_v43 }
 0x208   : > { %vm2255_vm5 = vcmp.lt.s32.totalorder %v2254_v63, 0  ;;  %v1511_v16 = vsel %vm1509_vm2, %v1510_v8, %v3188_v28  ;;  %v1672_v54 = vand.u32 31, %v1670_v14  ;;  %v3225_v53 = vsel %vm1042_vm15, %v1124_v0, %v1123_v46 }
 0x209   : > { %v1405_v9 = vadd.s32 %v3109_v39, %v3105_v58  ;;  %v1420_v2 = vsel %vm2255_vm5, 0, %v2254_v63  ;;  %v1512_v48 = vadd.s32 %v1511_v16, %v1507_v40  ;;  %v1227_v49 = vxor.u32 2147483648, %v3211_v34 }
 0x20a   : > { %v1425_v15 = vsub.s32 4294967266, %v1420_v2  ;;  %v1673_v45 = vsub.s32 32, %v1672_v54  ;;  %v1558_v10 = vand.u32 2139095040, %v3218_v4  ;;  %v1421_v25 = vsub.s32 32, %v1420_v2 }
 0x20b   : > { %v1513_v61 = vadd.s32 536870912, %v1512_v48  ;;  %v3231_v42 = vshrl.u32 %v1670_v14, 5  ;;  %v3233_v38 = vshll.u32 %v1666_v37, 8  ;;  %v1675_v46 = vshll.u32 %v3925_v17, %v1672_v54 }
 0x20c   : > { %v1426_v5 = vadd.s32 127, %v1425_v15  ;;  %v3989_v28 = vmov 2475754826   ;;  %v3991_v27 = vmov 2131351028   ;;  %v1682_v33 = vshrl.u32 %v3929_v21, %v1673_v45 }
 0x20d   : > { %v1676_v51 = vshrl.u32 %v3989_v28, %v1673_v45  ;;  %v1678_v58 = vshll.u32 %v3989_v28, %v1672_v54  ;;  %v3238_v39 = vshrl.u32 %v1513_v61, 30  ;;  %v1679_v3 = vshrl.u32 %v3991_v27, %v1673_v45  ;;  %v3243_v36 = vpop.eup %2447 }
 0x20e   : > { %v1681_v11 = vshll.u32 %v3991_v27, %v1672_v54  ;;  %3992 = vst [vmem:[#allocation10_spill] sm:$0xff] %v3243_v36  ;;  %v1427_v0 = vshll.u32 %v1426_v5, 23  ;;  %v1684_v63 = vshll.u32 %v3929_v21, %v1672_v54  ;;  %v1685_v8 = vshrl.u32 %v3935_v24, %v1673_v45 }
 0x20f   : > { %3990 = vst [vmem:[#allocation9_spill] sm:$0xff] %v3238_v39  ;;  %v1559_v40 = vshrl.u32 %v1558_v10, 23  ;;  %vm1145_vm6 = vcmp.lt.s32.totalorder %v2843_v55, 0  ;;  %v1515_v37 = vshll.u32 %v3238_v39, 30  ;;  %v1677_v14 = vor.u32 %v1676_v51, %v1675_v46 }
 0x210   : > { %v1680_v16 = vor.u32 %v1679_v3, %v1678_v58  ;;  %v1683_v15 = vor.u32 %v1682_v33, %v1681_v11  ;;  %v1423_v61 = vshrl.u32 %v1405_v9, %v1421_v25  ;;  %v1686_v20 = vor.u32 %v1685_v8, %v1684_v63  ;;  %v3251_v29 = vpop.eup %2449 }
 0x211   : > { %v1687_v32 = vshll.u32 %v3935_v24, %v1672_v54  ;;  %v1688_v17 = vshrl.u32 %v3933_v26, %v1673_v45  ;;  %3993 = vst [vmem:[#allocation11_spill] sm:$0xff] %v3251_v29  ;;  %v3994_v5 = vand.u32 2147483647, %v2830_v35  ;;  %v3995_v21 = vmov 0  ;;  %v3263_v25 = vpop.eup %2451 }
 0x212   : > { %v1422_v10 = vshll.u32 %v3174_v57, %v1420_v2  ;;  %v1428_v39 = vor.u32 4788187, %v1427_v0  ;;  %v3260_v46 = vsub.s32 %v1512_v48, %v1515_v37  ;;  %v3998_v51 = vmov 683565275  }
 0x213   : > { %vm3255_vm10 = vcmp.le.f32.partialorder %v3994_v5, 0.7853982  ;;  %v1674_v9 = vshrl.u32 %v3998_v51, %v1673_v45  ;;  %v3999_v54 = vand.u32 2147483647, %v2843_v55  ;;  %v4000_v58 = vmov 0 }
 0x214   : > { %v3996_v21 = vsel %vm3255_vm10, 4294967295, %v3995_v21  ;;  %v1689_v3 = vor.u32 %v1688_v17, %v1687_v32  ;;  %vm1690_vm13 = vcmp.lt.s32.totalorder %v3231_v42, 1  ;;  %vm1692_vm14 = vcmp.lt.s32.totalorder %v3231_v42, 3 }
 0x215   : > { %3997 = vst [vmem:[#allocation12_spill] sm:$0xff] %v3996_v21  ;;  %vm3267_vm11 = vcmp.le.f32.partialorder %v3999_v54, 0.7853982  ;;  %vm1693_vm15 = vcmp.lt.s32.totalorder %v3231_v42, 4  ;;  %v1518_v57 = vsub.s32 0, %v3260_v46  ;;  %v1698_v48 = vsel %vm1690_vm13, %v1677_v14, %v1680_v16 }
 0x216   : > { %v4001_v58 = vsel %vm3267_vm11, 4294967295, %v4000_v58  ;;  %v1695_v2 = vsel %vm1693_vm15, %v1683_v15, 2102212464  ;;  %v1699_v45 = vsel %vm1693_vm15, %v1686_v20, 920167782  ;;  %v1424_v11 = vor.u32 %v1423_v61, %v1422_v10 }
 0x217   : > { %4002 = vst [vmem:[#allocation13_spill] sm:$0xff] %v4001_v58  ;;  %vm1691_vm3 = vcmp.lt.s32.totalorder %v3231_v42, 2  ;;  %v1700_v33 = vsel %vm1692_vm14, %v1683_v15, %v1699_v45  ;;  %v1702_v0 = vsel %vm1690_vm13, %v1680_v16, %v1683_v15  ;;  %v2257_v63 = vmin.u32 %v1518_v57, %v3260_v46 }
 0x218   : > { %v1694_v8 = vsel %vm1690_vm13, %v1674_v9, %v1677_v14  ;;  %v1701_v17 = vsel %vm1691_vm3, %v1698_v48, %v1700_v33  ;;  %v1703_v32 = vsel %vm1693_vm15, %v1689_v3, 1326507024  ;;  %v1696_v37 = vsel %vm1692_vm14, %v1680_v16, %v1695_v2 }
 0x219   : > { %v1704_v5 = vsel %vm1692_vm14, %v1686_v20, %v1703_v32  ;;  %v3280_v54 = vmul.u32.u64.low %v3233_v38, %v1701_v17  ;;  %v3281_v26 = vmul.u32.u64.high %v3233_v38, %v1701_v17, %v3280_v54  ;;  %v1429_v24 = vand.u32 2147483647, %v1428_v39 }
 0x21a   : > { %v1520_v61 = vclz %v2257_v63  ;;  %v1705_v10 = vsel %vm1691_vm3, %v1702_v0, %v1704_v5  ;;  %v2260_v15 = vadd.s32 4294967169, %v1559_v40  ;;  %v1228_v14 = vsel %vm1145_vm6, %v1227_v49, %v3211_v34 }
 0x21b   : > { %v3290_v9 = vmul.u32.u64.low %v3233_v38, %v1705_v10  ;;  %v3291_v3 = vmul.u32.u64.high %v3233_v38, %v1705_v10, %v3290_v9  ;;  %v3937_v20 = vand.u32 2147483647, %v3218_v4  ;;  %v1431_v16 = vcvt.s32.f32 %v1424_v11 }
 0x21c   : > { %v2258_v57 = vadd.s32 4294967294, %v1520_v61  ;;  %v1697_v39 = vsel %vm1691_vm3, %v1694_v8, %v1696_v37  ;;  %v1565_v2 = vadd.s32 1, %v2260_v15  ;;  %2453 = vsinq.f32 %v3209_v43 }
 0x21d   : > { %v1128_v40 = vsel %vm3255_vm10, %v2830_v35, %v3225_v53  ;;  %v1435_v34 = vsub.s32 4, %v3156_v6  ;;  %v1716_v49 = vadd.s32 1, %v3281_v26  ;;  %v3306_v48 = vsel %vm3267_vm11, %v2843_v55, %v1228_v14 }
 0x21e   : > { %v1432_v45 = vmul.f32 %v1431_v16, %v1429_v24  ;;  %vm2259_vm7 = vcmp.lt.s32.totalorder %v2258_v57, 0  ;;  %vm1566_vm0 = vcmp.gt.s32.totalorder %v1565_v2, 0  ;;  %v1713_v43 = vmul.u32 %v3233_v38, %v1697_v39 }
 0x21f   : > { %v3308_v42 = vsel %vm2259_vm7, 0, %v2258_v57  ;;  %vm1715_vm1 = vc.u32 %v3291_v3, %v3280_v54  ;;  %v1567_v53 = vsel %vm1566_vm0, %v1565_v2, 0  ;;  %2455 = vcosq.f32 %v1128_v40 }
 0x220   : > { %v1528_v11 = vsub.s32 4294967266, %v3308_v42  ;;  %v1717_v33 = vsel %vm1715_vm1, %v1716_v49, %v3281_v26  ;;  %v1562_v0 = vand.u32 8388607, %v3937_v20  ;;  %2457 = vsinq.f32 %v1128_v40 }
 0x221   : > { %vm1351_vm2 = vcmp.lt.s32.totalorder %v3005_v22, 0  ;;  %v1718_v24 = vadd.s32 %v1717_v33, %v1713_v43  ;;  %v1569_v63 = vand.u32 31, %v1567_v53  ;;  %2459 = vcosq.f32 %v3306_v48 }
 0x222   : > { %v3325_v8 = vsel %vm1351_vm2, %v1435_v34, %v3156_v6  ;;  %v1529_v26 = vadd.s32 127, %v1528_v11  ;;  %v1433_v17 = vxor.u32 2147483648, %v1432_v45  ;;  %v3329_v5 = vadd.f32 %v2865_v12, %v3113_v56 }
 0x223   : > { %v1719_v32 = vadd.s32 536870912, %v1718_v24  ;;  %v1570_v37 = vsub.s32 32, %v1569_v63  ;;  %v1508_v61 = vadd.s32 %v3187_v18, %v3184_v19  ;;  %v1524_v10 = vsub.s32 32, %v3308_v42 }
 0x224   : > { %v1563_v15 = vor.u32 8388608, %v1562_v0  ;;  %v1572_v14 = vshll.u32 %v3998_v51, %v1569_v63  ;;  %v1575_v16 = vshll.u32 %v3989_v28, %v1569_v63  ;;  %v1530_v39 = vshll.u32 %v1529_v26, 23 }
 0x225   : > { %v3335_v9 = vshrl.u32 %v1719_v32, 30  ;;  %v1573_v6 = vshrl.u32 %v3989_v28, %v1570_v37  ;;  %v1576_v57 = vshrl.u32 %v3991_v27, %v1570_v37  ;;  %v4003_v2 = vmov 2102212464  }
 0x226   : > { %v1579_v12 = vshrl.u32 %v4003_v2, %v1570_v37  ;;  %v1581_v40 = vshll.u32 %v4003_v2, %v1569_v63  ;;  %v4004_v34 = vmov 920167782   ;;  %v3343_v18 = vpop.eup %2453  ;;  %v1434_v49 = vsel %vm1351_vm2, %v1433_v17, %v1432_v45 }
 0x227   : > { %v1582_v19 = vshrl.u32 %v4004_v34, %v1570_v37  ;;  %v1721_v43 = vshll.u32 %v3335_v9, 30  ;;  %v1568_v11 = vshrl.u32 %v1567_v53, 5  ;;  %v1578_v33 = vshll.u32 %v3991_v27, %v1569_v63 }
 0x228   : > { %v1574_v0 = vor.u32 %v1573_v6, %v1572_v14  ;;  %v1577_v32 = vor.u32 %v1576_v57, %v1575_v16  ;;  %v1764_v26 = vand.u32 2139095040, %v3329_v5  ;;  %v4005_v20 = vand.u32 2147483647, %v3005_v22 }
 0x229   : > { %v1583_v38 = vor.u32 %v1582_v19, %v1581_v40  ;;  %v3356_v7 = vsub.s32 %v1718_v24, %v1721_v43  ;;  %v1580_v21 = vor.u32 %v1579_v12, %v1578_v33  ;;  %v1584_v45 = vshll.u32 %v4004_v34, %v1569_v63  ;;  %v3360_v36 = vpop.eup %2455 }
 0x22a   : > { %vm3352_vm9 = vcmp.le.f32.partialorder %v4005_v20, 0.7853982  ;;  %v4008_v17 = vmov 1326507024   ;;  %4009 = vst [vmem:[#allocation14_spill] sm:$0xff] %v3360_v36  ;;  %v1525_v14 = vshll.u32 %v3260_v46, %v3308_v42  ;;  %v1526_v6 = vshrl.u32 %v1508_v61, %v1524_v10  ;;  %v3365_v20 = vpop.eup %2457 }
 0x22b   : > { %v1585_v53 = vshrl.u32 %v4008_v17, %v1570_v37  ;;  %v1531_v16 = vor.u32 4788187, %v1530_v39  ;;  %v1571_v57 = vshrl.u32 %v3998_v51, %v1570_v37  ;;  %4010 = vst [vmem:[#allocation15_spill] sm:$0xff] %v3365_v20  ;;  %v1724_v40 = vsub.s32 0, %v3356_v7  ;;  %v3368_v12 = vpop.eup %2459 }
 0x22c   : > { %vm1587_vm5 = vcmp.lt.s32.totalorder %v1568_v11, 1  ;;  %vm1590_vm13 = vcmp.lt.s32.totalorder %v1568_v11, 4  ;;  %4011 = vst [vmem:[#allocation16_spill] sm:$0xff] %v3368_v12  ;;  %vm1588_vm14 = vcmp.lt.s32.totalorder %v1568_v11, 2  ;;  %vm1589_vm15 = vcmp.lt.s32.totalorder %v1568_v11, 3 }
 0x22d   : > { %v1586_v24 = vor.u32 %v1585_v53, %v1584_v45  ;;  %v1595_v63 = vsel %vm1587_vm5, %v1574_v0, %v1577_v32  ;;  %v1596_v19 = vsel %vm1590_vm13, %v1583_v38, 920167782  ;;  %v2265_v46 = vmin.u32 %v1724_v40, %v3356_v7 }
 0x22e   : > { %v1592_v42 = vsel %vm1590_vm13, %v1580_v21, 2102212464  ;;  %v1597_v61 = vsel %vm1589_vm15, %v1580_v21, %v1596_v19  ;;  %v1599_v37 = vsel %vm1587_vm5, %v1577_v32, %v1580_v21  ;;  %v1603_v43 = vshll.u32 %v1563_v15, 8 }
 0x22f   : > { %v1598_v10 = vsel %vm1588_vm14, %v1595_v63, %v1597_v61  ;;  %v1600_v39 = vsel %vm1590_vm13, %v1586_v24, 1326507024  ;;  %v1765_v33 = vshrl.u32 %v1764_v26, 23  ;;  %v1527_v45 = vor.u32 %v1526_v6, %v1525_v14 }
 0x230   : > { %v1726_v53 = vclz %v2265_v46  ;;  %v1591_v36 = vsel %vm1587_vm5, %v1571_v57, %v1574_v0  ;;  %v1601_v20 = vsel %vm1589_vm15, %v1583_v38, %v1600_v39  ;;  %v1593_v29 = vsel %vm1589_vm15, %v1577_v32, %v1592_v42 }
 0x231   : > { %v1602_v30 = vsel %vm1588_vm14, %v1599_v37, %v1601_v20  ;;  %v3376_v47 = vmul.u32.u64.low %v1603_v43, %v1598_v10  ;;  %v3377_v12 = vmul.u32.u64.high %v1603_v43, %v1598_v10, %v3376_v47  ;;  %v1532_v40 = vand.u32 2147483647, %v1531_v16 }
 0x232   : > { %v2266_v19 = vadd.s32 4294967294, %v1726_v53  ;;  %v3380_v21 = vmul.u32.u64.low %v1603_v43, %v1602_v30  ;;  %v3381_v58 = vmul.u32.u64.high %v1603_v43, %v1602_v30, %v3380_v21  ;;  %2461 = vsinq.f32 %v3306_v48 }
 0x233   : > { %v3387_v15 = vsel %vm3352_vm9, %v3005_v22, %v1434_v49  ;;  %v2268_v38 = vadd.s32 4294967169, %v1765_v33  ;;  %v3391_v0 = vadd.f32 %v2941_v62, %v2817_v23  ;;  %v1534_v32 = vcvt.s32.f32 %v1527_v45 }
 0x234   : > { %vm2267_vm3 = vcmp.lt.s32.totalorder %v2266_v19, 0  ;;  %v1594_v26 = vsel %vm1588_vm14, %v1591_v36, %v1593_v29  ;;  %v3396_v30 = vadd.f32 %v2995_v59, %v3113_v56  ;;  %v1613_v48 = vadd.s32 1, %v3377_v12 }
 0x235   : > { %v1729_v14 = vsel %vm2267_vm3, 0, %v2266_v19  ;;  %v3951_v6 = vand.u32 2147483647, %v3329_v5  ;;  %v1771_v49 = vadd.s32 1, %v2268_v38  ;;  %2463 = vcosq.f32 %v3387_v15 }
 0x236   : > { %v1535_v16 = vmul.f32 %v1534_v32, %v1532_v40  ;;  %v1734_v57 = vsub.s32 4294967266, %v1729_v14  ;;  %v3403_v23 = vadd.f32 %v3049_v50, %v2819_v44  ;;  %v1730_v62 = vsub.s32 32, %v1729_v14 }
 0x237   : > { %v1610_v29 = vmul.u32 %v1603_v43, %v1594_v26  ;;  %vm1612_vm7 = vc.u32 %v3381_v58, %v3376_v47  ;;  %vm1772_vm0 = vcmp.gt.s32.totalorder %v1771_v49, 0  ;;  %vm3959_vm1 = vcmp.lt.s32.totalorder %v3053_v60, 0 }
 0x238   : > { %v1735_v59 = vadd.s32 127, %v1734_v57  ;;  %v1614_v56 = vsel %vm1612_vm7, %v1613_v48, %v3377_v12  ;;  %v1773_v36 = vsel %vm1772_vm0, %v1771_v49, 0  ;;  %v940_v11 = vand.u32 2139095040, %v3391_v0 }
 0x239   : > { %v1714_v20 = vadd.s32 %v3280_v54, %v3291_v3  ;;  %v1615_v24 = vadd.s32 %v1614_v56, %v1610_v29  ;;  %v1768_v44 = vand.u32 8388607, %v3951_v6  ;;  %v1775_v50 = vand.u32 31, %v1773_v36 }
 0x23a   : > { %v1536_v63 = vxor.u32 2147483648, %v1535_v16  ;;  %v1736_v46 = vshll.u32 %v1735_v59, 23  ;;  %v1744_v42 = vsub.s32 4, %v3335_v9  ;;  %v3950_v61 = vand.u32 2147483647, %v3391_v0 }
 0x23b   : > { %v1731_v37 = vshll.u32 %v3356_v7, %v1729_v14  ;;  %v1732_v12 = vshrl.u32 %v1714_v20, %v1730_v62  ;;  %v1616_v10 = vadd.s32 536870912, %v1615_v24  ;;  %v1776_v39 = vsub.s32 32, %v1775_v50 }
 0x23c   : > { %v3417_v43 = vshrl.u32 %v1773_v36, 5  ;;  %v1778_v54 = vshll.u32 %v3998_v51, %v1775_v50  ;;  %v1781_v3 = vshll.u32 %v3989_v28, %v1775_v50  ;;  %v941_v33 = vshrl.u32 %v940_v11, 23  ;;  %v3421_v45 = vpop.eup %2461 }
 0x23d   : > { %v1737_v53 = vor.u32 4788187, %v1736_v46  ;;  %v3423_v40 = vshrl.u32 %v1616_v10, 30  ;;  %v1779_v19 = vshrl.u32 %v3989_v28, %v1776_v39  ;;  %v1782_v21 = vshrl.u32 %v3991_v27, %v1776_v39 }
 0x23e   : > { %v1784_v7 = vshll.u32 %v3991_v27, %v1775_v50  ;;  %v1785_v38 = vshrl.u32 %v4003_v2, %v1776_v39  ;;  %v1787_v32 = vshll.u32 %v4003_v2, %v1775_v50  ;;  %v1788_v26 = vshrl.u32 %v4004_v34, %v1776_v39 }
 0x23f   : > { %4012 = vst [vmem:[#allocation17_spill] sm:$0xff] %v3423_v40  ;;  %v1733_v14 = vor.u32 %v1732_v12, %v1731_v37  ;;  %v1618_v48 = vshll.u32 %v3423_v40, 30  ;;  %v1780_v49 = vor.u32 %v1779_v19, %v1778_v54  ;;  %v1783_v57 = vor.u32 %v1782_v21, %v1781_v3  ;;  %v3432_v62 = vpop.eup %2463 }
 0x240   : > { %v4013_v29 = vand.u32 2147483647, %v3053_v60  ;;  %v1786_v56 = vor.u32 %v1785_v38, %v1784_v7  ;;  %v1789_v36 = vor.u32 %v1788_v26, %v1787_v32  ;;  %v1790_v11 = vshll.u32 %v4004_v34, %v1775_v50 }
 0x241   : > { %v1791_v20 = vshrl.u32 %v4008_v17, %v1776_v39  ;;  %v1537_v46 = vsel %vm3959_vm1, %v1536_v63, %v1535_v16  ;;  %vm1660_vm5 = vcmp.lt.s32.totalorder %v3137_v52, 0  ;;  %v3445_v37 = vsub.s32 %v1615_v24, %v1618_v48 }
 0x242   : > { %vm3436_vm2 = vcmp.le.f32.partialorder %v4013_v29, 0.7853982  ;;  %v1769_v12 = vor.u32 8388608, %v1768_v44  ;;  %v944_v10 = vand.u32 8388607, %v3950_v61  ;;  %vm1793_vm13 = vcmp.lt.s32.totalorder %v3417_v43, 1 }
 0x243   : > { %v1738_v54 = vand.u32 2147483647, %v1737_v53  ;;  %v1792_v3 = vor.u32 %v1791_v20, %v1790_v11  ;;  %v2236_v19 = vadd.s32 4294967169, %v941_v33  ;;  %v1740_v21 = vcvt.s32.f32 %v1733_v14 }
 0x244   : > { %v1621_v50 = vsub.s32 0, %v3445_v37  ;;  %vm1796_vm14 = vcmp.lt.s32.totalorder %v3417_v43, 4  ;;  %v1801_v16 = vsel %vm1793_vm13, %v1780_v49, %v1783_v57  ;;  %v1777_v24 = vshrl.u32 %v3998_v51, %v1776_v39 }
 0x245   : > { %vm1795_vm15 = vcmp.lt.s32.totalorder %v3417_v43, 3  ;;  %v1798_v44 = vsel %vm1796_vm14, %v1786_v56, 2102212464  ;;  %v1802_v63 = vsel %vm1796_vm14, %v1789_v36, 920167782  ;;  %vm1794_vm3 = vcmp.lt.s32.totalorder %v3417_v43, 2 }
 0x246   : > { %v2261_v53 = vmin.u32 %v1621_v50, %v3445_v37  ;;  %v1803_v7 = vsel %vm1795_vm15, %v1786_v56, %v1802_v63  ;;  %v1805_v33 = vsel %vm1793_vm13, %v1783_v57, %v1786_v56  ;;  %v1741_v38 = vmul.f32 %v1740_v21, %v1738_v54 }
 0x247   : > { %v1804_v32 = vsel %vm1794_vm3, %v1801_v16, %v1803_v7  ;;  %v1806_v26 = vsel %vm1796_vm14, %v1792_v3, 1326507024  ;;  %v1809_v14 = vshll.u32 %v1769_v12, 8  ;;  %v1797_v39 = vsel %vm1793_vm13, %v1777_v24, %v1780_v49 }
 0x248   : > { %v1623_v48 = vclz %v2261_v53  ;;  %v1799_v29 = vsel %vm1795_vm15, %v1783_v57, %v1798_v44  ;;  %v1807_v11 = vsel %vm1795_vm15, %v1789_v36, %v1806_v26  ;;  %v947_v56 = vadd.s32 1, %v2236_v19 }
 0x249   : > { %v1808_v20 = vsel %vm1794_vm3, %v1805_v33, %v1807_v11  ;;  %v3466_v50 = vmul.u32.u64.low %v1809_v14, %v1804_v32  ;;  %v3467_v63 = vmul.u32.u64.high %v1809_v14, %v1804_v32, %v3466_v50  ;;  %v3473_v54 = vsel %vm3436_vm2, %v3053_v60, %v1537_v46 }
 0x24a   : > { %v2262_v12 = vadd.s32 4294967294, %v1623_v48  ;;  %v3475_v3 = vmul.u32.u64.low %v1809_v14, %v1808_v20  ;;  %v3476_v21 = vmul.u32.u64.high %v1809_v14, %v1808_v20, %v3475_v3  ;;  %2465 = vsinq.f32 %v3387_v15 }
 0x24b   : > { %v3484_v49 = vsel %vm1660_vm5, %v1744_v42, %v3335_v9  ;;  %v945_v57 = vor.u32 8388608, %v944_v10  ;;  %vm948_vm7 = vcmp.gt.s32.totalorder %v947_v56, 0  ;;  %v1742_v36 = vxor.u32 2147483648, %v1741_v38 }
 0x24c   : > { %vm2263_vm0 = vcmp.lt.s32.totalorder %v2262_v12, 0  ;;  %v1800_v46 = vsel %vm1794_vm3, %v1797_v39, %v1799_v29  ;;  %v949_v19 = vsel %vm948_vm7, %v947_v56, 0  ;;  %2467 = vcosq.f32 %v3473_v54 }
 0x24d   : > { %v1626_v16 = vsel %vm2263_vm0, 0, %v2262_v12  ;;  %v1819_v15 = vadd.s32 1, %v3467_v63  ;;  %v951_v24 = vand.u32 31, %v949_v19  ;;  %v1611_v44 = vadd.s32 %v3376_v47, %v3381_v58 }
 0x24e   : > { %v1627_v53 = vsub.s32 32, %v1626_v16  ;;  %v1631_v9 = vsub.s32 4294967266, %v1626_v16  ;;  %v3953_v42 = vand.u32 2147483647, %v3396_v30  ;;  %v1816_v10 = vmul.u32 %v1809_v14, %v1800_v46 }
 0x24f   : > { %vm1818_vm13 = vc.u32 %v3476_v21, %v3466_v50  ;;  %v952_v43 = vsub.s32 32, %v951_v24  ;;  %v3495_v7 = vshll.u32 %v945_v57, 8  ;;  %v1743_v33 = vsel %vm1660_vm5, %v1742_v36, %v1741_v38 }
 0x250   : > { %v1632_v32 = vadd.s32 127, %v1631_v9  ;;  %v1820_v26 = vsel %vm1818_vm13, %v1819_v15, %v3467_v63  ;;  %v950_v48 = vshrl.u32 %v949_v19, 5  ;;  %v954_v47 = vshll.u32 %v3998_v51, %v951_v24 }
 0x251   : > { %v1821_v39 = vadd.s32 %v1820_v26, %v1816_v10  ;;  %v955_v58 = vshrl.u32 %v3989_v28, %v952_v43  ;;  %v958_v14 = vshrl.u32 %v3991_v27, %v952_v43  ;;  %v1629_v29 = vshrl.u32 %v1611_v44, %v1627_v53 }
 0x252   : > { %v957_v11 = vshll.u32 %v3989_v28, %v951_v24  ;;  %v960_v20 = vshll.u32 %v3991_v27, %v951_v24  ;;  %v961_v56 = vshrl.u32 %v4003_v2, %v952_v43  ;;  %v4016_v38 = vand.u32 2147483647, %v3137_v52 }
 0x253   : > { %v1628_v63 = vshll.u32 %v3445_v37, %v1626_v16  ;;  %v1822_v3 = vadd.s32 536870912, %v1821_v39  ;;  %v963_v57 = vshll.u32 %v4003_v2, %v951_v24  ;;  %v964_v36 = vshrl.u32 %v4004_v34, %v952_v43 }
 0x254   : > { %vm3508_vm5 = vcmp.le.f32.partialorder %v4016_v38, 0.7853982  ;;  %v1633_v46 = vshll.u32 %v1632_v32, 23  ;;  %v956_v19 = vor.u32 %v955_v58, %v954_v47  ;;  %v959_v15 = vor.u32 %v958_v14, %v957_v11  ;;  %v3515_v53 = vpop.eup %2465 }
 0x255   : > { %v962_v44 = vor.u32 %v961_v56, %v960_v20  ;;  %v3517_v9 = vshrl.u32 %v1822_v3, 30  ;;  %v965_v10 = vor.u32 %v964_v36, %v963_v57  ;;  %v966_v26 = vshll.u32 %v4004_v34, %v951_v24 }
 0x256   : > { %v967_v38 = vshrl.u32 %v4008_v17, %v952_v43  ;;  %v1630_v61 = vor.u32 %v1629_v29, %v1628_v63  ;;  %v953_v37 = vshrl.u32 %v3998_v51, %v952_v43  ;;  %vm972_vm14 = vcmp.lt.s32.totalorder %v950_v48, 4  ;;  %v3523_v6 = vpop.eup %2467 }
 0x257   : > { %v1867_v16 = vand.u32 2139095040, %v3396_v30  ;;  %v1824_v32 = vshll.u32 %v3517_v9, 30  ;;  %vm969_vm15 = vcmp.lt.s32.totalorder %v950_v48, 1  ;;  %v974_v58 = vsel %vm972_vm14, %v962_v44, 2102212464 }
 0x258   : > { %v968_v47 = vor.u32 %v967_v38, %v966_v26  ;;  %v1634_v14 = vor.u32 4788187, %v1633_v46  ;;  %vm971_vm3 = vcmp.lt.s32.totalorder %v950_v48, 3  ;;  %v977_v11 = vsel %vm969_vm15, %v956_v19, %v959_v15 }
 0x259   : > { %v978_v24 = vsel %vm972_vm14, %v965_v10, 920167782  ;;  %v3528_v20 = vsub.s32 %v1821_v39, %v1824_v32  ;;  %vm970_vm7 = vcmp.lt.s32.totalorder %v950_v48, 2  ;;  %v981_v29 = vsel %vm969_vm15, %v959_v15, %v962_v44 }
 0x25a   : > { %v979_v43 = vsel %vm971_vm3, %v962_v44, %v978_v24  ;;  %v973_v56 = vsel %vm969_vm15, %v953_v37, %v956_v19  ;;  %v975_v63 = vsel %vm971_vm3, %v959_v15, %v974_v58  ;;  %v982_v57 = vsel %vm972_vm14, %v968_v47, 1326507024 }
 0x25b   : > { %v980_v3 = vsel %vm970_vm7, %v977_v11, %v979_v43  ;;  %v1827_v36 = vsub.s32 0, %v3528_v20  ;;  %v983_v26 = vsel %vm971_vm3, %v965_v10, %v982_v57  ;;  %v1746_v39 = vsel %vm3508_vm5, %v3137_v52, %v1743_v33 }
 0x25c   : > { %v3534_v46 = vmul.u32.u64.low %v3495_v7, %v980_v3  ;;  %v3535_v38 = vmul.u32.u64.high %v3495_v7, %v980_v3, %v3534_v46  ;;  %v1635_v32 = vand.u32 2147483647, %v1634_v14  ;;  %v984_v19 = vsel %vm970_vm7, %v981_v29, %v983_v26 }
 0x25d   : > { %v1868_v15 = vshrl.u32 %v1867_v16, 23  ;;  %v2269_v44 = vmin.u32 %v1827_v36, %v3528_v20  ;;  %v3544_v37 = vmul.u32.u64.low %v3495_v7, %v984_v19  ;;  %v3545_v47 = vmul.u32.u64.high %v3495_v7, %v984_v19, %v3544_v37 }
 0x25e   : > { %v1871_v10 = vand.u32 8388607, %v3953_v42  ;;  %v1637_v58 = vcvt.s32.f32 %v1630_v61  ;;  %v976_v11 = vsel %vm970_vm7, %v973_v56, %v975_v63  ;;  %v1249_v43 = vand.u32 2139095040, %v3403_v23 }
 0x25f   : > { %v2272_v24 = vadd.s32 4294967169, %v1868_v15  ;;  %2469 = vsinq.f32 %v3473_v54  ;;  %v1829_v16 = vclz %v2269_v44  ;;  %v995_v14 = vadd.s32 1, %v3535_v38 }
 0x260   : > { %2471 = vcosq.f32 %v1746_v39  ;;  %v3559_v61 = vmul.f32 %v1637_v58, %v1635_v32  ;;  %v992_v63 = vmul.u32 %v3495_v7, %v976_v11  ;;  %vm994_vm0 = vc.u32 %v3545_v47, %v3534_v46 }
 0x261   : > { %v1874_v48 = vadd.s32 1, %v2272_v24  ;;  %v2270_v56 = vadd.s32 4294967294, %v1829_v16  ;;  %v1872_v3 = vor.u32 8388608, %v1871_v10  ;;  %v996_v54 = vsel %vm994_vm0, %v995_v14, %v3535_v38 }
 0x262   : > { %v3952_v57 = vand.u32 2147483647, %v3403_v23  ;;  %v1250_v36 = vshrl.u32 %v1249_v43, 23  ;;  %2473 = vsinq.f32 %v1746_v39  ;;  %v997_v26 = vadd.s32 %v996_v54, %v992_v63 }
 0x263   : > { %vm1875_vm13 = vcmp.gt.s32.totalorder %v1874_v48, 0  ;;  %vm2271_vm14 = vcmp.lt.s32.totalorder %v2270_v56, 0  ;;  %v1817_v15 = vadd.s32 %v3466_v50, %v3476_v21  ;;  %v3569_v11 = vshll.u32 %v1872_v3, 8 }
 0x264   : > { %v1876_v19 = vsel %vm1875_vm13, %v1874_v48, 0  ;;  %v1832_v7 = vsel %vm2271_vm14, 0, %v2270_v56  ;;  %v998_v10 = vadd.s32 536870912, %v997_v26  ;;  %v2248_v43 = vadd.s32 4294967169, %v1250_v36 }
 0x265   : > { %v1878_v44 = vand.u32 31, %v1876_v19  ;;  %v1833_v37 = vsub.s32 32, %v1832_v7  ;;  %v1837_v58 = vsub.s32 4294967266, %v1832_v7  ;;  %v1834_v38 = vshll.u32 %v3528_v20, %v1832_v7 }
 0x266   : > { %v3574_v39 = vand.u32 8388607, %v3952_v57  ;;  %v3576_v48 = vshrl.u32 %v998_v10, 30  ;;  %vm3961_vm15 = vcmp.lt.s32.totalorder %v3218_v4, 0  ;;  %v1256_v52 = vadd.s32 1, %v2248_v43 }
 0x267   : > { %v1879_v24 = vsub.s32 32, %v1878_v44  ;;  %v1835_v16 = vshrl.u32 %v1817_v15, %v1833_v37  ;;  %v1838_v14 = vadd.s32 127, %v1837_v58  ;;  %v1881_v50 = vshll.u32 %v3998_v51, %v1878_v44 }
 0x268   : > { %v1884_v56 = vshll.u32 %v3989_v28, %v1878_v44  ;;  %v1000_v7 = vshll.u32 %v3576_v48, 30  ;;  %v1887_v15 = vshll.u32 %v3991_v27, %v1878_v44  ;;  %v1877_v58 = vshrl.u32 %v1876_v19, 5 }
 0x269   : > { %v1882_v21 = vshrl.u32 %v3989_v28, %v1879_v24  ;;  %v1885_v63 = vshrl.u32 %v3991_v27, %v1879_v24  ;;  %v1888_v20 = vshrl.u32 %v4003_v2, %v1879_v24  ;;  %v3583_v3 = vpop.eup %2469  ;;  %v1836_v54 = vor.u32 %v1835_v16, %v1834_v38 }
 0x26a   : > { %v1839_v36 = vshll.u32 %v1838_v14, 23  ;;  %v3587_v37 = vpop.eup %2471  ;;  %v1890_v57 = vshll.u32 %v4003_v2, %v1878_v44  ;;  %v1891_v29 = vshrl.u32 %v4004_v34, %v1879_v24  ;;  %v3592_v42 = vsub.s32 %v997_v26, %v1000_v7 }
 0x26b   : > { %4019 = vst [vmem:[#allocation18_spill] sm:$0xff] %v3587_v37  ;;  %v1883_v10 = vor.u32 %v1882_v21, %v1881_v50  ;;  %v1886_v32 = vor.u32 %v1885_v63, %v1884_v56  ;;  %v1889_v38 = vor.u32 %v1888_v20, %v1887_v15  ;;  %v1893_v14 = vshll.u32 %v4004_v34, %v1878_v44 }
 0x26c   : > { %v1840_v33 = vor.u32 4788187, %v1839_v36  ;;  %v1892_v16 = vor.u32 %v1891_v29, %v1890_v57  ;;  %v1894_v40 = vshrl.u32 %v4008_v17, %v1879_v24  ;;  %v3596_v22 = vpop.eup %2473  ;;  %v1843_v50 = vcvt.s32.f32 %v1836_v54 }
 0x26d   : > { %4020 = vst [vmem:[#allocation19_spill] sm:$0xff] %v3596_v22  ;;  %v1003_v21 = vsub.s32 0, %v3592_v42  ;;  %v1880_v37 = vshrl.u32 %v3998_v51, %v1879_v24  ;;  %vm3963_vm3 = vcmp.lt.s32.totalorder %v3329_v5, 0  ;;  %vm1896_vm7 = vcmp.lt.s32.totalorder %v1877_v58, 1 }
 0x26e   : > { %v1841_v19 = vand.u32 2147483647, %v1840_v33  ;;  %v1895_v26 = vor.u32 %v1894_v40, %v1893_v14  ;;  %vm1897_vm0 = vcmp.lt.s32.totalorder %v1877_v58, 2  ;;  %vm1899_vm13 = vcmp.lt.s32.totalorder %v1877_v58, 4 }
 0x26f   : > { %v2237_v57 = vmin.u32 %v1003_v21, %v3592_v42  ;;  %v1901_v44 = vsel %vm1899_vm13, %v1889_v38, 2102212464  ;;  %v1904_v56 = vsel %vm1896_vm7, %v1883_v10, %v1886_v32  ;;  %vm1898_vm14 = vcmp.lt.s32.totalorder %v1877_v58, 3 }
 0x270   : > { %v1844_v29 = vmul.f32 %v1843_v50, %v1841_v19  ;;  %v1905_v43 = vsel %vm1899_vm13, %v1892_v16, 920167782  ;;  %v1908_v63 = vsel %vm1896_vm7, %v1886_v32, %v1889_v38  ;;  %v1909_v33 = vsel %vm1899_vm13, %v1895_v26, 1326507024 }
 0x271   : > { %v1005_v20 = vclz %v2237_v57  ;;  %v1900_v54 = vsel %vm1896_vm7, %v1880_v37, %v1883_v10  ;;  %v1902_v36 = vsel %vm1898_vm14, %v1886_v32, %v1901_v44  ;;  %v1906_v7 = vsel %vm1898_vm14, %v1889_v38, %v1905_v43 }
 0x272   : > { %v1907_v24 = vsel %vm1897_vm0, %v1904_v56, %v1906_v7  ;;  %v1910_v15 = vsel %vm1898_vm14, %v1892_v16, %v1909_v33  ;;  %vm1257_vm1 = vcmp.gt.s32.totalorder %v1256_v52, 0  ;;  %v920_v40 = vsub.s32 4, %v2964_v41 }
 0x273   : > { %v1845_v14 = vxor.u32 2147483648, %v1844_v29  ;;  %v2238_v19 = vadd.s32 4294967294, %v1005_v20  ;;  %v1911_v50 = vsel %vm1897_vm0, %v1908_v63, %v1910_v15  ;;  %v1258_v21 = vsel %vm1257_vm1, %v1256_v52, 0 }
 0x274   : > { %v4021_v22 = vxor.u32 2147483648, %v3559_v61  ;;  %v1903_v32 = vsel %vm1897_vm0, %v1900_v54, %v1902_v36  ;;  %v3614_v37 = vmul.u32.u64.low %v3569_v11, %v1911_v50  ;;  %v3615_v10 = vmul.u32.u64.high %v3569_v11, %v1911_v50, %v3614_v37 }
 0x275   : > { %v993_v38 = vadd.s32 %v3534_v46, %v3545_v47  ;;  %vm2239_vm7 = vcmp.lt.s32.totalorder %v2238_v19, 0  ;;  %v3620_v16 = vmul.u32.u64.low %v3569_v11, %v1907_v24  ;;  %v3621_v52 = vmul.u32.u64.high %v3569_v11, %v1907_v24, %v3620_v16 }
 0x276   : > { %v3610_v26 = vsel %vm3961_vm15, %v4021_v22, %v3559_v61  ;;  %v1008_v57 = vsel %vm2239_vm7, 0, %v2238_v19  ;;  %v1254_v44 = vor.u32 8388608, %v3574_v39  ;;  %v1260_v22 = vand.u32 31, %v1258_v21 }
 0x277   : > { %v3628_v61 = vsel %vm836_vm8, %v920_v40, %v2964_v41  ;;  %v1846_v58 = vsel %vm3963_vm3, %v1845_v14, %v1844_v29  ;;  %v1009_v56 = vsub.s32 32, %v1008_v57  ;;  %v1013_v46 = vsub.s32 4294967266, %v1008_v57 }
 0x278   : > { %v1919_v47 = vmul.u32 %v3569_v11, %v1903_v32  ;;  %v1010_v43 = vshll.u32 %v3592_v42, %v1008_v57  ;;  %vm1921_vm1 = vc.u32 %v3615_v10, %v3620_v16  ;;  %v1259_v63 = vshrl.u32 %v1258_v21, 5 }
 0x279   : > { %v1261_v39 = vsub.s32 32, %v1260_v22  ;;  %v1011_v33 = vshrl.u32 %v993_v38, %v1009_v56  ;;  %v1014_v20 = vadd.s32 127, %v1013_v46  ;;  %v1922_v54 = vadd.s32 1, %v3621_v52 }
 0x27a   : > { %v1263_v41 = vshll.u32 %v3998_v51, %v1260_v22  ;;  %v4022_v36 = vand.u32 2147483647, %v3218_v4  ;;  %v1266_v42 = vshll.u32 %v3989_v28, %v1260_v22  ;;  %v1269_v24 = vshll.u32 %v3991_v27, %v1260_v22 }
 0x27b   : > { %v1264_v11 = vshrl.u32 %v3989_v28, %v1261_v39  ;;  %v1267_v7 = vshrl.u32 %v3991_v27, %v1261_v39  ;;  %v1012_v15 = vor.u32 %v1011_v33, %v1010_v43  ;;  %v1015_v40 = vshll.u32 %v1014_v20, 23 }
 0x27c   : > { %vm3640_vm8 = vcmp.le.f32.partialorder %v4022_v36, 0.7853982  ;;  %v1923_v14 = vsel %vm1921_vm1, %v1922_v54, %v3621_v52  ;;  %v1270_v19 = vshrl.u32 %v4003_v2, %v1261_v39  ;;  %v4025_v50 = vand.u32 2147483647, %v3329_v5 }
 0x27d   : > { %v1924_v32 = vadd.s32 %v1923_v14, %v1919_v47  ;;  %v1265_v37 = vor.u32 %v1264_v11, %v1263_v41  ;;  %v1268_v38 = vor.u32 %v1267_v7, %v1266_v42  ;;  %vm1278_vm13 = vcmp.lt.s32.totalorder %v1259_v63, 1 }
 0x27e   : > { %vm3652_vm0 = vcmp.le.f32.partialorder %v4025_v50, 0.7853982  ;;  %v1016_v28 = vor.u32 4788187, %v1015_v40  ;;  %v1271_v57 = vor.u32 %v1270_v19, %v1269_v24  ;;  %v1272_v27 = vshll.u32 %v4003_v2, %v1260_v22 }
 0x27f   : > { %v1273_v56 = vshrl.u32 %v4004_v34, %v1261_v39  ;;  %v1925_v46 = vadd.s32 536870912, %v1924_v32  ;;  %v1262_v52 = vshrl.u32 %v3998_v51, %v1261_v39  ;;  %v1275_v43 = vshll.u32 %v4004_v34, %v1260_v22 }
 0x280   : > { %v1276_v33 = vshrl.u32 %v4008_v17, %v1261_v39  ;;  %v1017_v20 = vand.u32 2147483647, %v1016_v28  ;;  %v1019_v54 = vcvt.s32.f32 %v1012_v15  ;;  %vm1281_vm14 = vcmp.lt.s32.totalorder %v1259_v63, 4 }
 0x281   : > { %v1274_v36 = vor.u32 %v1273_v56, %v1272_v27  ;;  %vm3962_vm7 = vcmp.lt.s32.totalorder %v3391_v0, 0  ;;  %v3662_v47 = vshrl.u32 %v1925_v46, 30  ;;  %vm1280_vm1 = vcmp.lt.s32.totalorder %v1259_v63, 3 }
 0x282   : > { %v1277_v41 = vor.u32 %v1276_v33, %v1275_v43  ;;  %v1283_v2 = vsel %vm1281_vm14, %v1271_v57, 2102212464  ;;  %v1020_v11 = vmul.f32 %v1019_v54, %v1017_v20  ;;  %v1282_v42 = vsel %vm1278_vm13, %v1262_v52, %v1265_v37 }
 0x283   : > { %v1286_v51 = vsel %vm1278_vm13, %v1265_v37, %v1268_v38  ;;  %v1287_v34 = vsel %vm1281_vm14, %v1274_v36, 920167782  ;;  %v1927_v17 = vshll.u32 %v3662_v47, 30  ;;  %v1284_v22 = vsel %vm1280_vm1, %v1268_v38, %v1283_v2 }
 0x284   : > { %v1288_v39 = vsel %vm1280_vm1, %v1271_v57, %v1287_v34  ;;  %v1290_v7 = vsel %vm1278_vm13, %v1268_v38, %v1271_v57  ;;  %v3676_v24 = vsel %vm3640_vm8, %v3218_v4, %v3610_v26  ;;  %vm1279_vm15 = vcmp.lt.s32.totalorder %v1259_v63, 2 }
 0x285   : > { %v1291_v15 = vsel %vm1281_vm14, %v1277_v41, 1326507024  ;;  %v1294_v40 = vshll.u32 %v1254_v44, 8  ;;  %v3679_v14 = vsub.s32 %v1924_v32, %v1927_v17  ;;  %v1289_v19 = vsel %vm1279_vm15, %v1286_v51, %v1288_v39  ;;  %v4032_v39 = vld [vmem:[#allocation16_spill] sm:$0xff] }
 0x286   : > { %v1292_v50 = vsel %vm1280_vm1, %v1274_v36, %v1291_v15  ;;  %v923_v37 = vsel %vm3164_vm12, 0, %v3628_v61  ;;  %v3688_v38 = vsel %vm3652_vm0, %v3329_v5, %v1846_v58  ;;  %v1021_v26 = vxor.u32 2147483648, %v1020_v11 }
 0x287   : > { %v1285_v28 = vsel %vm1279_vm15, %v1282_v42, %v1284_v22  ;;  %v1293_v57 = vsel %vm1279_vm15, %v1290_v7, %v1292_v50  ;;  %v1930_v27 = vsub.s32 0, %v3679_v14  ;;  %v927_v56 = vand.u32 3, %v923_v37 }
 0x288   : > { %v3691_v44 = vmul.u32.u64.low %v1294_v40, %v1293_v57  ;;  %v3692_v32 = vmul.u32.u64.high %v1294_v40, %v1293_v57, %v3691_v44  ;;  %2475 = vcosq.f32 %v3676_v24  ;;  %v1023_v63 = vsub.s32 4, %v3576_v48 }
 0x289   : > { %v3696_v13 = vmul.u32.u64.low %v1294_v40, %v1289_v19  ;;  %v3697_v61 = vmul.u32.u64.high %v1294_v40, %v1289_v19, %v3696_v13  ;;  %2477 = vcosq.f32 %v3688_v38  ;;  %v1920_v58 = vadd.s32 %v3620_v16, %v3615_v10  ;;  %v4034_v19 = vld [vmem:[#allocation5_spill] sm:$0xff] }
 0x28a   : > { %v2273_v46 = vmin.u32 %v1930_v27, %v3679_v14  ;;  %v930_v52 = vxor.u32 2147483648, %v3343_v18  ;;  %v1022_v43 = vsel %vm3962_vm7, %v1021_v26, %v1020_v11  ;;  %v1301_v33 = vmul.u32 %v1294_v40, %v1285_v28  ;;  %v4036_v28 = vld [vmem:[#allocation11_spill] sm:$0xff] }
 0x28b   : > { %v933_v20 = vxor.u32 2147483648, %v3263_v25  ;;  %v1229_v54 = vsub.s32 4, %v3065_v1  ;;  %vm1303_vm12 = vc.u32 %v3692_v32, %v3696_v13  ;;  %vm926_vm15 = vweird.f32 %v2825_v31  ;;  %v4039_v31 = vld [vmem:[#allocation8_spill] sm:$0xff] }
 0x28c   : > { %v1932_v36 = vclz %v2273_v46  ;;  %vm929_vm13 = vcmp.eq.s32.totalorder %v927_v56, 0  ;;  %vm932_vm14 = vcmp.eq.s32.totalorder %v927_v56, 2  ;;  %v1304_v10 = vadd.s32 1, %v3697_v61 }
 0x28d   : > { %v931_v16 = vsel %vm929_vm13, %v3263_v25, %v930_v52  ;;  %v934_v41 = vsel %vm932_vm14, %v933_v20, %v3343_v18  ;;  %v1230_v2 = vsel %vm1145_vm6, %v1229_v54, %v3065_v1  ;;  %vm928_vm1 = vcmp.lt.s32.totalorder %v927_v56, 2 }
 0x28e   : > { %v2274_v11 = vadd.s32 4294967294, %v1932_v36  ;;  %v1232_v51 = vsel %vm3267_vm11, 0, %v1230_v2  ;;  %vm1235_vm7 = vweird.f32 %v2843_v55  ;;  %v4029_v34 = vand.u32 2147483647, %v3391_v0 }
 0x28f   : > { %v1305_v25 = vsel %vm1303_vm12, %v1304_v10, %v3697_v61  ;;  %v1236_v18 = vand.u32 3, %v1232_v51  ;;  %v1239_v22 = vxor.u32 2147483648, %v3421_v45  ;;  %v1242_v1 = vxor.u32 2147483648, %v4032_v39 }
 0x290   : > { %vm3723_vm3 = vcmp.le.f32.partialorder %v4029_v34, 0.7853982  ;;  %vm2275_vm6 = vcmp.lt.s32.totalorder %v2274_v11, 0  ;;  %v1306_v7 = vadd.s32 %v1305_v25, %v1301_v33  ;;  %v935_v15 = vsel %vm928_vm1, %v931_v16, %v934_v41 }
 0x291   : > { %v4035_v50 = vsel %vm3090_vm4, 0, %v4034_v19  ;;  %v1935_v26 = vsel %vm2275_vm6, 0, %v2274_v11  ;;  %vm1237_vm11 = vcmp.lt.s32.totalorder %v1236_v18, 2  ;;  %vm1238_vm13 = vcmp.eq.s32.totalorder %v1236_v18, 0 }
 0x292   : > { %v824_v37 = vand.u32 3, %v4035_v50  ;;  %v827_v57 = vxor.u32 2147483648, %v4036_v28  ;;  %v1936_v27 = vsub.s32 32, %v1935_v26  ;;  %v1940_v44 = vsub.s32 4294967266, %v1935_v26  ;;  %v3735_v61 = vpop.eup %2475  ;;  %v4042_v50 = vld [vmem:[#allocation3_spill] sm:$0xff] }
 0x293   : > { %v1307_v56 = vadd.s32 536870912, %v1306_v7  ;;  %vm1241_vm12 = vcmp.eq.s32.totalorder %v1236_v18, 2  ;;  %v1937_v46 = vshll.u32 %v3679_v14, %v1935_v26  ;;  %v1240_v52 = vsel %vm1238_vm13, %v4032_v39, %v1239_v22  ;;  %v3740_v20 = vpop.eup %2477  ;;  %v4037_v14 = vld [vmem:[#allocation10_spill] sm:$0xff] }
 0x294   : > { %v1243_v33 = vsel %vm1241_vm12, %v1242_v1, %v3421_v45  ;;  %vm826_vm14 = vcmp.eq.s32.totalorder %v824_v37, 0  ;;  %v1938_v54 = vshrl.u32 %v1920_v58, %v1936_v27  ;;  %v1941_v36 = vadd.s32 127, %v1940_v44 }
 0x295   : > { %v3742_v10 = vshrl.u32 %v1307_v56, 30  ;;  %v1244_v16 = vsel %vm1237_vm11, %v1240_v52, %v1243_v33  ;;  %v936_v41 = vsel %vm926_vm15, nan, %v935_v15  ;;  %v828_v11 = vsel %vm826_vm14, %v4037_v14, %v827_v57  ;;  %v4043_v57 = vld [vmem:[#allocation15_spill] sm:$0xff]  ;;  %v4048_v56 = vld [vmem:[#allocation9_spill] sm:$0xff] }
 0x296   : > { %v1245_v2 = vsel %vm1235_vm7, nan, %v1244_v16  ;;  %v830_v42 = vxor.u32 2147483648, %v4037_v14  ;;  %v1939_v45 = vor.u32 %v1938_v54, %v1937_v46  ;;  %v1942_v51 = vshll.u32 %v1941_v36, 23 }
 0x297   : > { %v1309_v34 = vshll.u32 %v3742_v10, 30  ;;  %vm829_vm4 = vcmp.eq.s32.totalorder %v824_v37, 2  ;;  %2479 = vsinq.f32 %v3688_v38  ;;  %v2305_v58 = vpack.c.bf16 %v1245_v2, %v936_v41  ;;  %v4041_v38 = vld [vmem:[#allocation2_spill] sm:$0xff] }
 0x298   : > { %v831_v25 = vsel %vm829_vm4, %v830_v42, %v4036_v28  ;;  %v4040_v22 = vsel %vm3255_vm10, 0, %v4039_v31  ;;  %v1025_v39 = vsel %vm3723_vm3, %v3391_v0, %v1022_v43  ;;  %vm1866_vm7 = vcmp.lt.s32.totalorder %v3396_v30, 0 }
 0x299   : > { %v1133_v55 = vand.u32 3, %v4040_v22  ;;  %v1943_v1 = vor.u32 4788187, %v1942_v51  ;;  %v3762_v15 = vsub.s32 %v1306_v7, %v1309_v34  ;;  %vm825_vm15 = vcmp.lt.s32.totalorder %v824_v37, 2  ;;  %2306 = vmatprep.subr.bf16.mxu1 %v2305_v58  ;;  %v4047_v7 = vld [vmem:[#allocation14_spill] sm:$0xff] }
 0x29a   : > { %v1946_v40 = vcvt.s32.f32 %v1939_v45  ;;  %vm823_vm1 = vweird.f32 %v4041_v38  ;;  %v832_v19 = vsel %vm825_vm15, %v828_v11, %v831_v25  ;;  %vm1132_vm6 = vweird.f32 %v4042_v50 }
 0x29b   : > { %v1944_v26 = vand.u32 2147483647, %v1943_v1  ;;  %v1312_v28 = vsub.s32 0, %v3762_v15  ;;  %vm1134_vm10 = vcmp.lt.s32.totalorder %v1133_v55, 2  ;;  %v1136_v27 = vxor.u32 2147483648, %v4043_v57 }
 0x29c   : > { %v4044_v43 = vand.u32 2147483647, %v3396_v30  ;;  %vm1135_vm13 = vcmp.eq.s32.totalorder %v1133_v55, 0  ;;  %vm1138_vm12 = vcmp.eq.s32.totalorder %v1133_v55, 2  ;;  %v1139_v37 = vxor.u32 2147483648, %v4047_v7 }
 0x29d   : > { %v1538_v46 = vsub.s32 4, %v4048_v56  ;;  %v1947_v52 = vmul.f32 %v1946_v40, %v1944_v26  ;;  %v2249_v33 = vmin.u32 %v1312_v28, %v3762_v15  ;;  %v1137_v54 = vsel %vm1135_vm13, %v4047_v7, %v1136_v27 }
 0x29e   : > { %vm3770_vm11 = vcmp.le.f32.partialorder %v4044_v43, 0.7853982  ;;  %v1548_v36 = vxor.u32 2147483648, %v3583_v3  ;;  %v1140_v16 = vsel %vm1138_vm12, %v1139_v37, %v4043_v57  ;;  %vm4049_vm14 = vcmp.lt.s32.totalorder %v3053_v60, 0 }
 0x29f   : > { %v1539_v41 = vsel %vm4049_vm14, %v1538_v46, %v4048_v56  ;;  %v1551_v2 = vxor.u32 2147483648, %v3523_v6  ;;  %v1847_v14 = vsub.s32 4, %v3517_v9  ;;  %v1948_v11 = vxor.u32 2147483648, %v1947_v52 }
 0x2a0   : > { %v1314_v42 = vclz %v2249_v33  ;;  %v1141_v45 = vsel %vm1134_vm10, %v1137_v54, %v1140_v16  ;;  %v1541_v51 = vsel %vm3436_vm2, 0, %v1539_v41  ;;  %v833_v34 = vsel %vm823_vm1, nan, %v832_v19 }
 0x2a1   : > { %v1142_v58 = vsel %vm1132_vm6, nan, %v1141_v45  ;;  %v1545_v25 = vand.u32 3, %v1541_v51  ;;  %vm4050_vm4 = vcmp.lt.s32.totalorder %v3329_v5, 0  ;;  %2481 = vcosq.f32 %v1025_v39  ;;  %v2480_v1 = vpop.eup %2479 }
 0x2a2   : > { %v1848_v18 = vsel %vm4050_vm4, %v1847_v14, %v3517_v9  ;;  %v2250_v31 = vadd.s32 4294967294, %v1314_v42  ;;  %v2307_v22 = vpack.c.bf16 %v1142_v58, %v833_v34  ;;  %2483 = vsinq.f32 %v1025_v39  ;;  %v4054_v34 = vld [vmem:[#allocation18_spill] sm:$0xff] }
 0x2a3   : > { %v1850_v55 = vsel %vm3652_vm0, 0, %v1848_v18  ;;  %v1949_v59 = vsel %vm1866_vm7, %v1948_v11, %v1947_v52  ;;  %vm1547_vm2 = vcmp.eq.s32.totalorder %v1545_v25, 0  ;;  %vm1550_vm15 = vcmp.eq.s32.totalorder %v1545_v25, 2  ;;  %v4053_v11 = vld [vmem:[#allocation19_spill] sm:$0xff] }
 0x2a4   : > { %v1302_v40 = vadd.s32 %v3696_v13, %v3692_v32  ;;  %vm2251_vm1 = vcmp.lt.s32.totalorder %v2250_v31, 0  ;;  %2308 = vmatpush1.bf16.msra.mxu1 %v2307_v22  ;;  %v1549_v9 = vsel %vm1547_vm2, %v3523_v6, %v1548_v36  ;;  %v1552_v38 = vsel %vm1550_vm15, %v1551_v2, %v3583_v3  ;;  %v4056_v18 = vld [vmem:[#allocation7_spill] sm:$0xff] }
 0x2a5   : > { %v1317_v19 = vsel %vm2251_vm1, 0, %v2250_v31  ;;  %vm1544_vm6 = vweird.f32 %v3053_v60  ;;  %vm1853_vm0 = vweird.f32 %v3329_v5  ;;  %v1854_v21 = vand.u32 3, %v1850_v55 }
 0x2a6   : > { %v1952_v39 = vsel %vm3770_vm11, %v3396_v30, %v1949_v59  ;;  %v1318_v50 = vsub.s32 32, %v1317_v19  ;;  %v1322_v26 = vsub.s32 4294967266, %v1317_v19  ;;  %vm1546_vm10 = vcmp.lt.s32.totalorder %v1545_v25, 2  ;;  %v4055_v25 = vld [vmem:[#allocation4_spill] sm:$0xff] }
 0x2a7   : > { %v1319_v32 = vshll.u32 %v3762_v15, %v1317_v19  ;;  %v1553_v13 = vsel %vm1546_vm10, %v1549_v9, %v1552_v38  ;;  %vm1856_vm13 = vcmp.eq.s32.totalorder %v1854_v21, 0  ;;  %v1857_v6 = vxor.u32 2147483648, %v2480_v1 }
 0x2a8   : > { %v1320_v28 = vshrl.u32 %v1302_v40, %v1318_v50  ;;  %v1323_v3 = vadd.s32 127, %v1322_v26  ;;  %vm1859_vm12 = vcmp.eq.s32.totalorder %v1854_v21, 2  ;;  %v1860_v57 = vxor.u32 2147483648, %v3740_v20  ;;  %v4061_v50 = vld [vmem:[#allocation17_spill] sm:$0xff] }
 0x2a9   : > { %v1858_v27 = vsel %vm1856_vm13, %v3740_v20, %v1857_v6  ;;  %v4051_v43 = vsel %vm3352_vm9, 0, %v3325_v8  ;;  %v1445_v37 = vxor.u32 2147483648, %v3515_v53  ;;  %v1448_v56 = vxor.u32 2147483648, %v3432_v62 }
 0x2aa   : > { %v1442_v7 = vand.u32 3, %v4051_v43  ;;  %v1321_v15 = vor.u32 %v1320_v28, %v1319_v32  ;;  %v1324_v46 = vshll.u32 %v1323_v3, 23  ;;  %vm1855_vm14 = vcmp.lt.s32.totalorder %v1854_v21, 2 }
 0x2ab   : > { %v1861_v52 = vsel %vm1859_vm12, %v1860_v57, %v2480_v1  ;;  %vm1248_vm4 = vcmp.lt.s32.totalorder %v3403_v23, 0  ;;  %v1554_v33 = vsel %vm1544_vm6, nan, %v1553_v13  ;;  %v3820_v35 = vpop.eup %2481  ;;  %v4052_v60 = vsel %vm3508_vm5, 0, %v3484_v49 }
 0x2ac   : > { %v1862_v54 = vsel %vm1855_vm14, %v1858_v27, %v1861_v52  ;;  %vm1443_vm2 = vcmp.lt.s32.totalorder %v1442_v7, 2  ;;  %vm1444_vm15 = vcmp.eq.s32.totalorder %v1442_v7, 0  ;;  %v1325_v8 = vor.u32 4788187, %v1324_v46  ;;  %v3825_v16 = vpop.eup %2483 }
 0x2ad   : > { %v1863_v20 = vsel %vm1853_vm0, nan, %v1862_v54  ;;  %v1446_v36 = vsel %vm1444_vm15, %v3432_v62, %v1445_v37  ;;  %vm1447_vm9 = vcmp.eq.s32.totalorder %v1442_v7, 2  ;;  %v1751_v14 = vand.u32 3, %v4052_v60 }
 0x2ae   : > { %v2309_v41 = vpack.c.bf16 %v1863_v20, %v1554_v33  ;;  %v1449_v2 = vsel %vm1447_vm9, %v1448_v56, %v3515_v53  ;;  %v1754_v42 = vxor.u32 2147483648, %v4053_v11  ;;  %v1326_v45 = vand.u32 2147483647, %v1325_v8 }
 0x2af   : > { %v1328_v51 = vcvt.s32.f32 %v1321_v15  ;;  %v1757_v5 = vxor.u32 2147483648, %v4054_v34  ;;  %2485 = vcosq.f32 %v1952_v39  ;;  %v1450_v62 = vsel %vm1443_vm2, %v1446_v36, %v1449_v2 }
 0x2b0   : > { %2310 = vmatprep.subr.bf16.mxu1 %v2309_v41  ;;  %vm1753_vm1 = vcmp.eq.s32.totalorder %v1751_v14, 0  ;;  %vm1756_vm6 = vcmp.eq.s32.totalorder %v1751_v14, 2  ;;  %v2536_v58 = vmov 0.0|0.0   ;;  %vm1752_vm0 = vcmp.lt.s32.totalorder %v1751_v14, 2 }
 0x2b1   : > { %2313 = vmatprep.subr.bf16.mxu0 %v2536_v58  ;;  %v1329_v53 = vmul.f32 %v1328_v51, %v1326_v45  ;;  %v1755_v49 = vsel %vm1753_vm1, %v4054_v34, %v1754_v42  ;;  %v1758_v12 = vsel %vm1756_vm6, %v1757_v5, %v4053_v11  ;;  %2487 = vsinq.f32 %v1952_v39 }
 0x2b2   : > { %vm1441_vm5 = vweird.f32 %v4055_v25  ;;  %vm1750_vm10 = vweird.f32 %v4056_v18  ;;  %v1759_v31 = vsel %vm1752_vm0, %v1755_v49, %v1758_v12  ;;  %v1332_v55 = vsub.s32 4, %v3742_v10 }
 0x2b3   : > { %v1330_v22 = vxor.u32 2147483648, %v1329_v53  ;;  %v1451_v1 = vsel %vm1441_vm5, nan, %v1450_v62  ;;  %v1760_v59 = vsel %vm1750_vm10, nan, %v1759_v31  ;;  %2489 = vsinq.f32 %v3676_v24 }
 0x2b4   : > { %vm4057_vm13 = vcmp.lt.s32.totalorder %v3391_v0, 0  ;;  %v1950_v9 = vsub.s32 4, %v3662_v47  ;;  %v2311_v38 = vpack.c.bf16 %v1760_v59, %v1451_v1  ;;  %v4058_v19 = vand.u32 2147483647, %v3403_v23 }
 0x2b5   : > { %v1024_v40 = vsel %vm4057_vm13, %v1023_v63, %v3576_v48  ;;  %v1331_v39 = vsel %vm1248_vm4, %v1330_v22, %v1329_v53  ;;  %v1641_v24 = vsub.s32 4, %v4061_v50  ;;  %v1333_v63 = vsel %vm1248_vm4, %v1332_v55, %v3742_v10 }
 0x2b6   : > { %vm3850_vm12 = vcmp.le.f32.partialorder %v4058_v19, 0.7853982  ;;  %2312 = vmatpush1.bf16.msra.mxu1 %v2311_v38  ;;  %v1026_v48 = vsel %vm3723_vm3, 0, %v1024_v40  ;;  %v1951_v32 = vsel %vm1866_vm7, %v1950_v9, %v3662_v47  ;;  %vm4062_vm14 = vcmp.lt.s32.totalorder %v3218_v4, 0  ;;  %v1967_v47 = vld [vmem:[%s3911_s4] sm:$0xff] }
 0x2b7   : > { %v1334_v26 = vsel %vm3850_vm12, %v3403_v23, %v1331_v39  ;;  %v1642_v6 = vsel %vm4062_vm14, %v1641_v24, %v4061_v50  ;;  %v1335_v28 = vsel %vm3850_vm12, 0, %v1333_v63  ;;  %v1030_v17 = vand.u32 3, %v1026_v48 }
 0x2b8   : > { %2491 = vcosq.f32 %v1334_v26  ;;  %v1953_v3 = vsel %vm3770_vm11, 0, %v1951_v32  ;;  %v1033_v10 = vxor.u32 2147483648, %v3825_v16  ;;  %v1036_v57 = vxor.u32 2147483648, %v3820_v35 }
 0x2b9   : > { %2493 = vsinq.f32 %v1334_v26  ;;  %v2486_v13 = vpop.eup %2485  ;;  %v1644_v43 = vsel %vm3640_vm8, 0, %v1642_v6  ;;  %v1339_v7 = vand.u32 3, %v1335_v28  ;;  %v2537_v37 = vmov 0.0  }
 0x2ba   : > { %2036 = vmatprep.mubr.f32.mxu1 %v2537_v37  ;;  %vm1968_vm3 = vcmask 261120   ;;  %vm1032_vm7 = vcmp.eq.s32.totalorder %v1030_v17, 0  ;;  %vm1035_vm4 = vcmp.eq.s32.totalorder %v1030_v17, 2  ;;  %v1957_v44 = vand.u32 3, %v1953_v3 }
 0x2bb   : > { %v2488_v27 = vpop.eup %2487  ;;  %2276 = vmatmul.mubr.msk.f32.vlgmr.msra.gmra.mrb[4].mxu1 %vm1968_vm3, %v1967_v47  ;;  %vm2538_vm11 = vmmov 0   ;;  %v1034_v15 = vsel %vm1032_vm7, %v3820_v35, %v1033_v10  ;;  %v1037_v46 = vsel %vm1035_vm4, %v1036_v57, %v3825_v16  ;;  %v1963_v33 = vxor.u32 2147483648, %v2486_v13 }
 0x2bc   : > { %2302 = vmatprep.mubr.msk.f32.mxu0 %vm2538_vm11, %v2537_v37  ;;  %v1960_v52 = vxor.u32 2147483648, %v2488_v27  ;;  %v1648_v29 = vand.u32 3, %v1644_v43  ;;  %vm1031_vm8 = vcmp.lt.s32.totalorder %v1030_v17, 2  ;;  %vm1340_vm2 = vcmp.lt.s32.totalorder %v1339_v7, 2 }
 0x2bd   : > { %v2490_v56 = vpop.eup %2489  ;;  %v1654_v20 = vxor.u32 2147483648, %v3735_v61  ;;  %v1038_v41 = vsel %vm1031_vm8, %v1034_v15, %v1037_v46  ;;  %vm1959_vm15 = vcmp.eq.s32.totalorder %v1957_v44, 0  ;;  %vm1962_vm9 = vcmp.eq.s32.totalorder %v1957_v44, 2 }
 0x2be   : > { %v1651_v8 = vxor.u32 2147483648, %v2490_v56  ;;  %vm1344_vm1 = vcmp.eq.s32.totalorder %v1339_v7, 2  ;;  %v1961_v14 = vsel %vm1959_vm15, %v2486_v13, %v1960_v52  ;;  %v1964_v35 = vsel %vm1962_vm9, %v1963_v33, %v2488_v27 }
 0x2bf   : > { %vm1341_vm6 = vcmp.eq.s32.totalorder %v1339_v7, 0  ;;  %vm1650_vm0 = vcmp.eq.s32.totalorder %v1648_v29, 0  ;;  %vm1653_vm5 = vcmp.eq.s32.totalorder %v1648_v29, 2  ;;  %vm1958_vm10 = vcmp.lt.s32.totalorder %v1957_v44, 2 }
 0x2c0   : > { %v1652_v42 = vsel %vm1650_vm0, %v3735_v61, %v1651_v8  ;;  %v1655_v45 = vsel %vm1653_vm5, %v1654_v20, %v2490_v56  ;;  %vm1029_vm13 = vweird.f32 %v3391_v0  ;;  %vm1338_vm12 = vweird.f32 %v3403_v23 }
 0x2c1   : > { %v1965_v34 = vsel %vm1958_vm10, %v1961_v14, %v1964_v35  ;;  %v1039_v5 = vsel %vm1029_vm13, nan, %v1038_v41  ;;  %vm1649_vm14 = vcmp.lt.s32.totalorder %v1648_v29, 2  ;;  %vm1956_vm7 = vweird.f32 %v3396_v30 }
 0x2c2   : > { %v2492_v54 = vpop.eup %2491  ;;  %v1656_v49 = vsel %vm1649_vm14, %v1652_v42, %v1655_v45  ;;  %v1966_v12 = vsel %vm1956_vm7, nan, %v1965_v34  ;;  %vm1647_vm4 = vweird.f32 %v3218_v4 }
 0x2c3   : > { %v2494_v36 = vpop.eup %2493  ;;  %v1345_v2 = vxor.u32 2147483648, %v2492_v54  ;;  %v1657_v0 = vsel %vm1647_vm4, nan, %v1656_v49 }
 0x2c4   : > { %v1342_v60 = vxor.u32 2147483648, %v2494_v36  ;;  %v2317_v61 = vpack.c.bf16 %v1966_v12, %v1657_v0 }
 0x2c5   : > { %v1346_v16 = vsel %vm1344_vm1, %v1345_v2, %v2494_v36 }
 0x2c6   : > { %v1343_v11 = vsel %vm1341_vm6, %v2492_v54, %v1342_v60 }
 0x2c7   : > { %v1347_v51 = vsel %vm1340_vm2, %v1343_v11, %v1346_v16 }
 0x2c8   : > { %v1348_v62 = vsel %vm1338_vm12, nan, %v1347_v51 }
 0x2c9   : > { %v2314_v53 = vpack.c.bf16 %v1348_v62, %v1039_v5 }
 0x2cb   : > { %2315 = vmatpush3.bf16.msra.mxu0 %v2314_v53 }
 0x2cc   : > { %2316 = vmatprep.subr.bf16.mxu0 %v2536_v58 }
 0x2cf   : > { %2318 = vmatpush3.bf16.msra.mxu0 %v2317_v61 }
 0x2d2   : > { %2303 = vmatmul.mubr.msk.f32.vlgmr.msra.gmra.mrb[8].mxu0 %vm1968_vm3, %v1967_v47 }
 0x38e   : > { %v2038_v23 = vpop.f32.mrb[4].mxu1 }
 0x38f   : > { %2113 = vst [vmem:[%s321_s9] sm:$0xff] %v2038_v23  ;;  %v2040_v25 = vpop.f32.mrb[5].mxu1 }
 0x390   : > { %2114 = vst [vmem:[%s321_s9 + $0x8] sm:$0xff] %v2040_v25 }
 0x3a5   : > { %v2109_v30 = vpop.f32.mrb[8].mxu0 }
 0x3a6   : > { %2115 = vst [vmem:[%s321_s9 + $0x10] sm:$0xff] %v2109_v30  ;;  %v2304_v18 = vpop.f32.mrb[9].mxu0 }
 0x3a7 PF: > { %s15_s20 = sadd.s32 1, %s2517_s20   ;;  %s4063_s18 = smov %s2513_s19 }
 0x3a8   : > { %p12_p5 = scmp.ge.s32.totalorder %s15_s20, 18   ;;  %s4064_s19 = smov %s4066_s21 }
 0x3aa   :  { %14 = sbr.rel (!%p12_p5) target bundleno = 2 (0x2), region = 73 }

</bundles_post_ra>
